<compile_context>
chip_gen: v7x
topology: tpu7x:2x2x1
jax: 0.10.0
libtpu: 0.0.40
codegen_flags: <defaults>
</compile_context>

<pallas_src>
import functools
import math

import jax
import jax.numpy as jnp
from jax import lax
from jax.experimental import pallas as pl
from jax.experimental.pallas import tpu as pltpu


# ----------------------------- Pallas kernel --------------------------------


def _layer_norm(x, gamma, beta, eps=1e-5):
    # LayerNorm over the last (feature) axis, PyTorch nn.LayerNorm defaults. f32 math.
    mean = jnp.mean(x, axis=-1, keepdims=True)
    var = jnp.mean((x - mean) ** 2, axis=-1, keepdims=True)
    return (x - mean) * lax.rsqrt(var + eps) * gamma + beta


def encoder_kernel(
    x_ref, bias_ref,
    wqkv_ref, bqkv_ref, wo_ref, bo_ref,
    g1_ref, be1_ref,
    w1_ref, b1_ref, w2_ref, b2_ref,
    g2_ref, be2_ref,
    o_ref,
    *, heads, num_layers, dh,
):
    Bt, S, D = x_ref.shape
    h = x_ref[...].reshape(Bt * S, D)         # (Bt*S, D) f32 activations, lane-dense
    bias = bias_ref[...]                      # (Bt, S, S) additive attention-mask bias

    for l in range(num_layers):               # static unroll; all weights VMEM-resident
        # ---- fused Q/K/V projection: one full-width bf16 MXU matmul, f32 accumulate ----
        qkv = jnp.dot(h.astype(jnp.bfloat16), wqkv_ref[l],
                      preferred_element_type=jnp.float32) + bqkv_ref[l]   # (Bt*S, 3D) f32
        # (the 1/sqrt(dh) scale is already folded into Wq / bq in the wrapper)

        # ---- per-head attention (scores are inherently K=dh contractions) --------------
        ctx_heads = []
        for hi in range(heads):
            q_h = qkv[:, hi * dh:(hi + 1) * dh].reshape(Bt, S, dh)
            k_h = qkv[:, D + hi * dh:D + (hi + 1) * dh].reshape(Bt, S, dh)
            v_h = qkv[:, 2 * D + hi * dh:2 * D + (hi + 1) * dh].reshape(Bt, S, dh)

            s_h = jnp.einsum("bqf,bkf->bqk",
                             q_h.astype(jnp.bfloat16), k_h.astype(jnp.bfloat16),
                             preferred_element_type=jnp.float32)          # (Bt, S, S)
            s_h = s_h + bias                                              # additive mask
            s_h = s_h - jnp.max(s_h, axis=-1, keepdims=True)
            p_h = jnp.exp(s_h)
            p_h = p_h * pl.reciprocal(jnp.sum(p_h, axis=-1, keepdims=True), approx=True)

            c_h = jnp.einsum("bqk,bkf->bqf",
                             p_h.astype(jnp.bfloat16), v_h.astype(jnp.bfloat16),
                             preferred_element_type=jnp.float32)          # (Bt, S, dh)
            ctx_heads.append(c_h.reshape(Bt * S, dh))

        ctx = jnp.concatenate(ctx_heads, axis=-1)                         # (Bt*S, D)

        # ---- output projection: single K=128 matmul against unsplit Wo -----------------
        attn = jnp.dot(ctx.astype(jnp.bfloat16), wo_ref[l],
                       preferred_element_type=jnp.float32) + bo_ref[l]    # (Bt*S, D)

        # ---- Add & Norm 1 (f32) ----
        h1 = _layer_norm(h + attn, g1_ref[l], be1_ref[l])

        # ---- position-wise feed forward (ReLU), bf16 MXU / f32 accumulate --------------
        ff = jnp.dot(h1.astype(jnp.bfloat16), w1_ref[l],
                     preferred_element_type=jnp.float32) + b1_ref[l]
        ff = jnp.maximum(ff, 0.0)
        ff = jnp.dot(ff.astype(jnp.bfloat16), w2_ref[l],
                     preferred_element_type=jnp.float32) + b2_ref[l]

        # ---- Add & Norm 2 (f32) ----
        h = _layer_norm(h1 + ff, g2_ref[l], be2_ref[l])

    o_ref[...] = h.reshape(Bt, S, D)


# ------------------------- parameters & glue (plain JAX) ---------------------


def make_positional_encoding(max_len, d_model):
    pos = jnp.arange(max_len, dtype=jnp.float32)[:, None]
    i = jnp.arange(0, d_model, 2, dtype=jnp.float32)[None, :]
    angle = pos / jnp.power(10000.0, i / d_model)
    pe = jnp.zeros((max_len, d_model), dtype=jnp.float32)
    pe = pe.at[:, 0::2].set(jnp.sin(angle))
    pe = pe.at[:, 1::2].set(jnp.cos(angle))
    return pe


def init_params(key, vocab_size, d_model, num_layers, forward_expansion, max_len):
    d_ff = forward_expansion * d_model
    keys = jax.random.split(key, 1 + num_layers)
    params = {
        "embedding": jax.random.normal(keys[0], (vocab_size, d_model), jnp.float32) * 0.02,
        "pe": make_positional_encoding(max_len, d_model),
        "layers": [],
    }
    for l in range(num_layers):
        lk = jax.random.split(keys[1 + l], 6)
        s_attn = 1.0 / math.sqrt(d_model)
        s_ff = 1.0 / math.sqrt(d_ff)
        layer = {
            "wq": jax.random.normal(lk[0], (d_model, d_model), jnp.float32) * s_attn,
            "bq": jnp.zeros((1, d_model), jnp.float32),
            "wk": jax.random.normal(lk[1], (d_model, d_model), jnp.float32) * s_attn,
            "bk": jnp.zeros((1, d_model), jnp.float32),
            "wv": jax.random.normal(lk[2], (d_model, d_model), jnp.float32) * s_attn,
            "bv": jnp.zeros((1, d_model), jnp.float32),
            "wo": jax.random.normal(lk[3], (d_model, d_model), jnp.float32) * s_attn,
            "bo": jnp.zeros((1, d_model), jnp.float32),
            "ln1_g": jnp.ones((1, d_model), jnp.float32),
            "ln1_b": jnp.zeros((1, d_model), jnp.float32),
            "w1": jax.random.normal(lk[4], (d_model, d_ff), jnp.float32) * s_attn,
            "b1": jnp.zeros((1, d_ff), jnp.float32),
            "w2": jax.random.normal(lk[5], (d_ff, d_model), jnp.float32) * s_ff,
            "b2": jnp.zeros((1, d_model), jnp.float32),
            "ln2_g": jnp.ones((1, d_model), jnp.float32),
            "ln2_b": jnp.zeros((1, d_model), jnp.float32),
        }
        params["layers"].append(layer)
    return params


def _pack_params(layers, heads):
    """Stack per-layer weights along a leading layer axis.

    Q/K/V are fused into one (d_model, 3*d_model) slab, the attention scale is folded into
    Wq / bq, Wo stays unsplit, and all matmul weights are pre-cast to bf16 (f32 accumulation
    preserved via preferred_element_type in the kernel). Biases / LayerNorm params stay f32.
    """
    d_model = layers[0]["wq"].shape[0]
    dh = d_model // heads
    scale = 1.0 / math.sqrt(dh)

    def stack(fn):
        return jnp.stack([fn(lp) for lp in layers], axis=0)

    return {
        "wqkv": stack(lambda lp: jnp.concatenate(
            [lp["wq"] * scale, lp["wk"], lp["wv"]], axis=1)).astype(jnp.bfloat16),
        "bqkv": stack(lambda lp: jnp.concatenate(
            [lp["bq"] * scale, lp["bk"], lp["bv"]], axis=1)),
        "wo": stack(lambda lp: lp["wo"]).astype(jnp.bfloat16),
        "bo": stack(lambda lp: lp["bo"]),
        "ln1_g": stack(lambda lp: lp["ln1_g"]),
        "ln1_b": stack(lambda lp: lp["ln1_b"]),
        "w1": stack(lambda lp: lp["w1"]).astype(jnp.bfloat16),
        "b1": stack(lambda lp: lp["b1"]),
        "w2": stack(lambda lp: lp["w2"]).astype(jnp.bfloat16),
        "b2": stack(lambda lp: lp["b2"]),
        "ln2_g": stack(lambda lp: lp["ln2_g"]),
        "ln2_b": stack(lambda lp: lp["ln2_b"]),
    }


def encoder_forward(tokens, mask, params, *, heads, block_batch=None):
    B, S = tokens.shape
    d_model = params["embedding"].shape[1]
    dh = d_model // heads
    L = len(params["layers"])

    # Default: 2 parallel grid steps (both v7x TCs busy) while still batching rows per step.
    if block_batch is None:
        block_batch = B // 2 if (B % 2 == 0 and B >= 2) else B
    assert B % block_batch == 0
    n_blocks = B // block_batch

    # Embedding lookup + sinusoidal positional encoding (cheap glue, plain JAX).
    x = jnp.take(params["embedding"], tokens, axis=0) + params["pe"][None, :S, :]
    # Dropout is identity in eval mode.

    # Additive attention-mask bias, computed once in the wrapper.
    bias = jnp.where(mask > 0, 0.0, -1e9).astype(jnp.float32)      # (B, S, S)

    p = _pack_params(params["layers"], heads)

    def full(arr):
        shape = arr.shape
        n = len(shape)
        return pl.BlockSpec(shape, lambda b: (0,) * n)   # VMEM-resident across grid steps

    in_specs = [
        pl.BlockSpec((block_batch, S, d_model), lambda b: (b, 0, 0)),   # x
        pl.BlockSpec((block_batch, S, S), lambda b: (b, 0, 0)),         # mask bias
        full(p["wqkv"]), full(p["bqkv"]),       # fused QKV weight (bf16) + bias (f32)
        full(p["wo"]), full(p["bo"]),           # unsplit Wo (bf16) + bias
        full(p["ln1_g"]), full(p["ln1_b"]),     # LayerNorm 1
        full(p["w1"]), full(p["b1"]),           # FFN up
        full(p["w2"]), full(p["b2"]),           # FFN down
        full(p["ln2_g"]), full(p["ln2_b"]),     # LayerNorm 2
    ]

    kernel = functools.partial(encoder_kernel, heads=heads, num_layers=L, dh=dh)
    return pl.pallas_call(
        kernel,
        out_shape=jax.ShapeDtypeStruct((B, S, d_model), jnp.float32),
        grid=(n_blocks,),
        in_specs=in_specs,
        out_specs=pl.BlockSpec((block_batch, S, d_model), lambda b: (b, 0, 0)),
        compiler_params=pltpu.CompilerParams(
            dimension_semantics=("parallel",),
            vmem_limit_bytes=32 * 1024 * 1024,
        ),
    )(
        x, bias,
        p["wqkv"], p["bqkv"], p["wo"], p["bo"],
        p["ln1_g"], p["ln1_b"], p["w1"], p["b1"], p["w2"], p["b2"],
        p["ln2_g"], p["ln2_b"],
    )


# ---------------------------------- main -------------------------------------


if __name__ == "__main__":
    # Small, module-consistent shapes; d_model = 128 keeps activations lane-dense.
    vocab_size = 100
    d_model = 128
    num_layers = 2
    heads = 4
    forward_expansion = 4
    max_len = 32
    B, S = 4, 16

    key = jax.random.PRNGKey(0)
    pkey, tkey = jax.random.split(key)
    params = init_params(pkey, vocab_size, d_model, num_layers, forward_expansion, max_len)

    tokens = jax.random.randint(tkey, (B, S), 0, vocab_size, dtype=jnp.int32)
    mask = jnp.ones((B, S, S), dtype=jnp.float32)     # 1 = attend, 0 = masked
    mask = mask.at[1, :, S - 3:].set(0.0)             # pad-style masks (no fully-masked row)
    mask = mask.at[3, :, S - 5:].set(0.0)

    out = encoder_forward(tokens, mask, params, heads=heads)
    out = jax.block_until_ready(out)
    assert out.shape == (B, S, d_model), out.shape
    assert bool(jnp.all(jnp.isfinite(out)))
    print("KERNEL_OK")
</pallas_src>

<mosaic_0001>
module attributes {stable_mosaic.version = 11 : i64} {
  func.func @encoder_kernel(%arg0: i32, %arg1: memref<2x16x128xf32, #tpu.memory_space<vmem>>, %arg2: memref<2x16x16xf32, #tpu.memory_space<vmem>>, %arg3: memref<2x128x384xbf16, #tpu.memory_space<vmem>>, %arg4: memref<2x1x384xf32, #tpu.memory_space<vmem>>, %arg5: memref<2x128x128xbf16, #tpu.memory_space<vmem>>, %arg6: memref<2x1x128xf32, #tpu.memory_space<vmem>>, %arg7: memref<2x1x128xf32, #tpu.memory_space<vmem>>, %arg8: memref<2x1x128xf32, #tpu.memory_space<vmem>>, %arg9: memref<2x128x512xbf16, #tpu.memory_space<vmem>>, %arg10: memref<2x1x512xf32, #tpu.memory_space<vmem>>, %arg11: memref<2x512x128xbf16, #tpu.memory_space<vmem>>, %arg12: memref<2x1x128xf32, #tpu.memory_space<vmem>>, %arg13: memref<2x1x128xf32, #tpu.memory_space<vmem>>, %arg14: memref<2x1x128xf32, #tpu.memory_space<vmem>>, %arg15: memref<2x16x128xf32, #tpu.memory_space<vmem>>) attributes {dimension_semantics = [#tpu.dimension_semantics<parallel>], iteration_bounds = array<i64: 2>, scalar_prefetch = 0 : i64, scratch_operands = 0 : i64, tpu.core_type = #tpu.core_type<tc>, window_params = [{transform_indices = @transform_0, window_bounds = array<i64: 2, 16, 128>}, {transform_indices = @transform_1, window_bounds = array<i64: 2, 16, 16>}, {pipeline_mode = #tpu.pipeline_mode<synchronous>, transform_indices = @transform_2, window_bounds = array<i64: 2, 128, 384>}, {pipeline_mode = #tpu.pipeline_mode<synchronous>, transform_indices = @transform_3, window_bounds = array<i64: 2, 1, 384>}, {pipeline_mode = #tpu.pipeline_mode<synchronous>, transform_indices = @transform_4, window_bounds = array<i64: 2, 128, 128>}, {pipeline_mode = #tpu.pipeline_mode<synchronous>, transform_indices = @transform_5, window_bounds = array<i64: 2, 1, 128>}, {pipeline_mode = #tpu.pipeline_mode<synchronous>, transform_indices = @transform_6, window_bounds = array<i64: 2, 1, 128>}, {pipeline_mode = #tpu.pipeline_mode<synchronous>, transform_indices = @transform_7, window_bounds = array<i64: 2, 1, 128>}, {pipeline_mode = #tpu.pipeline_mode<synchronous>, transform_indices = @transform_8, window_bounds = array<i64: 2, 128, 512>}, {pipeline_mode = #tpu.pipeline_mode<synchronous>, transform_indices = @transform_9, window_bounds = array<i64: 2, 1, 512>}, {pipeline_mode = #tpu.pipeline_mode<synchronous>, transform_indices = @transform_10, window_bounds = array<i64: 2, 512, 128>}, {pipeline_mode = #tpu.pipeline_mode<synchronous>, transform_indices = @transform_11, window_bounds = array<i64: 2, 1, 128>}, {pipeline_mode = #tpu.pipeline_mode<synchronous>, transform_indices = @transform_12, window_bounds = array<i64: 2, 1, 128>}, {pipeline_mode = #tpu.pipeline_mode<synchronous>, transform_indices = @transform_13, window_bounds = array<i64: 2, 1, 128>}, {transform_indices = @transform_14, window_bounds = array<i64: 2, 16, 128>}]} {
    %c0 = arith.constant 0 : index
    %c0_0 = arith.constant 0 : index
    %c0_1 = arith.constant 0 : index
    %0 = vector.load %arg1[%c0, %c0_0, %c0_1] : memref<2x16x128xf32, #tpu.memory_space<vmem>>, vector<2x16x128xf32>
    %1 = vector.shape_cast %0 : vector<2x16x128xf32> to vector<32x128xf32>
    %c0_2 = arith.constant 0 : index
    %c0_3 = arith.constant 0 : index
    %c0_4 = arith.constant 0 : index
    %2 = vector.load %arg2[%c0_2, %c0_3, %c0_4] : memref<2x16x16xf32, #tpu.memory_space<vmem>>, vector<2x16x16xf32>
    %3 = arith.truncf %1 : vector<32x128xf32> to vector<32x128xbf16>
    %c0_5 = arith.constant 0 : index
    %c0_6 = arith.constant 0 : index
    %c0_7 = arith.constant 0 : index
    %4 = vector.load %arg3[%c0_5, %c0_6, %c0_7] : memref<2x128x384xbf16, #tpu.memory_space<vmem>>, vector<1x128x384xbf16>
    %5 = vector.shape_cast %4 : vector<1x128x384xbf16> to vector<128x384xbf16>
    %cst = arith.constant dense<0.000000e+00> : vector<32x384xf32>
    %6 = tpu.matmul %3, %5, %cst {dimension_numbers = #tpu.dot_dimension_numbers<[1], [0], [0], [1], [0, 0, 1, 1], [], []>} : vector<32x128xbf16>, vector<128x384xbf16>, vector<32x384xf32> -> vector<32x384xf32>
    %c0_8 = arith.constant 0 : index
    %c0_9 = arith.constant 0 : index
    %c0_10 = arith.constant 0 : index
    %7 = vector.load %arg4[%c0_8, %c0_9, %c0_10] : memref<2x1x384xf32, #tpu.memory_space<vmem>>, vector<1x1x384xf32>
    %8 = vector.shape_cast %7 : vector<1x1x384xf32> to vector<1x384xf32>
    %9 = vector.broadcast %8 : vector<1x384xf32> to vector<32x384xf32>
    %10 = arith.addf %6, %9 : vector<32x384xf32>
    %11 = vector.extract_strided_slice %10 {offsets = [0, 0], sizes = [32, 32], strides = [1, 1]} : vector<32x384xf32> to vector<32x32xf32>
    %12 = vector.shape_cast %11 : vector<32x32xf32> to vector<2x16x32xf32>
    %13 = vector.extract_strided_slice %10 {offsets = [0, 128], sizes = [32, 32], strides = [1, 1]} : vector<32x384xf32> to vector<32x32xf32>
    %14 = vector.shape_cast %13 : vector<32x32xf32> to vector<2x16x32xf32>
    %15 = vector.extract_strided_slice %10 {offsets = [0, 256], sizes = [32, 32], strides = [1, 1]} : vector<32x384xf32> to vector<32x32xf32>
    %16 = vector.shape_cast %15 : vector<32x32xf32> to vector<2x16x32xf32>
    %17 = arith.truncf %12 : vector<2x16x32xf32> to vector<2x16x32xbf16>
    %18 = arith.truncf %14 : vector<2x16x32xf32> to vector<2x16x32xbf16>
    "tpu.trace_start"() <{level = 10 : i32, message = "bqf,bkf->bqk"}> : () -> ()
    %cst_11 = arith.constant dense<0.000000e+00> : vector<2x16x16xf32>
    %19 = tpu.matmul %17, %18, %cst_11 {dimension_numbers = #tpu.dot_dimension_numbers<[2], [2], [1], [1], [0, 0, 0, 1, 1, 1], [0], [0]>} : vector<2x16x32xbf16>, vector<2x16x32xbf16>, vector<2x16x16xf32> -> vector<2x16x16xf32>
    "tpu.trace_stop"() : () -> ()
    %20 = arith.addf %19, %2 : vector<2x16x16xf32>
    %cst_12 = arith.constant dense<0xFF800000> : vector<2x16xf32>
    %21 = vector.multi_reduction <maximumf>, %20, %cst_12 [2] : vector<2x16x16xf32> to vector<2x16xf32>
    %22 = vector.shape_cast %21 : vector<2x16xf32> to vector<2x16x1xf32>
    %23 = vector.broadcast %22 : vector<2x16x1xf32> to vector<2x16x16xf32>
    %24 = arith.subf %20, %23 : vector<2x16x16xf32>
    %25 = math.exp %24 : vector<2x16x16xf32>
    %cst_13 = arith.constant dense<0.000000e+00> : vector<2x16xf32>
    %26 = vector.multi_reduction <add>, %25, %cst_13 [2] : vector<2x16x16xf32> to vector<2x16xf32>
    %27 = vector.shape_cast %26 : vector<2x16xf32> to vector<2x16x1xf32>
    %28 = tpu.reciprocal %27 {approx = true} : vector<2x16x1xf32> -> vector<2x16x1xf32>
    %29 = vector.broadcast %28 : vector<2x16x1xf32> to vector<2x16x16xf32>
    %30 = arith.mulf %25, %29 : vector<2x16x16xf32>
    %31 = arith.truncf %30 : vector<2x16x16xf32> to vector<2x16x16xbf16>
    %32 = arith.truncf %16 : vector<2x16x32xf32> to vector<2x16x32xbf16>
    "tpu.trace_start"() <{level = 10 : i32, message = "bqk,bkf->bqf"}> : () -> ()
    %cst_14 = arith.constant dense<0.000000e+00> : vector<2x16x32xf32>
    %33 = tpu.matmul %31, %32, %cst_14 {dimension_numbers = #tpu.dot_dimension_numbers<[2], [1], [1], [2], [0, 0, 0, 1, 1, 2], [0], [0]>} : vector<2x16x16xbf16>, vector<2x16x32xbf16>, vector<2x16x32xf32> -> vector<2x16x32xf32>
    "tpu.trace_stop"() : () -> ()
    %34 = vector.shape_cast %33 : vector<2x16x32xf32> to vector<32x32xf32>
    %35 = vector.extract_strided_slice %10 {offsets = [0, 32], sizes = [32, 32], strides = [1, 1]} : vector<32x384xf32> to vector<32x32xf32>
    %36 = vector.shape_cast %35 : vector<32x32xf32> to vector<2x16x32xf32>
    %37 = vector.extract_strided_slice %10 {offsets = [0, 160], sizes = [32, 32], strides = [1, 1]} : vector<32x384xf32> to vector<32x32xf32>
    %38 = vector.shape_cast %37 : vector<32x32xf32> to vector<2x16x32xf32>
    %39 = vector.extract_strided_slice %10 {offsets = [0, 288], sizes = [32, 32], strides = [1, 1]} : vector<32x384xf32> to vector<32x32xf32>
    %40 = vector.shape_cast %39 : vector<32x32xf32> to vector<2x16x32xf32>
    %41 = arith.truncf %36 : vector<2x16x32xf32> to vector<2x16x32xbf16>
    %42 = arith.truncf %38 : vector<2x16x32xf32> to vector<2x16x32xbf16>
    "tpu.trace_start"() <{level = 10 : i32, message = "bqf,bkf->bqk"}> : () -> ()
    %cst_15 = arith.constant dense<0.000000e+00> : vector<2x16x16xf32>
    %43 = tpu.matmul %41, %42, %cst_15 {dimension_numbers = #tpu.dot_dimension_numbers<[2], [2], [1], [1], [0, 0, 0, 1, 1, 1], [0], [0]>} : vector<2x16x32xbf16>, vector<2x16x32xbf16>, vector<2x16x16xf32> -> vector<2x16x16xf32>
    "tpu.trace_stop"() : () -> ()
    %44 = arith.addf %43, %2 : vector<2x16x16xf32>
    %cst_16 = arith.constant dense<0xFF800000> : vector<2x16xf32>
    %45 = vector.multi_reduction <maximumf>, %44, %cst_16 [2] : vector<2x16x16xf32> to vector<2x16xf32>
    %46 = vector.shape_cast %45 : vector<2x16xf32> to vector<2x16x1xf32>
    %47 = vector.broadcast %46 : vector<2x16x1xf32> to vector<2x16x16xf32>
    %48 = arith.subf %44, %47 : vector<2x16x16xf32>
    %49 = math.exp %48 : vector<2x16x16xf32>
    %cst_17 = arith.constant dense<0.000000e+00> : vector<2x16xf32>
    %50 = vector.multi_reduction <add>, %49, %cst_17 [2] : vector<2x16x16xf32> to vector<2x16xf32>
    %51 = vector.shape_cast %50 : vector<2x16xf32> to vector<2x16x1xf32>
    %52 = tpu.reciprocal %51 {approx = true} : vector<2x16x1xf32> -> vector<2x16x1xf32>
    %53 = vector.broadcast %52 : vector<2x16x1xf32> to vector<2x16x16xf32>
    %54 = arith.mulf %49, %53 : vector<2x16x16xf32>
    %55 = arith.truncf %54 : vector<2x16x16xf32> to vector<2x16x16xbf16>
    %56 = arith.truncf %40 : vector<2x16x32xf32> to vector<2x16x32xbf16>
    "tpu.trace_start"() <{level = 10 : i32, message = "bqk,bkf->bqf"}> : () -> ()
    %cst_18 = arith.constant dense<0.000000e+00> : vector<2x16x32xf32>
    %57 = tpu.matmul %55, %56, %cst_18 {dimension_numbers = #tpu.dot_dimension_numbers<[2], [1], [1], [2], [0, 0, 0, 1, 1, 2], [0], [0]>} : vector<2x16x16xbf16>, vector<2x16x32xbf16>, vector<2x16x32xf32> -> vector<2x16x32xf32>
    "tpu.trace_stop"() : () -> ()
    %58 = vector.shape_cast %57 : vector<2x16x32xf32> to vector<32x32xf32>
    %59 = vector.extract_strided_slice %10 {offsets = [0, 64], sizes = [32, 32], strides = [1, 1]} : vector<32x384xf32> to vector<32x32xf32>
    %60 = vector.shape_cast %59 : vector<32x32xf32> to vector<2x16x32xf32>
    %61 = vector.extract_strided_slice %10 {offsets = [0, 192], sizes = [32, 32], strides = [1, 1]} : vector<32x384xf32> to vector<32x32xf32>
    %62 = vector.shape_cast %61 : vector<32x32xf32> to vector<2x16x32xf32>
    %63 = vector.extract_strided_slice %10 {offsets = [0, 320], sizes = [32, 32], strides = [1, 1]} : vector<32x384xf32> to vector<32x32xf32>
    %64 = vector.shape_cast %63 : vector<32x32xf32> to vector<2x16x32xf32>
    %65 = arith.truncf %60 : vector<2x16x32xf32> to vector<2x16x32xbf16>
    %66 = arith.truncf %62 : vector<2x16x32xf32> to vector<2x16x32xbf16>
    "tpu.trace_start"() <{level = 10 : i32, message = "bqf,bkf->bqk"}> : () -> ()
    %cst_19 = arith.constant dense<0.000000e+00> : vector<2x16x16xf32>
    %67 = tpu.matmul %65, %66, %cst_19 {dimension_numbers = #tpu.dot_dimension_numbers<[2], [2], [1], [1], [0, 0, 0, 1, 1, 1], [0], [0]>} : vector<2x16x32xbf16>, vector<2x16x32xbf16>, vector<2x16x16xf32> -> vector<2x16x16xf32>
    "tpu.trace_stop"() : () -> ()
    %68 = arith.addf %67, %2 : vector<2x16x16xf32>
    %cst_20 = arith.constant dense<0xFF800000> : vector<2x16xf32>
    %69 = vector.multi_reduction <maximumf>, %68, %cst_20 [2] : vector<2x16x16xf32> to vector<2x16xf32>
    %70 = vector.shape_cast %69 : vector<2x16xf32> to vector<2x16x1xf32>
    %71 = vector.broadcast %70 : vector<2x16x1xf32> to vector<2x16x16xf32>
    %72 = arith.subf %68, %71 : vector<2x16x16xf32>
    %73 = math.exp %72 : vector<2x16x16xf32>
    %cst_21 = arith.constant dense<0.000000e+00> : vector<2x16xf32>
    %74 = vector.multi_reduction <add>, %73, %cst_21 [2] : vector<2x16x16xf32> to vector<2x16xf32>
    %75 = vector.shape_cast %74 : vector<2x16xf32> to vector<2x16x1xf32>
    %76 = tpu.reciprocal %75 {approx = true} : vector<2x16x1xf32> -> vector<2x16x1xf32>
    %77 = vector.broadcast %76 : vector<2x16x1xf32> to vector<2x16x16xf32>
    %78 = arith.mulf %73, %77 : vector<2x16x16xf32>
    %79 = arith.truncf %78 : vector<2x16x16xf32> to vector<2x16x16xbf16>
    %80 = arith.truncf %64 : vector<2x16x32xf32> to vector<2x16x32xbf16>
    "tpu.trace_start"() <{level = 10 : i32, message = "bqk,bkf->bqf"}> : () -> ()
    %cst_22 = arith.constant dense<0.000000e+00> : vector<2x16x32xf32>
    %81 = tpu.matmul %79, %80, %cst_22 {dimension_numbers = #tpu.dot_dimension_numbers<[2], [1], [1], [2], [0, 0, 0, 1, 1, 2], [0], [0]>} : vector<2x16x16xbf16>, vector<2x16x32xbf16>, vector<2x16x32xf32> -> vector<2x16x32xf32>
    "tpu.trace_stop"() : () -> ()
    %82 = vector.shape_cast %81 : vector<2x16x32xf32> to vector<32x32xf32>
    %83 = vector.extract_strided_slice %10 {offsets = [0, 96], sizes = [32, 32], strides = [1, 1]} : vector<32x384xf32> to vector<32x32xf32>
    %84 = vector.shape_cast %83 : vector<32x32xf32> to vector<2x16x32xf32>
    %85 = vector.extract_strided_slice %10 {offsets = [0, 224], sizes = [32, 32], strides = [1, 1]} : vector<32x384xf32> to vector<32x32xf32>
    %86 = vector.shape_cast %85 : vector<32x32xf32> to vector<2x16x32xf32>
    %87 = vector.extract_strided_slice %10 {offsets = [0, 352], sizes = [32, 32], strides = [1, 1]} : vector<32x384xf32> to vector<32x32xf32>
    %88 = vector.shape_cast %87 : vector<32x32xf32> to vector<2x16x32xf32>
    %89 = arith.truncf %84 : vector<2x16x32xf32> to vector<2x16x32xbf16>
    %90 = arith.truncf %86 : vector<2x16x32xf32> to vector<2x16x32xbf16>
    "tpu.trace_start"() <{level = 10 : i32, message = "bqf,bkf->bqk"}> : () -> ()
    %cst_23 = arith.constant dense<0.000000e+00> : vector<2x16x16xf32>
    %91 = tpu.matmul %89, %90, %cst_23 {dimension_numbers = #tpu.dot_dimension_numbers<[2], [2], [1], [1], [0, 0, 0, 1, 1, 1], [0], [0]>} : vector<2x16x32xbf16>, vector<2x16x32xbf16>, vector<2x16x16xf32> -> vector<2x16x16xf32>
    "tpu.trace_stop"() : () -> ()
    %92 = arith.addf %91, %2 : vector<2x16x16xf32>
    %cst_24 = arith.constant dense<0xFF800000> : vector<2x16xf32>
    %93 = vector.multi_reduction <maximumf>, %92, %cst_24 [2] : vector<2x16x16xf32> to vector<2x16xf32>
    %94 = vector.shape_cast %93 : vector<2x16xf32> to vector<2x16x1xf32>
    %95 = vector.broadcast %94 : vector<2x16x1xf32> to vector<2x16x16xf32>
    %96 = arith.subf %92, %95 : vector<2x16x16xf32>
    %97 = math.exp %96 : vector<2x16x16xf32>
    %cst_25 = arith.constant dense<0.000000e+00> : vector<2x16xf32>
    %98 = vector.multi_reduction <add>, %97, %cst_25 [2] : vector<2x16x16xf32> to vector<2x16xf32>
    %99 = vector.shape_cast %98 : vector<2x16xf32> to vector<2x16x1xf32>
    %100 = tpu.reciprocal %99 {approx = true} : vector<2x16x1xf32> -> vector<2x16x1xf32>
    %101 = vector.broadcast %100 : vector<2x16x1xf32> to vector<2x16x16xf32>
    %102 = arith.mulf %97, %101 : vector<2x16x16xf32>
    %103 = arith.truncf %102 : vector<2x16x16xf32> to vector<2x16x16xbf16>
    %104 = arith.truncf %88 : vector<2x16x32xf32> to vector<2x16x32xbf16>
    "tpu.trace_start"() <{level = 10 : i32, message = "bqk,bkf->bqf"}> : () -> ()
    %cst_26 = arith.constant dense<0.000000e+00> : vector<2x16x32xf32>
    %105 = tpu.matmul %103, %104, %cst_26 {dimension_numbers = #tpu.dot_dimension_numbers<[2], [1], [1], [2], [0, 0, 0, 1, 1, 2], [0], [0]>} : vector<2x16x16xbf16>, vector<2x16x32xbf16>, vector<2x16x32xf32> -> vector<2x16x32xf32>
    "tpu.trace_stop"() : () -> ()
    %106 = vector.shape_cast %105 : vector<2x16x32xf32> to vector<32x32xf32>
    %107 = tpu.concatenate %34, %58, %82, %106 in 1 : vector<32x32xf32>, vector<32x32xf32>, vector<32x32xf32>, vector<32x32xf32> -> vector<32x128xf32>
    %108 = arith.truncf %107 : vector<32x128xf32> to vector<32x128xbf16>
    %c0_27 = arith.constant 0 : index
    %c0_28 = arith.constant 0 : index
    %c0_29 = arith.constant 0 : index
    %109 = vector.load %arg5[%c0_27, %c0_28, %c0_29] : memref<2x128x128xbf16, #tpu.memory_space<vmem>>, vector<1x128x128xbf16>
    %110 = vector.shape_cast %109 : vector<1x128x128xbf16> to vector<128x128xbf16>
    %cst_30 = arith.constant dense<0.000000e+00> : vector<32x128xf32>
    %111 = tpu.matmul %108, %110, %cst_30 {dimension_numbers = #tpu.dot_dimension_numbers<[1], [0], [0], [1], [0, 0, 1, 1], [], []>} : vector<32x128xbf16>, vector<128x128xbf16>, vector<32x128xf32> -> vector<32x128xf32>
    %c0_31 = arith.constant 0 : index
    %c0_32 = arith.constant 0 : index
    %c0_33 = arith.constant 0 : index
    %112 = vector.load %arg6[%c0_31, %c0_32, %c0_33] : memref<2x1x128xf32, #tpu.memory_space<vmem>>, vector<1x1x128xf32>
    %113 = vector.shape_cast %112 : vector<1x1x128xf32> to vector<1x128xf32>
    %114 = vector.broadcast %113 : vector<1x128xf32> to vector<32x128xf32>
    %115 = arith.addf %111, %114 : vector<32x128xf32>
    %116 = arith.addf %1, %115 : vector<32x128xf32>
    %c0_34 = arith.constant 0 : index
    %c0_35 = arith.constant 0 : index
    %c0_36 = arith.constant 0 : index
    %117 = vector.load %arg7[%c0_34, %c0_35, %c0_36] : memref<2x1x128xf32, #tpu.memory_space<vmem>>, vector<1x1x128xf32>
    %118 = vector.shape_cast %117 : vector<1x1x128xf32> to vector<1x128xf32>
    %c0_37 = arith.constant 0 : index
    %c0_38 = arith.constant 0 : index
    %c0_39 = arith.constant 0 : index
    %119 = vector.load %arg8[%c0_37, %c0_38, %c0_39] : memref<2x1x128xf32, #tpu.memory_space<vmem>>, vector<1x1x128xf32>
    %120 = vector.shape_cast %119 : vector<1x1x128xf32> to vector<1x128xf32>
    %cst_40 = arith.constant dense<0.000000e+00> : vector<32xf32>
    %121 = vector.multi_reduction <add>, %116, %cst_40 [1] : vector<32x128xf32> to vector<32xf32>
    %122 = vector.shape_cast %121 : vector<32xf32> to vector<32x1xf32>
    %cst_41 = arith.constant 1.280000e+02 : f32
    %123 = vector.broadcast %cst_41 : f32 to vector<32x1xf32>
    %124 = arith.divf %122, %123 : vector<32x1xf32>
    %125 = vector.broadcast %124 : vector<32x1xf32> to vector<32x128xf32>
    %126 = arith.subf %116, %125 : vector<32x128xf32>
    %127 = arith.mulf %126, %126 : vector<32x128xf32>
    %cst_42 = arith.constant dense<0.000000e+00> : vector<32xf32>
    %128 = vector.multi_reduction <add>, %127, %cst_42 [1] : vector<32x128xf32> to vector<32xf32>
    %129 = vector.shape_cast %128 : vector<32xf32> to vector<32x1xf32>
    %cst_43 = arith.constant 1.280000e+02 : f32
    %130 = vector.broadcast %cst_43 : f32 to vector<32x1xf32>
    %131 = arith.divf %129, %130 : vector<32x1xf32>
    %132 = vector.broadcast %124 : vector<32x1xf32> to vector<32x128xf32>
    %133 = arith.subf %116, %132 : vector<32x128xf32>
    %cst_44 = arith.constant 9.99999974E-6 : f32
    %134 = vector.broadcast %cst_44 : f32 to vector<32x1xf32>
    %135 = arith.addf %131, %134 : vector<32x1xf32>
    %136 = math.rsqrt %135 : vector<32x1xf32>
    %137 = vector.broadcast %136 : vector<32x1xf32> to vector<32x128xf32>
    %138 = arith.mulf %133, %137 : vector<32x128xf32>
    %139 = vector.broadcast %118 : vector<1x128xf32> to vector<32x128xf32>
    %140 = arith.mulf %138, %139 : vector<32x128xf32>
    %141 = vector.broadcast %120 : vector<1x128xf32> to vector<32x128xf32>
    %142 = arith.addf %140, %141 : vector<32x128xf32>
    %143 = arith.truncf %142 : vector<32x128xf32> to vector<32x128xbf16>
    %c0_45 = arith.constant 0 : index
    %c0_46 = arith.constant 0 : index
    %c0_47 = arith.constant 0 : index
    %144 = vector.load %arg9[%c0_45, %c0_46, %c0_47] : memref<2x128x512xbf16, #tpu.memory_space<vmem>>, vector<1x128x512xbf16>
    %145 = vector.shape_cast %144 : vector<1x128x512xbf16> to vector<128x512xbf16>
    %cst_48 = arith.constant dense<0.000000e+00> : vector<32x512xf32>
    %146 = tpu.matmul %143, %145, %cst_48 {dimension_numbers = #tpu.dot_dimension_numbers<[1], [0], [0], [1], [0, 0, 1, 1], [], []>} : vector<32x128xbf16>, vector<128x512xbf16>, vector<32x512xf32> -> vector<32x512xf32>
    %c0_49 = arith.constant 0 : index
    %c0_50 = arith.constant 0 : index
    %c0_51 = arith.constant 0 : index
    %147 = vector.load %arg10[%c0_49, %c0_50, %c0_51] : memref<2x1x512xf32, #tpu.memory_space<vmem>>, vector<1x1x512xf32>
    %148 = vector.shape_cast %147 : vector<1x1x512xf32> to vector<1x512xf32>
    %149 = vector.broadcast %148 : vector<1x512xf32> to vector<32x512xf32>
    %150 = arith.addf %146, %149 : vector<32x512xf32>
    %cst_52 = arith.constant 0.000000e+00 : f32
    %151 = vector.broadcast %cst_52 : f32 to vector<32x512xf32>
    %152 = arith.maximumf %150, %151 : vector<32x512xf32>
    %153 = arith.truncf %152 : vector<32x512xf32> to vector<32x512xbf16>
    %c0_53 = arith.constant 0 : index
    %c0_54 = arith.constant 0 : index
    %c0_55 = arith.constant 0 : index
    %154 = vector.load %arg11[%c0_53, %c0_54, %c0_55] : memref<2x512x128xbf16, #tpu.memory_space<vmem>>, vector<1x512x128xbf16>
    %155 = vector.shape_cast %154 : vector<1x512x128xbf16> to vector<512x128xbf16>
    %cst_56 = arith.constant dense<0.000000e+00> : vector<32x128xf32>
    %156 = tpu.matmul %153, %155, %cst_56 {dimension_numbers = #tpu.dot_dimension_numbers<[1], [0], [0], [1], [0, 0, 1, 1], [], []>} : vector<32x512xbf16>, vector<512x128xbf16>, vector<32x128xf32> -> vector<32x128xf32>
    %c0_57 = arith.constant 0 : index
    %c0_58 = arith.constant 0 : index
    %c0_59 = arith.constant 0 : index
    %157 = vector.load %arg12[%c0_57, %c0_58, %c0_59] : memref<2x1x128xf32, #tpu.memory_space<vmem>>, vector<1x1x128xf32>
    %158 = vector.shape_cast %157 : vector<1x1x128xf32> to vector<1x128xf32>
    %159 = vector.broadcast %158 : vector<1x128xf32> to vector<32x128xf32>
    %160 = arith.addf %156, %159 : vector<32x128xf32>
    %161 = arith.addf %142, %160 : vector<32x128xf32>
    %c0_60 = arith.constant 0 : index
    %c0_61 = arith.constant 0 : index
    %c0_62 = arith.constant 0 : index
    %162 = vector.load %arg13[%c0_60, %c0_61, %c0_62] : memref<2x1x128xf32, #tpu.memory_space<vmem>>, vector<1x1x128xf32>
    %163 = vector.shape_cast %162 : vector<1x1x128xf32> to vector<1x128xf32>
    %c0_63 = arith.constant 0 : index
    %c0_64 = arith.constant 0 : index
    %c0_65 = arith.constant 0 : index
    %164 = vector.load %arg14[%c0_63, %c0_64, %c0_65] : memref<2x1x128xf32, #tpu.memory_space<vmem>>, vector<1x1x128xf32>
    %165 = vector.shape_cast %164 : vector<1x1x128xf32> to vector<1x128xf32>
    %cst_66 = arith.constant dense<0.000000e+00> : vector<32xf32>
    %166 = vector.multi_reduction <add>, %161, %cst_66 [1] : vector<32x128xf32> to vector<32xf32>
    %167 = vector.shape_cast %166 : vector<32xf32> to vector<32x1xf32>
    %cst_67 = arith.constant 1.280000e+02 : f32
    %168 = vector.broadcast %cst_67 : f32 to vector<32x1xf32>
    %169 = arith.divf %167, %168 : vector<32x1xf32>
    %170 = vector.broadcast %169 : vector<32x1xf32> to vector<32x128xf32>
    %171 = arith.subf %161, %170 : vector<32x128xf32>
    %172 = arith.mulf %171, %171 : vector<32x128xf32>
    %cst_68 = arith.constant dense<0.000000e+00> : vector<32xf32>
    %173 = vector.multi_reduction <add>, %172, %cst_68 [1] : vector<32x128xf32> to vector<32xf32>
    %174 = vector.shape_cast %173 : vector<32xf32> to vector<32x1xf32>
    %cst_69 = arith.constant 1.280000e+02 : f32
    %175 = vector.broadcast %cst_69 : f32 to vector<32x1xf32>
    %176 = arith.divf %174, %175 : vector<32x1xf32>
    %177 = vector.broadcast %169 : vector<32x1xf32> to vector<32x128xf32>
    %178 = arith.subf %161, %177 : vector<32x128xf32>
    %cst_70 = arith.constant 9.99999974E-6 : f32
    %179 = vector.broadcast %cst_70 : f32 to vector<32x1xf32>
    %180 = arith.addf %176, %179 : vector<32x1xf32>
    %181 = math.rsqrt %180 : vector<32x1xf32>
    %182 = vector.broadcast %181 : vector<32x1xf32> to vector<32x128xf32>
    %183 = arith.mulf %178, %182 : vector<32x128xf32>
    %184 = vector.broadcast %163 : vector<1x128xf32> to vector<32x128xf32>
    %185 = arith.mulf %183, %184 : vector<32x128xf32>
    %186 = vector.broadcast %165 : vector<1x128xf32> to vector<32x128xf32>
    %187 = arith.addf %185, %186 : vector<32x128xf32>
    %188 = arith.truncf %187 : vector<32x128xf32> to vector<32x128xbf16>
    %c1 = arith.constant 1 : index
    %c0_71 = arith.constant 0 : index
    %c0_72 = arith.constant 0 : index
    %189 = vector.load %arg3[%c1, %c0_71, %c0_72] : memref<2x128x384xbf16, #tpu.memory_space<vmem>>, vector<1x128x384xbf16>
    %190 = vector.shape_cast %189 : vector<1x128x384xbf16> to vector<128x384xbf16>
    %cst_73 = arith.constant dense<0.000000e+00> : vector<32x384xf32>
    %191 = tpu.matmul %188, %190, %cst_73 {dimension_numbers = #tpu.dot_dimension_numbers<[1], [0], [0], [1], [0, 0, 1, 1], [], []>} : vector<32x128xbf16>, vector<128x384xbf16>, vector<32x384xf32> -> vector<32x384xf32>
    %c1_74 = arith.constant 1 : index
    %c0_75 = arith.constant 0 : index
    %c0_76 = arith.constant 0 : index
    %192 = vector.load %arg4[%c1_74, %c0_75, %c0_76] : memref<2x1x384xf32, #tpu.memory_space<vmem>>, vector<1x1x384xf32>
    %193 = vector.shape_cast %192 : vector<1x1x384xf32> to vector<1x384xf32>
    %194 = vector.broadcast %193 : vector<1x384xf32> to vector<32x384xf32>
    %195 = arith.addf %191, %194 : vector<32x384xf32>
    %196 = vector.extract_strided_slice %195 {offsets = [0, 0], sizes = [32, 32], strides = [1, 1]} : vector<32x384xf32> to vector<32x32xf32>
    %197 = vector.shape_cast %196 : vector<32x32xf32> to vector<2x16x32xf32>
    %198 = vector.extract_strided_slice %195 {offsets = [0, 128], sizes = [32, 32], strides = [1, 1]} : vector<32x384xf32> to vector<32x32xf32>
    %199 = vector.shape_cast %198 : vector<32x32xf32> to vector<2x16x32xf32>
    %200 = vector.extract_strided_slice %195 {offsets = [0, 256], sizes = [32, 32], strides = [1, 1]} : vector<32x384xf32> to vector<32x32xf32>
    %201 = vector.shape_cast %200 : vector<32x32xf32> to vector<2x16x32xf32>
    %202 = arith.truncf %197 : vector<2x16x32xf32> to vector<2x16x32xbf16>
    %203 = arith.truncf %199 : vector<2x16x32xf32> to vector<2x16x32xbf16>
    "tpu.trace_start"() <{level = 10 : i32, message = "bqf,bkf->bqk"}> : () -> ()
    %cst_77 = arith.constant dense<0.000000e+00> : vector<2x16x16xf32>
    %204 = tpu.matmul %202, %203, %cst_77 {dimension_numbers = #tpu.dot_dimension_numbers<[2], [2], [1], [1], [0, 0, 0, 1, 1, 1], [0], [0]>} : vector<2x16x32xbf16>, vector<2x16x32xbf16>, vector<2x16x16xf32> -> vector<2x16x16xf32>
    "tpu.trace_stop"() : () -> ()
    %205 = arith.addf %204, %2 : vector<2x16x16xf32>
    %cst_78 = arith.constant dense<0xFF800000> : vector<2x16xf32>
    %206 = vector.multi_reduction <maximumf>, %205, %cst_78 [2] : vector<2x16x16xf32> to vector<2x16xf32>
    %207 = vector.shape_cast %206 : vector<2x16xf32> to vector<2x16x1xf32>
    %208 = vector.broadcast %207 : vector<2x16x1xf32> to vector<2x16x16xf32>
    %209 = arith.subf %205, %208 : vector<2x16x16xf32>
    %210 = math.exp %209 : vector<2x16x16xf32>
    %cst_79 = arith.constant dense<0.000000e+00> : vector<2x16xf32>
    %211 = vector.multi_reduction <add>, %210, %cst_79 [2] : vector<2x16x16xf32> to vector<2x16xf32>
    %212 = vector.shape_cast %211 : vector<2x16xf32> to vector<2x16x1xf32>
    %213 = tpu.reciprocal %212 {approx = true} : vector<2x16x1xf32> -> vector<2x16x1xf32>
    %214 = vector.broadcast %213 : vector<2x16x1xf32> to vector<2x16x16xf32>
    %215 = arith.mulf %210, %214 : vector<2x16x16xf32>
    %216 = arith.truncf %215 : vector<2x16x16xf32> to vector<2x16x16xbf16>
    %217 = arith.truncf %201 : vector<2x16x32xf32> to vector<2x16x32xbf16>
    "tpu.trace_start"() <{level = 10 : i32, message = "bqk,bkf->bqf"}> : () -> ()
    %cst_80 = arith.constant dense<0.000000e+00> : vector<2x16x32xf32>
    %218 = tpu.matmul %216, %217, %cst_80 {dimension_numbers = #tpu.dot_dimension_numbers<[2], [1], [1], [2], [0, 0, 0, 1, 1, 2], [0], [0]>} : vector<2x16x16xbf16>, vector<2x16x32xbf16>, vector<2x16x32xf32> -> vector<2x16x32xf32>
    "tpu.trace_stop"() : () -> ()
    %219 = vector.shape_cast %218 : vector<2x16x32xf32> to vector<32x32xf32>
    %220 = vector.extract_strided_slice %195 {offsets = [0, 32], sizes = [32, 32], strides = [1, 1]} : vector<32x384xf32> to vector<32x32xf32>
    %221 = vector.shape_cast %220 : vector<32x32xf32> to vector<2x16x32xf32>
    %222 = vector.extract_strided_slice %195 {offsets = [0, 160], sizes = [32, 32], strides = [1, 1]} : vector<32x384xf32> to vector<32x32xf32>
    %223 = vector.shape_cast %222 : vector<32x32xf32> to vector<2x16x32xf32>
    %224 = vector.extract_strided_slice %195 {offsets = [0, 288], sizes = [32, 32], strides = [1, 1]} : vector<32x384xf32> to vector<32x32xf32>
    %225 = vector.shape_cast %224 : vector<32x32xf32> to vector<2x16x32xf32>
    %226 = arith.truncf %221 : vector<2x16x32xf32> to vector<2x16x32xbf16>
    %227 = arith.truncf %223 : vector<2x16x32xf32> to vector<2x16x32xbf16>
    "tpu.trace_start"() <{level = 10 : i32, message = "bqf,bkf->bqk"}> : () -> ()
    %cst_81 = arith.constant dense<0.000000e+00> : vector<2x16x16xf32>
    %228 = tpu.matmul %226, %227, %cst_81 {dimension_numbers = #tpu.dot_dimension_numbers<[2], [2], [1], [1], [0, 0, 0, 1, 1, 1], [0], [0]>} : vector<2x16x32xbf16>, vector<2x16x32xbf16>, vector<2x16x16xf32> -> vector<2x16x16xf32>
    "tpu.trace_stop"() : () -> ()
    %229 = arith.addf %228, %2 : vector<2x16x16xf32>
    %cst_82 = arith.constant dense<0xFF800000> : vector<2x16xf32>
    %230 = vector.multi_reduction <maximumf>, %229, %cst_82 [2] : vector<2x16x16xf32> to vector<2x16xf32>
    %231 = vector.shape_cast %230 : vector<2x16xf32> to vector<2x16x1xf32>
    %232 = vector.broadcast %231 : vector<2x16x1xf32> to vector<2x16x16xf32>
    %233 = arith.subf %229, %232 : vector<2x16x16xf32>
    %234 = math.exp %233 : vector<2x16x16xf32>
    %cst_83 = arith.constant dense<0.000000e+00> : vector<2x16xf32>
    %235 = vector.multi_reduction <add>, %234, %cst_83 [2] : vector<2x16x16xf32> to vector<2x16xf32>
    %236 = vector.shape_cast %235 : vector<2x16xf32> to vector<2x16x1xf32>
    %237 = tpu.reciprocal %236 {approx = true} : vector<2x16x1xf32> -> vector<2x16x1xf32>
    %238 = vector.broadcast %237 : vector<2x16x1xf32> to vector<2x16x16xf32>
    %239 = arith.mulf %234, %238 : vector<2x16x16xf32>
    %240 = arith.truncf %239 : vector<2x16x16xf32> to vector<2x16x16xbf16>
    %241 = arith.truncf %225 : vector<2x16x32xf32> to vector<2x16x32xbf16>
    "tpu.trace_start"() <{level = 10 : i32, message = "bqk,bkf->bqf"}> : () -> ()
    %cst_84 = arith.constant dense<0.000000e+00> : vector<2x16x32xf32>
    %242 = tpu.matmul %240, %241, %cst_84 {dimension_numbers = #tpu.dot_dimension_numbers<[2], [1], [1], [2], [0, 0, 0, 1, 1, 2], [0], [0]>} : vector<2x16x16xbf16>, vector<2x16x32xbf16>, vector<2x16x32xf32> -> vector<2x16x32xf32>
    "tpu.trace_stop"() : () -> ()
    %243 = vector.shape_cast %242 : vector<2x16x32xf32> to vector<32x32xf32>
    %244 = vector.extract_strided_slice %195 {offsets = [0, 64], sizes = [32, 32], strides = [1, 1]} : vector<32x384xf32> to vector<32x32xf32>
    %245 = vector.shape_cast %244 : vector<32x32xf32> to vector<2x16x32xf32>
    %246 = vector.extract_strided_slice %195 {offsets = [0, 192], sizes = [32, 32], strides = [1, 1]} : vector<32x384xf32> to vector<32x32xf32>
    %247 = vector.shape_cast %246 : vector<32x32xf32> to vector<2x16x32xf32>
    %248 = vector.extract_strided_slice %195 {offsets = [0, 320], sizes = [32, 32], strides = [1, 1]} : vector<32x384xf32> to vector<32x32xf32>
    %249 = vector.shape_cast %248 : vector<32x32xf32> to vector<2x16x32xf32>
    %250 = arith.truncf %245 : vector<2x16x32xf32> to vector<2x16x32xbf16>
    %251 = arith.truncf %247 : vector<2x16x32xf32> to vector<2x16x32xbf16>
    "tpu.trace_start"() <{level = 10 : i32, message = "bqf,bkf->bqk"}> : () -> ()
    %cst_85 = arith.constant dense<0.000000e+00> : vector<2x16x16xf32>
    %252 = tpu.matmul %250, %251, %cst_85 {dimension_numbers = #tpu.dot_dimension_numbers<[2], [2], [1], [1], [0, 0, 0, 1, 1, 1], [0], [0]>} : vector<2x16x32xbf16>, vector<2x16x32xbf16>, vector<2x16x16xf32> -> vector<2x16x16xf32>
    "tpu.trace_stop"() : () -> ()
    %253 = arith.addf %252, %2 : vector<2x16x16xf32>
    %cst_86 = arith.constant dense<0xFF800000> : vector<2x16xf32>
    %254 = vector.multi_reduction <maximumf>, %253, %cst_86 [2] : vector<2x16x16xf32> to vector<2x16xf32>
    %255 = vector.shape_cast %254 : vector<2x16xf32> to vector<2x16x1xf32>
    %256 = vector.broadcast %255 : vector<2x16x1xf32> to vector<2x16x16xf32>
    %257 = arith.subf %253, %256 : vector<2x16x16xf32>
    %258 = math.exp %257 : vector<2x16x16xf32>
    %cst_87 = arith.constant dense<0.000000e+00> : vector<2x16xf32>
    %259 = vector.multi_reduction <add>, %258, %cst_87 [2] : vector<2x16x16xf32> to vector<2x16xf32>
    %260 = vector.shape_cast %259 : vector<2x16xf32> to vector<2x16x1xf32>
    %261 = tpu.reciprocal %260 {approx = true} : vector<2x16x1xf32> -> vector<2x16x1xf32>
    %262 = vector.broadcast %261 : vector<2x16x1xf32> to vector<2x16x16xf32>
    %263 = arith.mulf %258, %262 : vector<2x16x16xf32>
    %264 = arith.truncf %263 : vector<2x16x16xf32> to vector<2x16x16xbf16>
    %265 = arith.truncf %249 : vector<2x16x32xf32> to vector<2x16x32xbf16>
    "tpu.trace_start"() <{level = 10 : i32, message = "bqk,bkf->bqf"}> : () -> ()
    %cst_88 = arith.constant dense<0.000000e+00> : vector<2x16x32xf32>
    %266 = tpu.matmul %264, %265, %cst_88 {dimension_numbers = #tpu.dot_dimension_numbers<[2], [1], [1], [2], [0, 0, 0, 1, 1, 2], [0], [0]>} : vector<2x16x16xbf16>, vector<2x16x32xbf16>, vector<2x16x32xf32> -> vector<2x16x32xf32>
    "tpu.trace_stop"() : () -> ()
    %267 = vector.shape_cast %266 : vector<2x16x32xf32> to vector<32x32xf32>
    %268 = vector.extract_strided_slice %195 {offsets = [0, 96], sizes = [32, 32], strides = [1, 1]} : vector<32x384xf32> to vector<32x32xf32>
    %269 = vector.shape_cast %268 : vector<32x32xf32> to vector<2x16x32xf32>
    %270 = vector.extract_strided_slice %195 {offsets = [0, 224], sizes = [32, 32], strides = [1, 1]} : vector<32x384xf32> to vector<32x32xf32>
    %271 = vector.shape_cast %270 : vector<32x32xf32> to vector<2x16x32xf32>
    %272 = vector.extract_strided_slice %195 {offsets = [0, 352], sizes = [32, 32], strides = [1, 1]} : vector<32x384xf32> to vector<32x32xf32>
    %273 = vector.shape_cast %272 : vector<32x32xf32> to vector<2x16x32xf32>
    %274 = arith.truncf %269 : vector<2x16x32xf32> to vector<2x16x32xbf16>
    %275 = arith.truncf %271 : vector<2x16x32xf32> to vector<2x16x32xbf16>
    "tpu.trace_start"() <{level = 10 : i32, message = "bqf,bkf->bqk"}> : () -> ()
    %cst_89 = arith.constant dense<0.000000e+00> : vector<2x16x16xf32>
    %276 = tpu.matmul %274, %275, %cst_89 {dimension_numbers = #tpu.dot_dimension_numbers<[2], [2], [1], [1], [0, 0, 0, 1, 1, 1], [0], [0]>} : vector<2x16x32xbf16>, vector<2x16x32xbf16>, vector<2x16x16xf32> -> vector<2x16x16xf32>
    "tpu.trace_stop"() : () -> ()
    %277 = arith.addf %276, %2 : vector<2x16x16xf32>
    %cst_90 = arith.constant dense<0xFF800000> : vector<2x16xf32>
    %278 = vector.multi_reduction <maximumf>, %277, %cst_90 [2] : vector<2x16x16xf32> to vector<2x16xf32>
    %279 = vector.shape_cast %278 : vector<2x16xf32> to vector<2x16x1xf32>
    %280 = vector.broadcast %279 : vector<2x16x1xf32> to vector<2x16x16xf32>
    %281 = arith.subf %277, %280 : vector<2x16x16xf32>
    %282 = math.exp %281 : vector<2x16x16xf32>
    %cst_91 = arith.constant dense<0.000000e+00> : vector<2x16xf32>
    %283 = vector.multi_reduction <add>, %282, %cst_91 [2] : vector<2x16x16xf32> to vector<2x16xf32>
    %284 = vector.shape_cast %283 : vector<2x16xf32> to vector<2x16x1xf32>
    %285 = tpu.reciprocal %284 {approx = true} : vector<2x16x1xf32> -> vector<2x16x1xf32>
    %286 = vector.broadcast %285 : vector<2x16x1xf32> to vector<2x16x16xf32>
    %287 = arith.mulf %282, %286 : vector<2x16x16xf32>
    %288 = arith.truncf %287 : vector<2x16x16xf32> to vector<2x16x16xbf16>
    %289 = arith.truncf %273 : vector<2x16x32xf32> to vector<2x16x32xbf16>
    "tpu.trace_start"() <{level = 10 : i32, message = "bqk,bkf->bqf"}> : () -> ()
    %cst_92 = arith.constant dense<0.000000e+00> : vector<2x16x32xf32>
    %290 = tpu.matmul %288, %289, %cst_92 {dimension_numbers = #tpu.dot_dimension_numbers<[2], [1], [1], [2], [0, 0, 0, 1, 1, 2], [0], [0]>} : vector<2x16x16xbf16>, vector<2x16x32xbf16>, vector<2x16x32xf32> -> vector<2x16x32xf32>
    "tpu.trace_stop"() : () -> ()
    %291 = vector.shape_cast %290 : vector<2x16x32xf32> to vector<32x32xf32>
    %292 = tpu.concatenate %219, %243, %267, %291 in 1 : vector<32x32xf32>, vector<32x32xf32>, vector<32x32xf32>, vector<32x32xf32> -> vector<32x128xf32>
    %293 = arith.truncf %292 : vector<32x128xf32> to vector<32x128xbf16>
    %c1_93 = arith.constant 1 : index
    %c0_94 = arith.constant 0 : index
    %c0_95 = arith.constant 0 : index
    %294 = vector.load %arg5[%c1_93, %c0_94, %c0_95] : memref<2x128x128xbf16, #tpu.memory_space<vmem>>, vector<1x128x128xbf16>
    %295 = vector.shape_cast %294 : vector<1x128x128xbf16> to vector<128x128xbf16>
    %cst_96 = arith.constant dense<0.000000e+00> : vector<32x128xf32>
    %296 = tpu.matmul %293, %295, %cst_96 {dimension_numbers = #tpu.dot_dimension_numbers<[1], [0], [0], [1], [0, 0, 1, 1], [], []>} : vector<32x128xbf16>, vector<128x128xbf16>, vector<32x128xf32> -> vector<32x128xf32>
    %c1_97 = arith.constant 1 : index
    %c0_98 = arith.constant 0 : index
    %c0_99 = arith.constant 0 : index
    %297 = vector.load %arg6[%c1_97, %c0_98, %c0_99] : memref<2x1x128xf32, #tpu.memory_space<vmem>>, vector<1x1x128xf32>
    %298 = vector.shape_cast %297 : vector<1x1x128xf32> to vector<1x128xf32>
    %299 = vector.broadcast %298 : vector<1x128xf32> to vector<32x128xf32>
    %300 = arith.addf %296, %299 : vector<32x128xf32>
    %301 = arith.addf %187, %300 : vector<32x128xf32>
    %c1_100 = arith.constant 1 : index
    %c0_101 = arith.constant 0 : index
    %c0_102 = arith.constant 0 : index
    %302 = vector.load %arg7[%c1_100, %c0_101, %c0_102] : memref<2x1x128xf32, #tpu.memory_space<vmem>>, vector<1x1x128xf32>
    %303 = vector.shape_cast %302 : vector<1x1x128xf32> to vector<1x128xf32>
    %c1_103 = arith.constant 1 : index
    %c0_104 = arith.constant 0 : index
    %c0_105 = arith.constant 0 : index
    %304 = vector.load %arg8[%c1_103, %c0_104, %c0_105] : memref<2x1x128xf32, #tpu.memory_space<vmem>>, vector<1x1x128xf32>
    %305 = vector.shape_cast %304 : vector<1x1x128xf32> to vector<1x128xf32>
    %cst_106 = arith.constant dense<0.000000e+00> : vector<32xf32>
    %306 = vector.multi_reduction <add>, %301, %cst_106 [1] : vector<32x128xf32> to vector<32xf32>
    %307 = vector.shape_cast %306 : vector<32xf32> to vector<32x1xf32>
    %cst_107 = arith.constant 1.280000e+02 : f32
    %308 = vector.broadcast %cst_107 : f32 to vector<32x1xf32>
    %309 = arith.divf %307, %308 : vector<32x1xf32>
    %310 = vector.broadcast %309 : vector<32x1xf32> to vector<32x128xf32>
    %311 = arith.subf %301, %310 : vector<32x128xf32>
    %312 = arith.mulf %311, %311 : vector<32x128xf32>
    %cst_108 = arith.constant dense<0.000000e+00> : vector<32xf32>
    %313 = vector.multi_reduction <add>, %312, %cst_108 [1] : vector<32x128xf32> to vector<32xf32>
    %314 = vector.shape_cast %313 : vector<32xf32> to vector<32x1xf32>
    %cst_109 = arith.constant 1.280000e+02 : f32
    %315 = vector.broadcast %cst_109 : f32 to vector<32x1xf32>
    %316 = arith.divf %314, %315 : vector<32x1xf32>
    %317 = vector.broadcast %309 : vector<32x1xf32> to vector<32x128xf32>
    %318 = arith.subf %301, %317 : vector<32x128xf32>
    %cst_110 = arith.constant 9.99999974E-6 : f32
    %319 = vector.broadcast %cst_110 : f32 to vector<32x1xf32>
    %320 = arith.addf %316, %319 : vector<32x1xf32>
    %321 = math.rsqrt %320 : vector<32x1xf32>
    %322 = vector.broadcast %321 : vector<32x1xf32> to vector<32x128xf32>
    %323 = arith.mulf %318, %322 : vector<32x128xf32>
    %324 = vector.broadcast %303 : vector<1x128xf32> to vector<32x128xf32>
    %325 = arith.mulf %323, %324 : vector<32x128xf32>
    %326 = vector.broadcast %305 : vector<1x128xf32> to vector<32x128xf32>
    %327 = arith.addf %325, %326 : vector<32x128xf32>
    %328 = arith.truncf %327 : vector<32x128xf32> to vector<32x128xbf16>
    %c1_111 = arith.constant 1 : index
    %c0_112 = arith.constant 0 : index
    %c0_113 = arith.constant 0 : index
    %329 = vector.load %arg9[%c1_111, %c0_112, %c0_113] : memref<2x128x512xbf16, #tpu.memory_space<vmem>>, vector<1x128x512xbf16>
    %330 = vector.shape_cast %329 : vector<1x128x512xbf16> to vector<128x512xbf16>
    %cst_114 = arith.constant dense<0.000000e+00> : vector<32x512xf32>
    %331 = tpu.matmul %328, %330, %cst_114 {dimension_numbers = #tpu.dot_dimension_numbers<[1], [0], [0], [1], [0, 0, 1, 1], [], []>} : vector<32x128xbf16>, vector<128x512xbf16>, vector<32x512xf32> -> vector<32x512xf32>
    %c1_115 = arith.constant 1 : index
    %c0_116 = arith.constant 0 : index
    %c0_117 = arith.constant 0 : index
    %332 = vector.load %arg10[%c1_115, %c0_116, %c0_117] : memref<2x1x512xf32, #tpu.memory_space<vmem>>, vector<1x1x512xf32>
    %333 = vector.shape_cast %332 : vector<1x1x512xf32> to vector<1x512xf32>
    %334 = vector.broadcast %333 : vector<1x512xf32> to vector<32x512xf32>
    %335 = arith.addf %331, %334 : vector<32x512xf32>
    %cst_118 = arith.constant 0.000000e+00 : f32
    %336 = vector.broadcast %cst_118 : f32 to vector<32x512xf32>
    %337 = arith.maximumf %335, %336 : vector<32x512xf32>
    %338 = arith.truncf %337 : vector<32x512xf32> to vector<32x512xbf16>
    %c1_119 = arith.constant 1 : index
    %c0_120 = arith.constant 0 : index
    %c0_121 = arith.constant 0 : index
    %339 = vector.load %arg11[%c1_119, %c0_120, %c0_121] : memref<2x512x128xbf16, #tpu.memory_space<vmem>>, vector<1x512x128xbf16>
    %340 = vector.shape_cast %339 : vector<1x512x128xbf16> to vector<512x128xbf16>
    %cst_122 = arith.constant dense<0.000000e+00> : vector<32x128xf32>
    %341 = tpu.matmul %338, %340, %cst_122 {dimension_numbers = #tpu.dot_dimension_numbers<[1], [0], [0], [1], [0, 0, 1, 1], [], []>} : vector<32x512xbf16>, vector<512x128xbf16>, vector<32x128xf32> -> vector<32x128xf32>
    %c1_123 = arith.constant 1 : index
    %c0_124 = arith.constant 0 : index
    %c0_125 = arith.constant 0 : index
    %342 = vector.load %arg12[%c1_123, %c0_124, %c0_125] : memref<2x1x128xf32, #tpu.memory_space<vmem>>, vector<1x1x128xf32>
    %343 = vector.shape_cast %342 : vector<1x1x128xf32> to vector<1x128xf32>
    %344 = vector.broadcast %343 : vector<1x128xf32> to vector<32x128xf32>
    %345 = arith.addf %341, %344 : vector<32x128xf32>
    %346 = arith.addf %327, %345 : vector<32x128xf32>
    %c1_126 = arith.constant 1 : index
    %c0_127 = arith.constant 0 : index
    %c0_128 = arith.constant 0 : index
    %347 = vector.load %arg13[%c1_126, %c0_127, %c0_128] : memref<2x1x128xf32, #tpu.memory_space<vmem>>, vector<1x1x128xf32>
    %348 = vector.shape_cast %347 : vector<1x1x128xf32> to vector<1x128xf32>
    %c1_129 = arith.constant 1 : index
    %c0_130 = arith.constant 0 : index
    %c0_131 = arith.constant 0 : index
    %349 = vector.load %arg14[%c1_129, %c0_130, %c0_131] : memref<2x1x128xf32, #tpu.memory_space<vmem>>, vector<1x1x128xf32>
    %350 = vector.shape_cast %349 : vector<1x1x128xf32> to vector<1x128xf32>
    %cst_132 = arith.constant dense<0.000000e+00> : vector<32xf32>
    %351 = vector.multi_reduction <add>, %346, %cst_132 [1] : vector<32x128xf32> to vector<32xf32>
    %352 = vector.shape_cast %351 : vector<32xf32> to vector<32x1xf32>
    %cst_133 = arith.constant 1.280000e+02 : f32
    %353 = vector.broadcast %cst_133 : f32 to vector<32x1xf32>
    %354 = arith.divf %352, %353 : vector<32x1xf32>
    %355 = vector.broadcast %354 : vector<32x1xf32> to vector<32x128xf32>
    %356 = arith.subf %346, %355 : vector<32x128xf32>
    %357 = arith.mulf %356, %356 : vector<32x128xf32>
    %cst_134 = arith.constant dense<0.000000e+00> : vector<32xf32>
    %358 = vector.multi_reduction <add>, %357, %cst_134 [1] : vector<32x128xf32> to vector<32xf32>
    %359 = vector.shape_cast %358 : vector<32xf32> to vector<32x1xf32>
    %cst_135 = arith.constant 1.280000e+02 : f32
    %360 = vector.broadcast %cst_135 : f32 to vector<32x1xf32>
    %361 = arith.divf %359, %360 : vector<32x1xf32>
    %362 = vector.broadcast %354 : vector<32x1xf32> to vector<32x128xf32>
    %363 = arith.subf %346, %362 : vector<32x128xf32>
    %cst_136 = arith.constant 9.99999974E-6 : f32
    %364 = vector.broadcast %cst_136 : f32 to vector<32x1xf32>
    %365 = arith.addf %361, %364 : vector<32x1xf32>
    %366 = math.rsqrt %365 : vector<32x1xf32>
    %367 = vector.broadcast %366 : vector<32x1xf32> to vector<32x128xf32>
    %368 = arith.mulf %363, %367 : vector<32x128xf32>
    %369 = vector.broadcast %348 : vector<1x128xf32> to vector<32x128xf32>
    %370 = arith.mulf %368, %369 : vector<32x128xf32>
    %371 = vector.broadcast %350 : vector<1x128xf32> to vector<32x128xf32>
    %372 = arith.addf %370, %371 : vector<32x128xf32>
    %373 = vector.shape_cast %372 : vector<32x128xf32> to vector<2x16x128xf32>
    %c0_137 = arith.constant 0 : index
    %c0_138 = arith.constant 0 : index
    %c0_139 = arith.constant 0 : index
    %374 = vector.load %arg15[%c0_137, %c0_138, %c0_139] : memref<2x16x128xf32, #tpu.memory_space<vmem>>, vector<2x16x128xf32>
    tpu.vector_store %arg15[%c0_137, %c0_138, %c0_139], %373 {strides = array<i32>} : memref<2x16x128xf32, #tpu.memory_space<vmem>>, vector<2x16x128xf32>,
    return
  }
  func.func @transform_0(%arg0: i32) -> (i32, i32, i32) {
    %c0_i32 = arith.constant 0 : i32
    %c0_i32_0 = arith.constant 0 : i32
    %c0_i32_1 = arith.constant 0 : i32
    return %arg0, %c0_i32, %c0_i32_0 : i32, i32, i32
  }
  func.func @transform_1(%arg0: i32) -> (i32, i32, i32) {
    %c0_i32 = arith.constant 0 : i32
    %c0_i32_0 = arith.constant 0 : i32
    %c0_i32_1 = arith.constant 0 : i32
    return %arg0, %c0_i32, %c0_i32_0 : i32, i32, i32
  }
  func.func @transform_2(%arg0: i32) -> (i32, i32, i32) {
    %c0_i32 = arith.constant 0 : i32
    %c0_i32_0 = arith.constant 0 : i32
    %c0_i32_1 = arith.constant 0 : i32
    %c0_i32_2 = arith.constant 0 : i32
    return %c0_i32, %c0_i32_0, %c0_i32_1 : i32, i32, i32
  }
  func.func @transform_3(%arg0: i32) -> (i32, i32, i32) {
    %c0_i32 = arith.constant 0 : i32
    %c0_i32_0 = arith.constant 0 : i32
    %c0_i32_1 = arith.constant 0 : i32
    %c0_i32_2 = arith.constant 0 : i32
    return %c0_i32, %c0_i32_0, %c0_i32_1 : i32, i32, i32
  }
  func.func @transform_4(%arg0: i32) -> (i32, i32, i32) {
    %c0_i32 = arith.constant 0 : i32
    %c0_i32_0 = arith.constant 0 : i32
    %c0_i32_1 = arith.constant 0 : i32
    %c0_i32_2 = arith.constant 0 : i32
    return %c0_i32, %c0_i32_0, %c0_i32_1 : i32, i32, i32
  }
  func.func @transform_5(%arg0: i32) -> (i32, i32, i32) {
    %c0_i32 = arith.constant 0 : i32
    %c0_i32_0 = arith.constant 0 : i32
    %c0_i32_1 = arith.constant 0 : i32
    %c0_i32_2 = arith.constant 0 : i32
    return %c0_i32, %c0_i32_0, %c0_i32_1 : i32, i32, i32
  }
  func.func @transform_6(%arg0: i32) -> (i32, i32, i32) {
    %c0_i32 = arith.constant 0 : i32
    %c0_i32_0 = arith.constant 0 : i32
    %c0_i32_1 = arith.constant 0 : i32
    %c0_i32_2 = arith.constant 0 : i32
    return %c0_i32, %c0_i32_0, %c0_i32_1 : i32, i32, i32
  }
  func.func @transform_7(%arg0: i32) -> (i32, i32, i32) {
    %c0_i32 = arith.constant 0 : i32
    %c0_i32_0 = arith.constant 0 : i32
    %c0_i32_1 = arith.constant 0 : i32
    %c0_i32_2 = arith.constant 0 : i32
    return %c0_i32, %c0_i32_0, %c0_i32_1 : i32, i32, i32
  }
  func.func @transform_8(%arg0: i32) -> (i32, i32, i32) {
    %c0_i32 = arith.constant 0 : i32
    %c0_i32_0 = arith.constant 0 : i32
    %c0_i32_1 = arith.constant 0 : i32
    %c0_i32_2 = arith.constant 0 : i32
    return %c0_i32, %c0_i32_0, %c0_i32_1 : i32, i32, i32
  }
  func.func @transform_9(%arg0: i32) -> (i32, i32, i32) {
    %c0_i32 = arith.constant 0 : i32
    %c0_i32_0 = arith.constant 0 : i32
    %c0_i32_1 = arith.constant 0 : i32
    %c0_i32_2 = arith.constant 0 : i32
    return %c0_i32, %c0_i32_0, %c0_i32_1 : i32, i32, i32
  }
  func.func @transform_10(%arg0: i32) -> (i32, i32, i32) {
    %c0_i32 = arith.constant 0 : i32
    %c0_i32_0 = arith.constant 0 : i32
    %c0_i32_1 = arith.constant 0 : i32
    %c0_i32_2 = arith.constant 0 : i32
    return %c0_i32, %c0_i32_0, %c0_i32_1 : i32, i32, i32
  }
  func.func @transform_11(%arg0: i32) -> (i32, i32, i32) {
    %c0_i32 = arith.constant 0 : i32
    %c0_i32_0 = arith.constant 0 : i32
    %c0_i32_1 = arith.constant 0 : i32
    %c0_i32_2 = arith.constant 0 : i32
    return %c0_i32, %c0_i32_0, %c0_i32_1 : i32, i32, i32
  }
  func.func @transform_12(%arg0: i32) -> (i32, i32, i32) {
    %c0_i32 = arith.constant 0 : i32
    %c0_i32_0 = arith.constant 0 : i32
    %c0_i32_1 = arith.constant 0 : i32
    %c0_i32_2 = arith.constant 0 : i32
    return %c0_i32, %c0_i32_0, %c0_i32_1 : i32, i32, i32
  }
  func.func @transform_13(%arg0: i32) -> (i32, i32, i32) {
    %c0_i32 = arith.constant 0 : i32
    %c0_i32_0 = arith.constant 0 : i32
    %c0_i32_1 = arith.constant 0 : i32
    %c0_i32_2 = arith.constant 0 : i32
    return %c0_i32, %c0_i32_0, %c0_i32_1 : i32, i32, i32
  }
  func.func @transform_14(%arg0: i32) -> (i32, i32, i32) {
    %c0_i32 = arith.constant 0 : i32
    %c0_i32_0 = arith.constant 0 : i32
    %c0_i32_1 = arith.constant 0 : i32
    return %arg0, %c0_i32, %c0_i32_0 : i32, i32, i32
  }
}

</mosaic_0001>

<bundles_post_ra>
// kernel: tpu_custom_call.1
= control target key start
LH: loop header
LB: loop body
LE: loop exit
PB: predicated region body
PF: predicated region fallthrough
CT: control target
= control target key end

     0   :  { %s8038_s0 = inlined_call_operand.hbm [shape: f32[4,16,128], index: 0, kind: input, shape index: {}]   ;;  %s8039_s1 = inlined_call_operand.hbm [shape: f32[4,16,16], index: 1, kind: input, shape index: {}]   ;;  %s8040_s2 = inlined_call_operand.hbm [shape: bf16[2,128,384], index: 2, kind: input, shape index: {}]   ;;  %s8041_s3 = inlined_call_operand.vmem [shape: f32[2,1,384], index: 3, kind: input, shape index: {}]   ;;  %s8042_s4 = inlined_call_operand.hbm [shape: bf16[2,128,128], index: 4, kind: input, shape index: {}]   ;;  %s8043_s5 = inlined_call_operand.vmem [shape: f32[2,1,128], index: 5, kind: input, shape index: {}]   ;;  %s8044_s6 = inlined_call_operand.vmem [shape: f32[2,1,128], index: 6, kind: input, shape index: {}]   ;;  %s8045_s7 = inlined_call_operand.vmem [shape: f32[2,1,128], index: 7, kind: input, shape index: {}]   ;;  %s8046_s8 = inlined_call_operand.hbm [shape: bf16[2,128,512], index: 8, kind: input, shape index: {}]   ;;  %s8047_s9 = inlined_call_operand.vmem [shape: f32[2,1,512], index: 9, kind: input, shape index: {}]   ;;  %s8048_s10 = inlined_call_operand.hbm [shape: bf16[2,512,128], index: 10, kind: input, shape index: {}]   ;;  %s8049_s11 = inlined_call_operand.vmem [shape: f32[2,1,128], index: 11, kind: input, shape index: {}]   ;;  %s8050_s12 = inlined_call_operand.vmem [shape: f32[2,1,128], index: 12, kind: input, shape index: {}]   ;;  %s8051_s13 = inlined_call_operand.vmem [shape: f32[2,1,128], index: 13, kind: input, shape index: {}]   ;;  %s8052_s14 = inlined_call_operand.hbm [shape: f32[4,16,128], index: 14, kind: output, shape index: {}]  }
   0x1   :  { %8065 = sst [smem:[#allocation22_spill]] %s8038_s0 }
   0x2   :  { %8066 = sst [smem:[#allocation23_spill]] %s8040_s2 }
   0x3   :  { %8067 = sst [smem:[#allocation24_spill]] %s8042_s4 }
   0x4   :  { %8068 = sst [smem:[#allocation25_spill]] %s8046_s8 }
   0x5   :  { %8069 = sst [smem:[#allocation26_spill]] %s8047_s9 }
   0x6   :  { %8070 = sst [smem:[#allocation27_spill]] %s8049_s11 }
   0x7   :  { %8071 = sst [smem:[#allocation28_spill]] %s8050_s12 }
   0x8   :  { %8072 = sst [smem:[#allocation29_spill]] %s8051_s13 }
   0x9   :  { %8073 = sst [smem:[#allocation30_spill]] %s8052_s14 }
   0xa   :  { %19 = vsyncpa [#allocation3], 0 }
   0xb   :  { %21 = vsyncpa [#allocation3 + $0x1], 0 }
   0xc   :  { %22 = vsyncpa [#allocation6], 0 }
   0xd   :  { %24 = vsyncpa [#allocation6 + $0x1], 0 }
   0xe   :  { %25 = vsyncpa [#allocation9], 0 }
   0xf   :  { %26 = vsyncpa [#allocation12], 0 }
  0x10   :  { %27 = vsyncpa [#allocation4], 0 }
  0x11   :  { %29 = vsyncpa [#allocation4 + $0x1], 0  ;;  %s7017_s29 = smov 0   ;;  %s7019_s30 = smov 0  }
  0x12   :  { %s7021_s15 = smov 0   ;;  %s7023_s16 = smov 0  }
  0x13 LB: > { %8074 = sst [smem:[#allocation20_spill]] %s6905_s29  ;;  %s7038_s17 = sadd.s32 4294967295, %s6917_s16   ;;  %s6917_s16 = sphi %s7023_s16, %s8111_s16   ;;  %s6913_s15 = sphi %s7021_s15, %s8110_s15   ;;  %s6909_s30 = sphi %s7019_s30, %s8109_s30   ;;  %s6905_s29 = sphi %s7017_s29, %s8108_s29  }
  0x14   : > { %s5320_s18 = sadd.s32 4294967294, %s6917_s16   ;;  %p55_p0 = scmp.ne.s32.totalorder %s6909_s30, %s6905_s29 }
  0x15   : > { %p8056_p1 = scmp.eq.s32.totalorder %s7038_s17, 0  ;;  %p363_p3 = scmp.eq.s32.totalorder %s5320_s18, 1 }
  0x16   : > { %p5321_p5 = scmp.ge.s32.totalorder %s6917_s16, 1  ;;  %p370_p7 = scmp.lt.s32.totalorder %s6917_s16, 3 }
  0x17   : > { %p7047_p4 = por %p8056_p1, %p55_p0  ;;  %p7052_p6 = por %p363_p3, %p55_p0 }
  0x18   : > { %p7057_p8 = pnand %p5321_p5, %p370_p7  ;;  %s6919_s22 = smov [#allocation7]  }
  0x19   : > { %s8075_s19 = scalar_select %p7047_p4, 1, 0 }
  0x1a   : > { %s8076_s20 = scalar_select %p7052_p6, 1, 0 }
  0x1b   : > { %s8078_s21 = scalar_select %p7057_p8, 1, 0 }
  0x1c   : > { %8077 = sst [smem:[#allocation21_spill]] %s8076_s20  ;;  %s382_s23 = sshll.u32 %s6919_s22, 4  ;;  %s7061_s23 = int_to_ptr.vmem [resolvable:$true] %s382_s23 }
  0x1d   : > { %p6109_p9 = pneg %p7057_p8  ;;  %s6920_s25 = smov [#allocation8]  }
  0x1e   : > { %s398_s26 = sshll.u32 %s6920_s25, 4  ;;  %s8080_s2 = sld [smem:[#allocation23_spill]]  ;;  %s7072_s26 = int_to_ptr.vmem [resolvable:$true] %s398_s26 }
  0x1f   : > { %p7068_p11 = pnand %p6109_p9, %p8056_p1 }
  0x21   : > { %p7082_p13 = pneg %p7068_p11 }
  0x24   : > { %s6663_s18 = scalar_lea.hbm %s8080_s2, 6144 }
  0x25   : > { %p6664_p12 = scmp.ne.s32.totalorder %s8080_s2, %s6663_s18  ;;  %p6670_p5 = scmp.lt.u32.totalorder %s6663_s18, %s8080_s2 }
  0x27   : > { %p6666_p0 = pnand %p7082_p13, %p6664_p12 }
  0x29   : > { %p6667_p3 = pneg %p6666_p0 }
  0x2b   : > { %p6672_p7 = pnand %p6670_p5, %p6667_p3 }
  0x2d   : > { %6675 = shalt.err (!%p6672_p7)
}
  0x2e   : > { %s6676_s20 = scalar_lea.vmem %s7061_s23, 6144  ;;  %p6684_p2 = scmp.lt.s32.totalorder %s7061_s23, %s7061_s23 }
  0x2f   : > { %p6677_p9 = scmp.ne.s32.totalorder %s7061_s23, %s6676_s20  ;;  %p6685_p6 = scmp.lt.s32.totalorder %s6676_s20, %s6676_s20 }
  0x31   : > { %p6679_p10 = pnand %p6677_p9, %p7082_p13  ;;  %p6686_p12 = por %p6685_p6, %p6684_p2 }
  0x33   : > { %p6680_p1 = pneg %p6679_p10 }
  0x35   : > { %p6687_p0 = pnand %p6686_p12, %p6680_p1 }
  0x37   : > { %6690 = shalt.err (!%p6687_p0)
}
  0x38   : > { %s6921_s27 = smov 192   ;;  %s6922_s14 = smov 12  }
  0x39   : > { %6112 = dma.hbm_to_vmem [thread:$0]  (!%p7068_p11), %s8080_s2, 6144, %s7061_s23, [#allocation6], %s6921_s27, %s6921_s27, %s6922_s14  }
  0x3a   : > { %s8082_s4 = sld [smem:[#allocation24_spill]] }
  0x40   : > { %s6691_s13 = scalar_lea.hbm %s8082_s4, 2048 }
  0x41   : > { %p6692_p2 = scmp.ne.s32.totalorder %s8082_s4, %s6691_s13  ;;  %p6698_p10 = scmp.lt.u32.totalorder %s6691_s13, %s8082_s4 }
  0x43   : > { %p6694_p1 = pnand %p6692_p2, %p7082_p13 }
  0x45   : > { %p6695_p6 = pneg %p6694_p1 }
  0x47   : > { %p6700_p3 = pnand %p6698_p10, %p6695_p6 }
  0x49   : > { %6703 = shalt.err (!%p6700_p3)
}
  0x4a   : > { %s6704_s23 = scalar_lea.vmem %s7072_s26, 2048  ;;  %p6712_p12 = scmp.lt.s32.totalorder %s7072_s26, %s7072_s26 }
  0x4b   : > { %p6705_p5 = scmp.ne.s32.totalorder %s7072_s26, %s6704_s23  ;;  %p6713_p0 = scmp.lt.s32.totalorder %s6704_s23, %s6704_s23 }
  0x4d   : > { %p6707_p7 = pnand %p6705_p5, %p7082_p13  ;;  %p6714_p2 = por %p6713_p0, %p6712_p12 }
  0x4f   : > { %p6708_p9 = pneg %p6707_p7 }
  0x51   : > { %p6715_p1 = pnand %p6714_p2, %p6708_p9 }
  0x53   : > { %6718 = shalt.err (!%p6715_p1)
}
  0x54   : > { %s8063_s11 = smov 64   ;;  %s8064_s9 = smov 4  }
  0x55   : > { %6115 = dma.hbm_to_vmem [thread:$0]  (!%p7068_p11), %s8082_s4, 2048, %s7072_s26, [#allocation9], %s8063_s11, %s8063_s11, %s8064_s9  }
  0x56   : > { %s6925_s27 = smov [#allocation10]   ;;  %s8083_s8 = sld [smem:[#allocation25_spill]] }
  0x57   : > { %s420_s14 = sshll.u32 %s6925_s27, 4  ;;  %s421_s14 = int_to_ptr.vmem [resolvable:$true] %s420_s14 }
  0x5c   : > { %s6719_s22 = scalar_lea.hbm %s8083_s8, 8192 }
  0x5d   : > { %p6720_p6 = scmp.ne.s32.totalorder %s8083_s8, %s6719_s22  ;;  %p6726_p5 = scmp.lt.u32.totalorder %s6719_s22, %s8083_s8 }
  0x5f   : > { %p6722_p10 = pnand %p6720_p6, %p7082_p13 }
  0x61   : > { %p6723_p3 = pneg %p6722_p10 }
  0x63   : > { %p6728_p7 = pnand %p6726_p5, %p6723_p3 }
  0x65   : > { %6731 = shalt.err (!%p6728_p7)
}
  0x66   : > { %s6732_s26 = scalar_lea.vmem %s421_s14, 8192  ;;  %p6740_p2 = scmp.lt.s32.totalorder %s421_s14, %s421_s14 }
  0x67   : > { %p6733_p9 = scmp.ne.s32.totalorder %s421_s14, %s6732_s26  ;;  %p6741_p1 = scmp.lt.s32.totalorder %s6732_s26, %s6732_s26 }
  0x69   : > { %p6735_p12 = pnand %p6733_p9, %p7082_p13  ;;  %p6742_p4 = por %p6741_p1, %p6740_p2 }
  0x6b   : > { %p6736_p0 = pneg %p6735_p12 }
  0x6d   : > { %p6743_p8 = pnand %p6742_p4, %p6736_p0 }
  0x6f   : > { %6746 = shalt.err (!%p6743_p8)
}
  0x70   : > { %s6926_s12 = smov 256   ;;  %s6927_s13 = smov 16  }
  0x71   : > { %6118 = dma.hbm_to_vmem [thread:$0]  (!%p7068_p11), %s8083_s8, 8192, %s421_s14, [#allocation9], %s6926_s12, %s6926_s12, %s6927_s13  }
  0x72   : > { %s6928_s28 = smov [#allocation11]   ;;  %s6747_s20 = scalar_lea.hbm %s8048_s10, 8192 }
  0x73   : > { %s436_s18 = sshll.u32 %s6928_s28, 4  ;;  %p6748_p4 = scmp.ne.s32.totalorder %s8048_s10, %s6747_s20  ;;  %s437_s18 = int_to_ptr.vmem [resolvable:$true] %s436_s18 }
  0x74   : > { %p6754_p10 = scmp.lt.u32.totalorder %s6747_s20, %s8048_s10 }
  0x75   : > { %p6750_p8 = pnand %p6748_p4, %p7082_p13 }
  0x77   : > { %p6751_p6 = pneg %p6750_p8 }
  0x79   : > { %p6756_p3 = pnand %p6754_p10, %p6751_p6 }
  0x7b   : > { %6759 = shalt.err (!%p6756_p3)
}
  0x7c   : > { %s6760_s14 = scalar_lea.vmem %s437_s18, 8192  ;;  %p6768_p12 = scmp.lt.s32.totalorder %s437_s18, %s437_s18 }
  0x7d   : > { %p6761_p5 = scmp.ne.s32.totalorder %s437_s18, %s6760_s14  ;;  %p6769_p0 = scmp.lt.s32.totalorder %s6760_s14, %s6760_s14 }
  0x7f   : > { %p6763_p7 = pnand %p6761_p5, %p7082_p13  ;;  %p6770_p2 = por %p6769_p0, %p6768_p12 }
  0x81   : > { %p6764_p9 = pneg %p6763_p7 }
  0x83   : > { %p6771_p1 = pnand %p6770_p2, %p6764_p9 }
  0x85   : > { %6774 = shalt.err (!%p6771_p1)
}
  0x86   : > { %s8084_s12 = smov 4   ;;  %s8085_s13 = smov 64  }
  0x87   : > { %6121 = dma.hbm_to_vmem [thread:$0]  (!%p7068_p11), %s8048_s10, 8192, %s437_s18, [#allocation12], %s8085_s13, %s8085_s13, %s8084_s12  }
  0x88   : > { %s7169_s29 = sadd.s32 1, %s6917_s16   ;;  %s42_s24 = sadd.s32 1, %s6913_s15 }
  0x89   : > { %s39_s2 = ssub.s32 %s6917_s16, %s7169_s29  ;;  %p49_p13 = scmp.ne.s32.totalorder %s6913_s15, %s6909_s30 }
  0x8a   : > { %p40_p4 = scmp.eq.s32.totalorder %s39_s2, 0  ;;  %p50_p8 = scmp.eq.s32.totalorder %s6917_s16, 0 }
  0x8b   : > { %p8086_p6 = scmp.eq.s32.totalorder %s7038_s17, 1  ;;  %p6137_p3 = scmp.lt.s32.totalorder %s6917_s16, 2 }
  0x8c   : > { %s7185_s28 = scalar_select %p40_p4, %s6913_s15, %s42_s24  }
  0x8d   : > { %p7179_p10 = por %p8086_p6, %p49_p13  ;;  %p51_p5 = por %p50_p8, %p49_p13 }
  0x8e   : > { %s459_s22 = sand.u32 1, %s6913_s15   ;;  %s5594_s18 = sshll.u32 %s6917_s16, 9 }
  0x8f   : > { %s7188_s25 = sshll.u32 %s459_s22, 5  ;;  %s8088_s0 = sld [smem:[#allocation22_spill]] }
  0x90   : > { %s463_s14 = scalar_lea.vmem [#allocation2], %s7188_s25  ;;  %p7201_p11 = pnand %p6137_p3, %p51_p5 }
  0x91   : > { %s471_s12 = sshll.u32 %s463_s14, 4  ;;  %s7205_s11 = scalar_lea.sflag [#allocation3], %s459_s22  ;;  %s7199_s12 = int_to_ptr.vmem [resolvable:$true] %s471_s12 }
  0x92   : > { %p6777_p9 = pneg %p7201_p11 }
  0x95   : > { %s7196_s26 = scalar_lea.hbm %s8088_s0, %s5594_s18  ;;  %s6780_s20 = scalar_lea.hbm %s8088_s0, 1024 }
  0x96   : > { %s6775_s9 = scalar_lea.hbm %s7196_s26, 512  ;;  %p6781_p2 = scmp.lt.u32.totalorder %s7196_s26, %s8088_s0 }
  0x97   : > { %p6776_p7 = scmp.ne.s32.totalorder %s7196_s26, %s6775_s9  ;;  %p6782_p1 = scmp.lt.u32.totalorder %s6780_s20, %s6775_s9 }
  0x98   : > { %p6784_p4 = scmp.lt.u32.totalorder %s6775_s9, %s7196_s26 }
  0x99   : > { %p6778_p12 = pnand %p6777_p9, %p6776_p7  ;;  %p6783_p13 = por %p6782_p1, %p6781_p2 }
  0x9b   : > { %p6779_p0 = pneg %p6778_p12  ;;  %p6785_p8 = por %p6784_p4, %p6783_p13 }
  0x9d   : > { %p6786_p6 = pnand %p6785_p8, %p6779_p0 }
  0x9f   : > { %6789 = shalt.err (!%p6786_p6)
}
  0xa0   : > { %s6790_s22 = scalar_lea.vmem %s7199_s12, 512  ;;  %s6929_s24 = smov [#allocation2]  }
  0xa1   : > { %p6791_p3 = scmp.ne.s32.totalorder %s7199_s12, %s6790_s22  ;;  %s6795_s2 = sshll.u32 %s6929_s24, 4  ;;  %s6796_s2 = int_to_ptr.vmem [resolvable:$false] %s6795_s2 }
  0xa2   : > { %s6797_s23 = scalar_lea.vmem %s6796_s2, 1024  ;;  %p6798_p12 = scmp.lt.s32.totalorder %s7199_s12, %s6796_s2 }
  0xa3   : > { %p6793_p5 = pnand %p6791_p3, %p6777_p9  ;;  %p6799_p2 = scmp.lt.s32.totalorder %s6797_s23, %s6790_s22 }
  0xa5   : > { %p6794_p7 = pneg %p6793_p5  ;;  %p6800_p1 = por %p6799_p2, %p6798_p12 }
  0xa7   : > { %p6801_p13 = pnand %p6800_p1, %p6794_p7 }
  0xa9   : > { %6804 = shalt.err (!%p6801_p13)
}
  0xaa   : > { %s6930_s9 = smov 128   ;;  %s6931_s20 = smov 8  }
  0xab   : > { %6125 = dma.hbm_to_vmem [thread:$0]  (!%p7201_p11), %s7196_s26, 512, %s7199_s12, %s7205_s11, %s6930_s9, %s6930_s9, %s6931_s20  }
  0xac   : > { %s7241_s24 = scalar_lea.hbm %s8039_s1, %s5594_s18  ;;  %s485_s2 = scalar_lea.vmem [#allocation5], %s7188_s25 }
  0xad   : > { %s493_s23 = sshll.u32 %s485_s2, 4  ;;  %s481_s0 = sand.u32 1, %s6917_s16   ;;  %s7244_s23 = int_to_ptr.vmem [resolvable:$true] %s493_s23 }
  0xae   : > { %s7247_s4 = scalar_lea.sflag [#allocation6], %s481_s0  ;;  %s6805_s8 = scalar_lea.hbm %s7241_s24, 512 }
  0xaf   : > { %p6806_p0 = scmp.ne.s32.totalorder %s7241_s24, %s6805_s8  ;;  %s6810_s12 = scalar_lea.hbm %s8039_s1, 1024 }
  0xb0   : > { %p6811_p6 = scmp.lt.u32.totalorder %s7241_s24, %s8039_s1  ;;  %p6812_p3 = scmp.lt.u32.totalorder %s6810_s12, %s6805_s8 }
  0xb1   : > { %p6808_p4 = pnand %p6806_p0, %p6777_p9  ;;  %p6814_p7 = scmp.lt.u32.totalorder %s6805_s8, %s7241_s24 }
  0xb2   : > { %p6813_p5 = por %p6812_p3, %p6811_p6 }
  0xb3   : > { %p6809_p8 = pneg %p6808_p4 }
  0xb4   : > { %p6815_p12 = por %p6814_p7, %p6813_p5 }
  0xb6   : > { %p6816_p2 = pnand %p6815_p12, %p6809_p8 }
  0xb8   : > { %6819 = shalt.err (!%p6816_p2)
}
  0xb9   : > { %s6820_s0 = scalar_lea.vmem %s7244_s23, 512  ;;  %s6932_s25 = smov [#allocation5]  }
  0xba   : > { %p6821_p1 = scmp.ne.s32.totalorder %s7244_s23, %s6820_s0  ;;  %s6825_s22 = sshll.u32 %s6932_s25, 4  ;;  %s6826_s22 = int_to_ptr.vmem [resolvable:$false] %s6825_s22 }
  0xbb   : > { %s6827_s2 = scalar_lea.vmem %s6826_s22, 1024  ;;  %p6828_p4 = scmp.lt.s32.totalorder %s7244_s23, %s6826_s22 }
  0xbc   : > { %p6823_p13 = pnand %p6821_p1, %p6777_p9  ;;  %p6829_p6 = scmp.lt.s32.totalorder %s6827_s2, %s6820_s0 }
  0xbe   : > { %p6824_p0 = pneg %p6823_p13  ;;  %p6830_p3 = por %p6829_p6, %p6828_p4 }
  0xc0   : > { %p6831_p5 = pnand %p6830_p3, %p6824_p0 }
  0xc2   : > { %6834 = shalt.err (!%p6831_p5)
}
  0xc3   : > { %6128 = dma.hbm_to_vmem [thread:$0]  (!%p7201_p11), %s7241_s24, 512, %s7244_s23, %s7247_s4, %s6930_s9, %s6930_s9, %s6931_s20  }
  0xc4   : > { %p8090_p9 = scmp.ne.s32.totalorder %s8078_s21, 0 }
  0xc5   : > { %s7279_s8 = sand.u32 (!%p8090_p9), 1, %s6909_s30   ;;  %p8091_p8 = scmp.ne.s32.totalorder (!%p8090_p9), %s8075_s19, 0 }
  0xc6   : > { %505 = sbr.rel (%p8090_p9) target bundleno = 8582 (0x2186), region = 76  ;;  %s7282_s26 = sshll.u32 (!%p8090_p9), %s7279_s8, 5 }
  0xc7   : > { %s508_s13 = scalar_lea.sflag (!%p8090_p9), [#allocation3], %s7279_s8  ;;  %s7286_s18 = scalar_lea.vmem (!%p8090_p9), [#allocation2], %s7282_s26 }
  0xcd   : > { %6880 = dma.done.wait (%p8091_p8), %s508_s13, 512  }
  0xce   : > { %6882 = vsyncadd (%p8091_p8), %s508_s13, 4294966784  ;;  %s516_s4 = sand.u32 1, %s7038_s17   ;;  %s7294_s9 = scalar_lea.vmem [#allocation5], %s7282_s26 }
  0xcf   : > { %s517_s21 = scalar_lea.sflag [#allocation6], %s516_s4 }
  0xd0   : > { %6884 = dma.done.wait (%p8091_p8), %s517_s21, 512  }
  0xd1   : > { %6886 = vsyncadd (%p8091_p8), %s517_s21, 4294966784  ;;  %p8092_p11 = scmp.eq.s32.totalorder %s7038_s17, 0 }
  0xd3   : > { %6888 = dma.done.wait (%p8092_p11), [#allocation6], 6144   ;;  %p8093_p7 = pmov %p8092_p11 }
  0xd5   : > { %6890 = vsyncadd (%p8093_p7), [#allocation6], 4294961152  ;;  %p8094_p12 = pmov %p8093_p7 }
  0xd6   : > { %p8095_p2 = pmov %p8093_p7 }
  0xd7   : > { %6892 = dma.done.wait (%p8094_p12), [#allocation9], 10240  }
  0xd8   : > { %6894 = vsyncadd (%p8095_p2), [#allocation9], 4294957056  ;;  %p8096_p1 = pmov %p8095_p2 }
  0xda   : > { %6896 = dma.done.wait (%p8096_p1), [#allocation12], 8192   ;;  %p8097_p13 = pmov %p8096_p1 }
  0xdb   : > { %v6933_v0 = vmov 0   ;;  %v6255_v1 = vld [vmem:[#allocation7 + $0x4] ss:$12 sps:$4 sm:$0xff]   ;;  %v6257_v2 = vld [vmem:[#allocation7] ss:$12 sps:$4 sm:$0xff]   ;;  %v593_v28 = vld [vmem:[%s7286_s18 + $0x18] sm:$0xff]  ;;  %v634_v32 = vlaneseq }
  0xdc   : > { %6898 = vsyncadd (%p8097_p13), [#allocation12], 4294959104  ;;  %809 = vmatprep.mubr.bf16.mxu0 %v6933_v0  ;;  %777 = vmatprep.subr.bf16.mxu0 %v6255_v1  ;;  %v6258_v3 = vld [vmem:[#allocation7 + $0x1c] ss:$12 sps:$4 sm:$0xff]   ;;  %v6260_v4 = vld [vmem:[#allocation7 + $0x18] ss:$12 sps:$4 sm:$0xff]  }
  0xdd   : > { %778 = vmatpush1.bf16.msra.mxu0 %v6257_v2  ;;  %v6261_v5 = vld [vmem:[#allocation7 + $0x34] ss:$12 sps:$4 sm:$0xff]   ;;  %v6263_v6 = vld [vmem:[#allocation7 + $0x30] ss:$12 sps:$4 sm:$0xff]   ;;  %v6264_v7 = vld [vmem:[#allocation7 + $0x4c] ss:$12 sps:$4 sm:$0xff]  }
  0xde   : > { %779 = vmatprep.subr.bf16.mxu0 %v6258_v3  ;;  %v590_v8 = vld [vmem:[%s7286_s18] sm:$0xff]  ;;  %v6266_v9 = vld [vmem:[#allocation7 + $0x48] ss:$12 sps:$4 sm:$0xff]   ;;  %v6282_v20 = vld [vmem:[#allocation7 + $0x50] ss:$12 sps:$4 sm:$0xff]   ;;  %v6934_v31 = vmov 0.0  }
  0xdf   : > { %v6267_v10 = vld [vmem:[#allocation7 + $0x64] ss:$12 sps:$4 sm:$0xff]   ;;  %v591_v11 = vld [vmem:[%s7286_s18 + $0x8] sm:$0xff]  ;;  %v6273_v19 = vld [vmem:[#allocation7 + $0x94] ss:$12 sps:$4 sm:$0xff]   ;;  %vm6935_vm0 = vmmov 0  }
  0xe0   : > { %v598_v12 = vpack.c.bf16 %v591_v11, %v590_v8  ;;  %v6279_v13 = vld [vmem:[#allocation7 + $0x8] ss:$12 sps:$4 sm:$0xff]   ;;  %v6280_v14 = vld [vmem:[#allocation7 + $0x20] ss:$12 sps:$4 sm:$0xff]   ;;  %v6281_v17 = vld [vmem:[#allocation7 + $0x38] ss:$12 sps:$4 sm:$0xff]  }
  0xe1   : > { %780 = vmatpush1.bf16.msra.mxu0 %v6260_v4  ;;  %v6269_v15 = vld [vmem:[#allocation7 + $0x60] ss:$12 sps:$4 sm:$0xff]   ;;  %5815 = vmatprep.subr.bf16.mxu1 %v6279_v13  ;;  %v6270_v16 = vld [vmem:[#allocation7 + $0x7c] ss:$12 sps:$4 sm:$0xff]   ;;  %v6272_v18 = vld [vmem:[#allocation7 + $0x78] ss:$12 sps:$4 sm:$0xff]  }
  0xe2   : > { %781 = vmatprep.subr.bf16.mxu0 %v6261_v5  ;;  %5831 = vmatprep.mubr.bf16.mxu1 %v598_v12  ;;  %v6275_v21 = vld [vmem:[#allocation7 + $0x90] ss:$12 sps:$4 sm:$0xff]   ;;  %v6276_v22 = vld [vmem:[#allocation7 + $0xac] ss:$12 sps:$4 sm:$0xff]   ;;  %v6283_v23 = vld [vmem:[#allocation7 + $0x68] ss:$12 sps:$4 sm:$0xff]  }
  0xe3   : > { %5816 = vmatpush3.bf16.msra.mxu1 %v6279_v13  ;;  %v6278_v24 = vld [vmem:[#allocation7 + $0xa8] ss:$12 sps:$4 sm:$0xff]   ;;  %v6284_v25 = vld [vmem:[#allocation7 + $0x80] ss:$12 sps:$4 sm:$0xff]   ;;  %v6285_v26 = vld [vmem:[#allocation7 + $0x98] ss:$12 sps:$4 sm:$0xff]  }
  0xe4   : > { %5817 = vmatprep.subr.bf16.mxu1 %v6280_v14  ;;  %v592_v27 = vld [vmem:[%s7286_s18 + $0x10] sm:$0xff]  ;;  %v7324_v33 = vshrl.u32 %v634_v32, 7  ;;  %v632_v35 = vld [vmem:[%s8041_s3] sm:$0x7]  ;;  %vm883_vm1 = vcmask 261120   ;;  %vm978_vm2 = vcmask 130048  }
  0xe5   : > { %782 = vmatpush1.bf16.msra.mxu0 %v6263_v6  ;;  %v6286_v29 = vld [vmem:[#allocation7 + $0xb0] ss:$12 sps:$4 sm:$0xff]   ;;  %v599_v30 = vpack.c.bf16 %v593_v28, %v592_v27  ;;  %s6936_s24 = smov 96   ;;  %s6937_s23 = smov 64   ;;  %vm1899_vm3 = vcmask 523264   ;;  %vm1904_vm4 = vcmask 785408  }
  0xe6   : > { %783 = vmatprep.subr.bf16.mxu0 %v6264_v7  ;;  %v7327_v34 = vsub.s32 0, %v7324_v33  ;;  %v7333_v36 = vsub.s32 1, %v7324_v33  ;;  %v7340_v48 = vsub.s32 2, %v7324_v33  ;;  %s6938_s12 = smov 32   ;;  %s8098_s4 = sld [smem:[#allocation26_spill]] }
  0xe7   : > { %5818 = vmatpush3.bf16.msra.mxu1 %v6280_v14  ;;  %s8099_s20 = sld [smem:[#allocation27_spill]]  ;;  %s8100_s0 = sld [smem:[#allocation28_spill]] }
  0xe8   : > { %5819 = vmatprep.subr.bf16.mxu1 %v6281_v17  ;;  %v637_v37 = vrot.slane %v632_v35, %v7327_v34  ;;  %v641_v39 = vrot.slane %v632_v35, %v7333_v36  ;;  %v645_v54 = vrot.slane %v632_v35, %v7340_v48  ;;  %s8101_s2 = sld [smem:[#allocation29_spill]]  ;;  %s8102_s14 = sld [smem:[#allocation30_spill]] }
  0xe9   : > { %784 = vmatpush1.bf16.msra.mxu0 %v6266_v9 }
  0xea   : > { %785 = vmatprep.subr.bf16.mxu0 %v6267_v10  ;;  %v7370_v10 = vld [vmem:[%s7294_s9] sm:$0xff] }
  0xeb   : > { %5820 = vmatpush3.bf16.msra.mxu1 %v6281_v17 }
  0xec   : > { %5821 = vmatprep.subr.bf16.mxu1 %v6282_v20 }
  0xed   : > { %786 = vmatpush1.bf16.msra.mxu0 %v6269_v15 }
  0xee   : > { %787 = vmatprep.subr.bf16.mxu0 %v6270_v16 }
  0xef   : > { %5822 = vmatpush3.bf16.msra.mxu1 %v6282_v20 }
  0xf0   : > { %5823 = vmatprep.subr.bf16.mxu1 %v6283_v23 }
  0xf1   : > { %788 = vmatpush1.bf16.msra.mxu0 %v6272_v18 }
  0xf2   : > { %789 = vmatprep.subr.bf16.mxu0 %v6273_v19  ;;  %v7379_v19 = vld [vmem:[%s7294_s9 + $0x10] sm:$0xff] }
  0xf3   : > { %5824 = vmatpush3.bf16.msra.mxu1 %v6283_v23 }
  0xf4   : > { %5825 = vmatprep.subr.bf16.mxu1 %v6284_v25 }
  0xf5   : > { %790 = vmatpush1.bf16.msra.mxu0 %v6275_v21 }
  0xf6   : > { %791 = vmatprep.subr.bf16.mxu0 %v6276_v22  ;;  %v7383_v22 = vld [vmem:[%s7294_s9 + $0x18] sm:$0xff] }
  0xf7   : > { %5826 = vmatpush3.bf16.msra.mxu1 %v6284_v25 }
  0xf8   : > { %5827 = vmatprep.subr.bf16.mxu1 %v6285_v26 }
  0xf9   : > { %792 = vmatpush1.bf16.msra.mxu0 %v6278_v24 }
  0xfa   : > { %5865 = vmatprep.subr.bf16.mxu0 %v6934_v31 }
  0xfb   : > { %5828 = vmatpush3.bf16.msra.mxu1 %v6285_v26 }
  0xfc   : > { %810 = vmatmul.mubr.bf16.vlgmr.msra.gmra.mrb[0].mxu0 %v598_v12  ;;  %5829 = vmatprep.subr.bf16.mxu1 %v6286_v29  ;;  %v7373_v12 = vld [vmem:[%s7294_s9 + $0x8] sm:$0xff] }
  0xfd   : > { %819 = vmatprep.mubr.bf16.mxu0 %v6933_v0 }
  0xff   : > { %5830 = vmatpush3.bf16.msra.mxu1 %v6286_v29 }
 0x100   : > { %5835 = vmatprep.subr.bf16.mxu1 %v6934_v31 }
 0x102   : > { %5832 = vmatmul.mubr.bf16.vlgmr.msra.gmra.mrb[0].mxu1 %v599_v30 }
 0x103   : > { %5837 = vmatprep.mubr.msk.bf16.mxu1 %vm6935_vm0, %v6934_v31 }
 0x104   : > { %820 = vmatmul.mubr.bf16.gmra.mrb[4].mxu0 %v599_v30 }
 0x105   : > { %5867 = vmatprep.mubr.msk.bf16.mxu0 %vm6935_vm0, %v6934_v31 }
 0x1cf   : > { %v811_v38 = vpop.f32.mrb[0].mxu0 }
 0x1d0   : > { %v813_v40 = vpop.f32.mrb[1].mxu0  ;;  %v812_v42 = vadd.f32 %v811_v38, %v637_v37 }
 0x1d1   : > { %v815_v41 = vpop.f32.mrb[2].mxu0  ;;  %v814_v45 = vadd.f32 %v813_v40, %v641_v39 }
 0x1d2   : > { %v816_v43 = vadd.f32 %v815_v41, %v637_v37  ;;  %v817_v44 = vpop.f32.mrb[3].mxu0 }
 0x1d3   : > { %v818_v46 = vadd.f32 %v817_v44, %v641_v39 }
 0x1d4   : > { %v7337_v47 = vpack.c.bf16 %v816_v43, %v812_v42 }
 0x1d5   : > { %v7342_v49 = vpack.c.bf16 %v818_v46, %v814_v45  ;;  %v5833_v60 = vpop.f32.mrb[0].mxu1 }
 0x1d6   : > { %v873_v62 = vadd.f32 %v5833_v60, %v645_v54  ;;  %v864_v63 = vpop.f32.mrb[1].mxu1 }
 0x1d7   : > { %v821_v50 = vpop.f32.mrb[4].mxu0  ;;  %v888_v51 = vsel %vm883_vm1, %v7342_v49, 0  ;;  %v865_v2 = vadd.f32 %v864_v63, %v645_v54  ;;  %v5834_v3 = vpop.f32.mrb[2].mxu1 }
 0x1d8   : > { %v822_v52 = vadd.f32 %v821_v50, %v637_v37  ;;  %v823_v53 = vpop.f32.mrb[5].mxu0  ;;  %5836 = vmatpush3.bf16.xpose.msra.mxu1 %v888_v51  ;;  %v876_v4 = vadd.f32 %v5834_v3, %v645_v54  ;;  %v867_v5 = vpop.f32.mrb[3].mxu1 }
 0x1d9   : > { %v824_v55 = vadd.f32 %v823_v53, %v641_v39  ;;  %v825_v56 = vpop.f32.mrb[6].mxu0  ;;  %5841 = vmatprep.subr.bf16.mxu1 %v6934_v31  ;;  %v868_v7 = vadd.f32 %v867_v5, %v645_v54 }
 0x1da   : > { %v826_v57 = vadd.f32 %v825_v56, %v637_v37  ;;  %v827_v58 = vpop.f32.mrb[7].mxu0  ;;  %v7358_v8 = vpack.c.bf16 %v876_v4, %v873_v62 }
 0x1db   : > { %v828_v59 = vadd.f32 %v827_v58, %v641_v39  ;;  %v7360_v9 = vpack.c.bf16 %v868_v7, %v865_v2 }
 0x1dc   : > { %v7348_v61 = vpack.c.bf16 %v826_v57, %v822_v52 }
 0x1dd   : > { %v7350_v1 = vpack.c.bf16 %v828_v59, %v824_v55 }
 0x1df   : > { %5838 = vmatmul.mubr.msk.bf16.vlgmr.msra.gmra.mrb[4].mxu1 %vm883_vm1, %v7337_v47  ;;  %v935_v6 = vsel %vm883_vm1, %v7350_v1, 0 }
 0x1e0   : > { %5842 = vmatpush3.bf16.xpose.msra.mxu1 %v935_v6  ;;  %5843 = vmatprep.mubr.msk.bf16.mxu1 %vm6935_vm0, %v6934_v31 }
 0x1e1   : > { %5847 = vmatprep.subr.bf16.mxu1 %v6934_v31 }
 0x1e7   : > { %5844 = vmatmul.mubr.msk.bf16.vlgmr.msra.gmra.mrb[8].mxu1 %vm883_vm1, %v7348_v61 }
 0x1e8   : > { %5848 = vmatpush3.bf16.msra.mxu1 %v7360_v9  ;;  %5849 = vmatprep.mubr.msk.bf16.mxu1 %vm6935_vm0, %v6934_v31 }
 0x1e9   : > { %5853 = vmatprep.subr.bf16.mxu1 %v6934_v31 }
 0x2b2   : > { %v924_v11 = vpop.f32.mrb[4].mxu1 }
 0x2b3   : > { %v925_v13 = vadd.f32 %v924_v11, %v7370_v10  ;;  %v5839_v14 = vpop.f32.mrb[5].mxu1 }
 0x2b4   : > { %v927_v15 = vpop.f32.mrb[6].mxu1 }
 0x2b5   : > { %v928_v16 = vadd.f32 %v927_v15, %v7373_v12  ;;  %v5840_v17 = vpop.f32.mrb[7].mxu1  ;;  %v979_v18 = vsel %vm978_vm2, %v925_v13, -inf }
 0x2b6   : > { %980 = vmax.xlane.f32.xlu0 %v979_v18 }
 0x2b7   : > { %v982_v20 = vsel %vm978_vm2, %v928_v16, -inf }
 0x2ba   : > { %983 = vmax.xlane.f32.xlu0 %v982_v20  ;;  %v971_v21 = vpop.f32.mrb[8].mxu1 }
 0x2bb   : > { %v972_v23 = vadd.f32 %v971_v21, %v7379_v19  ;;  %v5845_v24 = vpop.f32.mrb[9].mxu1 }
 0x2bc   : > { %v974_v25 = vpop.f32.mrb[10].mxu1 }
 0x2bd   : > { %v985_v26 = vsel %vm978_vm2, %v972_v23, -inf  ;;  %v975_v27 = vadd.f32 %v974_v25, %v7383_v22  ;;  %v5846_v28 = vpop.f32.mrb[11].mxu1 }
 0x2be   : > { %986 = vmax.xlane.f32.xlu1 %v985_v26 }
 0x2bf   : > { %v988_v29 = vsel %vm978_vm2, %v975_v27, -inf }
 0x2c2   : > { %989 = vmax.xlane.f32.xlu1 %v988_v29 }
 0x343   : > { %v981_v30 = vpop.xlane.xlu0 %980 }
 0x344   : > { %v991_v32 = vsub.f32 %v925_v13, %v981_v30 }
 0x346   : > { %v995_v35 = vmul.f32 1.442695, %v991_v32 }
 0x347   : > { %v984_v37 = vpop.xlane.xlu0 %983 }
 0x348   : > { %6495 = vpow2.f32 %v995_v35  ;;  %v992_v38 = vsub.f32 %v928_v16, %v984_v37 }
 0x34a   : > { %v997_v39 = vmul.f32 1.442695, %v992_v38 }
 0x34b   : > { %v987_v40 = vpop.xlane.xlu1 %986 }
 0x34c   : > { %6497 = vpow2.f32 %v997_v39  ;;  %v993_v41 = vsub.f32 %v972_v23, %v987_v40 }
 0x34e   : > { %v999_v42 = vmul.f32 1.442695, %v993_v41 }
 0x34f   : > { %v990_v52 = vpop.xlane.xlu1 %989 }
 0x350   : > { %6499 = vpow2.f32 %v999_v42  ;;  %v994_v53 = vsub.f32 %v975_v27, %v990_v52 }
 0x352   : > { %v6496_v43 = vpop.eup %6495  ;;  %v1001_v54 = vmul.f32 1.442695, %v994_v53 }
 0x353   : > { %v1003_v44 = vsel %vm978_vm2, %v6496_v43, 0.0 }
 0x354   : > { %1004 = vadd.xlane.f32.xlu0 %v1003_v44  ;;  %6501 = vpow2.f32 %v1001_v54 }
 0x356   : > { %v6498_v45 = vpop.eup %6497 }
 0x357   : > { %v1006_v46 = vsel %vm978_vm2, %v6498_v45, 0.0 }
 0x358   : > { %1007 = vadd.xlane.f32.xlu1 %v1006_v46 }
 0x35a   : > { %v6500_v50 = vpop.eup %6499 }
 0x35b   : > { %v1009_v51 = vsel %vm978_vm2, %v6500_v50, 0.0 }
 0x35c   : > { %1010 = vadd.xlane.f32.xlu0 %v1009_v51 }
 0x35e   : > { %v6502_v55 = vpop.eup %6501 }
 0x35f   : > { %v1012_v56 = vsel %vm978_vm2, %v6502_v55, 0.0 }
 0x369   : > { %1172 = vrot.lane.b32.xlu1 %v7350_v1, %s6936_s24 }
 0x372   : > { %1119 = vrot.lane.b32.xlu0 %v7342_v49, %s6936_s24 }
 0x38d   : > { %1013 = vadd.xlane.f32.xlu1 %v1012_v56 }
 0x39e   : > { %1116 = vrot.lane.b32.xlu1 %v7337_v47, %s6936_s24 }
 0x3a2   : > { %1169 = vrot.lane.b32.xlu1 %v7348_v61, %s6936_s24 }
 0x3e1   : > { %v1005_v57 = vpop.xlane.xlu0 %1004 }
 0x3e2   : > { %6503 = vrcp.f32 %v1005_v57 }
 0x3e5   : > { %v1008_v58 = vpop.xlane.xlu1 %1007 }
 0x3e6   : > { %6505 = vrcp.f32 %v1008_v58 }
 0x3e9   : > { %v1173_v59 = vpop.permute.xlu1 %1172  ;;  %v1011_v5 = vpop.xlane.xlu0 %1010 }
 0x3ea   : > { %v1178_v60 = vsel %vm883_vm1, %v1173_v59, 0  ;;  %6507 = vrcp.f32 %v1011_v5 }
 0x3eb   : > { %5866 = vmatpush3.bf16.xpose.msra.mxu0 %v1178_v60 }
 0x3ec   : > { %5877 = vmatprep.subr.bf16.mxu0 %v6934_v31  ;;  %v6504_v62 = vpop.eup %6503 }
 0x3ed   : > { %v1019_v2 = vmul.f32 %v6504_v62, %v6496_v43  ;;  %v1120_v17 = vpop.permute.xlu0 %1119 }
 0x3ee   : > { %v1125_v20 = vsel %vm883_vm1, %v1120_v17, 0 }
 0x3f0   : > { %v6506_v63 = vpop.eup %6505 }
 0x3f1   : > { %v1020_v3 = vmul.f32 %v6506_v63, %v6498_v45 }
 0x3f3   : > { %v1023_v4 = vpack.c.bf16 %v1020_v3, %v1019_v2 }
 0x3f4   : > { %v6508_v13 = vpop.eup %6507 }
 0x3f5   : > { %5850 = vmatmul.mubr.msk.bf16.vlgmr.msra.gmra.mrb[12].mxu1 %vm978_vm2, %v1023_v4  ;;  %v1021_v15 = vmul.f32 %v6508_v13, %v6500_v50 }
 0x3f6   : > { %5854 = vmatpush3.bf16.msra.mxu1 %v7358_v8  ;;  %5855 = vmatprep.mubr.msk.bf16.mxu1 %vm6935_vm0, %v6934_v31 }
 0x3f7   : > { %5859 = vmatprep.subr.bf16.mxu1 %v6934_v31 }
 0x41a   : > { %v1014_v6 = vpop.xlane.xlu1 %1013 }
 0x41b   : > { %6509 = vrcp.f32 %v1014_v6 }
 0x41e   : > { %v1117_v7 = vpop.permute.xlu1 %1116 }
 0x422   : > { %v1170_v11 = vpop.permute.xlu1 %1169 }
 0x423   : > { %5868 = vmatmul.mubr.msk.bf16.vlgmr.msra.gmra.mrb[8].mxu0 %vm883_vm1, %v1170_v11 }
 0x424   : > { %5879 = vmatprep.mubr.msk.bf16.mxu0 %vm6935_vm0, %v6934_v31 }
 0x425   : > { %v6510_v14 = vpop.eup %6509 }
 0x426   : > { %v1022_v16 = vmul.f32 %v6510_v14, %v6502_v55 }
 0x428   : > { %v1024_v18 = vpack.c.bf16 %v1022_v16, %v1021_v15 }
 0x42a   : > { %5856 = vmatmul.mubr.msk.bf16.vlgmr.msra.gmra.mrb[16].mxu1 %vm978_vm2, %v1024_v18 }
 0x42b   : > { %5860 = vmatpush3.bf16.xpose.msra.mxu1 %v1125_v20  ;;  %5861 = vmatprep.mubr.msk.bf16.mxu1 %vm6935_vm0, %v6934_v31 }
 0x42c   : > { %5871 = vmatprep.subr.bf16.mxu1 %v6934_v31 }
 0x432   : > { %5862 = vmatmul.mubr.msk.bf16.vlgmr.msra.gmra.mrb[20].mxu1 %vm883_vm1, %v1117_v7 }
 0x433   : > { %5873 = vmatprep.mubr.msk.bf16.mxu1 %vm6935_vm0, %v6934_v31 }
 0x4c8   : > { %v7419_v21 = vpop.f32.mrb[12].mxu1 }
 0x4c9   : > { %v5851_v23 = vpop.f32.mrb[13].mxu1 }
 0x4ca   : > { %v7421_v24 = vpop.f32.mrb[14].mxu1 }
 0x4cb   : > { %v5852_v25 = vpop.f32.mrb[15].mxu1 }
 0x4f6   : > { %v1214_v26 = vpop.f32.mrb[8].mxu0 }
 0x4f7   : > { %v5869_v27 = vpop.f32.mrb[9].mxu0  ;;  %v1215_v42 = vadd.f32 %v1214_v26, %v7379_v19 }
 0x4f8   : > { %v1217_v28 = vpop.f32.mrb[10].mxu0 }
 0x4f9   : > { %v5870_v29 = vpop.f32.mrb[11].mxu0  ;;  %v1218_v50 = vadd.f32 %v1217_v28, %v7383_v22  ;;  %v1227_v51 = vsel %vm978_vm2, %v1215_v42, -inf }
 0x4fb   : > { %v1230_v52 = vsel %vm978_vm2, %v1218_v50, -inf }
 0x4fd   : > { %v7423_v30 = vpop.f32.mrb[16].mxu1 }
 0x4fe   : > { %v5857_v32 = vpop.f32.mrb[17].mxu1 }
 0x4ff   : > { %v7425_v35 = vpop.f32.mrb[18].mxu1 }
 0x500   : > { %v5858_v37 = vpop.f32.mrb[19].mxu1 }
 0x505   : > { %v1161_v38 = vpop.f32.mrb[20].mxu1 }
 0x506   : > { %v1162_v39 = vadd.f32 %v1161_v38, %v7370_v10  ;;  %v5863_v40 = vpop.f32.mrb[21].mxu1 }
 0x507   : > { %v1164_v41 = vpop.f32.mrb[22].mxu1 }
 0x508   : > { %v1165_v43 = vadd.f32 %v1164_v41, %v7373_v12  ;;  %v5864_v44 = vpop.f32.mrb[23].mxu1  ;;  %v1221_v45 = vsel %vm978_vm2, %v1162_v39, -inf }
 0x509   : > { %1222 = vmax.xlane.f32.xlu0 %v1221_v45 }
 0x50a   : > { %v1224_v46 = vsel %vm978_vm2, %v1165_v43, -inf }
 0x50b   : > { %1225 = vmax.xlane.f32.xlu1 %v1224_v46 }
 0x50d   : > { %1228 = vmax.xlane.f32.xlu0 %v1227_v51 }
 0x511   : > { %1231 = vmax.xlane.f32.xlu0 %v1230_v52 }
 0x596   : > { %v1223_v53 = vpop.xlane.xlu0 %1222 }
 0x597   : > { %v1233_v54 = vsub.f32 %v1162_v39, %v1223_v53 }
 0x598   : > { %v1226_v7 = vpop.xlane.xlu1 %1225 }
 0x599   : > { %v1237_v57 = vmul.f32 1.442695, %v1233_v54  ;;  %v1234_v11 = vsub.f32 %v1165_v43, %v1226_v7 }
 0x59a   : > { %v1229_v55 = vpop.xlane.xlu0 %1228 }
 0x59b   : > { %v1235_v56 = vsub.f32 %v1215_v42, %v1229_v55  ;;  %v1239_v13 = vmul.f32 1.442695, %v1234_v11 }
 0x59d   : > { %v1241_v58 = vmul.f32 1.442695, %v1235_v56 }
 0x59e   : > { %v1232_v59 = vpop.xlane.xlu0 %1231 }
 0x59f   : > { %6511 = vpow2.f32 %v1241_v58  ;;  %v1236_v60 = vsub.f32 %v1218_v50, %v1232_v59 }
 0x5a0   : > { %6513 = vpow2.f32 %v1237_v57 }
 0x5a1   : > { %v1243_v62 = vmul.f32 1.442695, %v1236_v60 }
 0x5a3   : > { %6515 = vpow2.f32 %v1243_v62 }
 0x5a4   : > { %6517 = vpow2.f32 %v1239_v13 }
 0x5a9   : > { %v6512_v63 = vpop.eup %6511 }
 0x5aa   : > { %v1251_v2 = vsel %vm978_vm2, %v6512_v63, 0.0  ;;  %v6514_v3 = vpop.eup %6513 }
 0x5ab   : > { %1252 = vadd.xlane.f32.xlu0 %v1251_v2  ;;  %v1245_v5 = vsel %vm978_vm2, %v6514_v3, 0.0 }
 0x5ad   : > { %v6516_v4 = vpop.eup %6515 }
 0x5ae   : > { %v1254_v6 = vsel %vm978_vm2, %v6516_v4, 0.0  ;;  %v6518_v14 = vpop.eup %6517 }
 0x5af   : > { %1246 = vadd.xlane.f32.xlu0 %v1245_v5  ;;  %1255 = vadd.xlane.f32.xlu1 %v1254_v6  ;;  %v1248_v15 = vsel %vm978_vm2, %v6518_v14, 0.0 }
 0x5c0   : > { %1316 = vrot.lane.b32.xlu1 %v7358_v8, %s6936_s24 }
 0x5c4   : > { %1365 = vrot.lane.b32.xlu1 %v7342_v49, %s6937_s23 }
 0x5c5   : > { %1268 = vrot.lane.b32.xlu0 %v7360_v9, %s6936_s24 }
 0x5c9   : > { %1363 = vrot.lane.b32.xlu0 %v7337_v47, %s6937_s23 }
 0x5e8   : > { %1249 = vadd.xlane.f32.xlu1 %v1248_v15 }
 0x5f9   : > { %1416 = vrot.lane.b32.xlu1 %v7350_v1, %s6937_s23 }
 0x5fd   : > { %1414 = vrot.lane.b32.xlu1 %v7348_v61, %s6937_s23 }
 0x638   : > { %v1253_v16 = vpop.xlane.xlu0 %1252 }
 0x639   : > { %6519 = vrcp.f32 %v1253_v16 }
 0x63c   : > { %v1247_v17 = vpop.xlane.xlu0 %1246  ;;  %v1256_v18 = vpop.xlane.xlu1 %1255 }
 0x63d   : > { %6521 = vrcp.f32 %v1256_v18 }
 0x63e   : > { %6523 = vrcp.f32 %v1247_v17 }
 0x640   : > { %v1269_v20 = vpop.permute.xlu0 %1268  ;;  %v1317_v23 = vpop.permute.xlu1 %1316 }
 0x641   : > { %5872 = vmatpush3.bf16.msra.mxu1 %v1269_v20  ;;  %5878 = vmatpush3.bf16.msra.mxu0 %v1317_v23 }
 0x642   : > { %5889 = vmatprep.subr.bf16.mxu0 %v6934_v31  ;;  %5883 = vmatprep.subr.bf16.mxu1 %v6934_v31 }
 0x643   : > { %v6520_v25 = vpop.eup %6519 }
 0x644   : > { %v1263_v27 = vmul.f32 %v6520_v25, %v6512_v63  ;;  %v1366_v32 = vpop.permute.xlu1 %1365  ;;  %v1364_v50 = vpop.permute.xlu0 %1363 }
 0x645   : > { %v1371_v46 = vsel %vm883_vm1, %v1366_v32, 0 }
 0x647   : > { %v6522_v26 = vpop.eup %6521 }
 0x648   : > { %v1264_v28 = vmul.f32 %v6522_v26, %v6516_v4  ;;  %v6524_v40 = vpop.eup %6523 }
 0x649   : > { %v1261_v42 = vmul.f32 %v6524_v40, %v6514_v3 }
 0x64a   : > { %v1266_v29 = vpack.c.bf16 %v1264_v28, %v1263_v27 }
 0x64c   : > { %5880 = vmatmul.mubr.msk.bf16.vlgmr.msra.gmra.mrb[12].mxu0 %vm978_vm2, %v1266_v29 }
 0x64d   : > { %5891 = vmatprep.mubr.msk.bf16.mxu0 %vm6935_vm0, %v6934_v31 }
 0x675   : > { %v1250_v37 = vpop.xlane.xlu1 %1249 }
 0x676   : > { %6525 = vrcp.f32 %v1250_v37 }
 0x679   : > { %v1417_v38 = vpop.permute.xlu1 %1416 }
 0x67a   : > { %v1422_v39 = vsel %vm883_vm1, %v1417_v38, 0 }
 0x67b   : > { %5890 = vmatpush3.bf16.xpose.msra.mxu0 %v1422_v39 }
 0x67c   : > { %5901 = vmatprep.subr.bf16.mxu0 %v6934_v31 }
 0x67d   : > { %v1415_v44 = vpop.permute.xlu1 %1414 }
 0x680   : > { %v6526_v41 = vpop.eup %6525 }
 0x681   : > { %v1262_v43 = vmul.f32 %v6526_v41, %v6518_v14 }
 0x682   : > { %5892 = vmatmul.mubr.msk.bf16.vlgmr.msra.gmra.mrb[16].mxu0 %vm883_vm1, %v1415_v44 }
 0x683   : > { %v1265_v45 = vpack.c.bf16 %v1262_v43, %v1261_v42  ;;  %5903 = vmatprep.mubr.msk.bf16.mxu0 %vm6935_vm0, %v6934_v31 }
 0x685   : > { %5874 = vmatmul.mubr.msk.bf16.vlgmr.msra.gmra.mrb[24].mxu1 %vm978_vm2, %v1265_v45 }
 0x686   : > { %5884 = vmatpush3.bf16.xpose.msra.mxu1 %v1371_v46  ;;  %5885 = vmatprep.mubr.msk.bf16.mxu1 %vm6935_vm0, %v6934_v31 }
 0x687   : > { %5895 = vmatprep.subr.bf16.mxu1 %v6934_v31 }
 0x68d   : > { %5886 = vmatmul.mubr.msk.bf16.vlgmr.msra.gmra.mrb[28].mxu1 %vm883_vm1, %v1364_v50 }
 0x68e   : > { %5897 = vmatprep.mubr.msk.bf16.mxu1 %vm6935_vm0, %v6934_v31 }
 0x71f   : > { %v7469_v51 = vpop.f32.mrb[12].mxu0 }
 0x720   : > { %v5881_v52 = vpop.f32.mrb[13].mxu0 }
 0x721   : > { %v7471_v53 = vpop.f32.mrb[14].mxu0 }
 0x722   : > { %v6200_v54 = vpack.i.bf16 %v7471_v53, %v7469_v51  ;;  %v5882_v55 = vpop.f32.mrb[15].mxu0 }
 0x755   : > { %v1458_v56 = vpop.f32.mrb[16].mxu0 }
 0x756   : > { %v5893_v57 = vpop.f32.mrb[17].mxu0  ;;  %v1459_v11 = vadd.f32 %v1458_v56, %v7379_v19 }
 0x757   : > { %v1461_v58 = vpop.f32.mrb[18].mxu0 }
 0x758   : > { %v7475_v59 = vpop.f32.mrb[24].mxu1  ;;  %v5894_v60 = vpop.f32.mrb[19].mxu0  ;;  %v1462_v17 = vadd.f32 %v1461_v58, %v7383_v22  ;;  %v1471_v18 = vsel %vm978_vm2, %v1459_v11, -inf }
 0x759   : > { %v5875_v62 = vpop.f32.mrb[25].mxu1 }
 0x75a   : > { %v7477_v63 = vpop.f32.mrb[26].mxu1  ;;  %v1474_v20 = vsel %vm978_vm2, %v1462_v17, -inf }
 0x75b   : > { %v6195_v2 = vpack.i.bf16 %v7477_v63, %v7475_v59  ;;  %v5876_v3 = vpop.f32.mrb[27].mxu1 }
 0x760   : > { %v1407_v4 = vpop.f32.mrb[28].mxu1 }
 0x761   : > { %v1408_v5 = vadd.f32 %v1407_v4, %v7370_v10  ;;  %v5887_v6 = vpop.f32.mrb[29].mxu1 }
 0x762   : > { %v1410_v7 = vpop.f32.mrb[30].mxu1 }
 0x763   : > { %v1411_v13 = vadd.f32 %v1410_v7, %v7373_v12  ;;  %v5888_v14 = vpop.f32.mrb[31].mxu1  ;;  %v1465_v15 = vsel %vm978_vm2, %v1408_v5, -inf }
 0x764   : > { %1466 = vmax.xlane.f32.xlu0 %v1465_v15 }
 0x765   : > { %v1468_v16 = vsel %vm978_vm2, %v1411_v13, -inf }
 0x766   : > { %1469 = vmax.xlane.f32.xlu1 %v1468_v16 }
 0x768   : > { %1472 = vmax.xlane.f32.xlu0 %v1471_v18 }
 0x76c   : > { %1475 = vmax.xlane.f32.xlu0 %v1474_v20 }
 0x7f1   : > { %v1467_v23 = vpop.xlane.xlu0 %1466 }
 0x7f2   : > { %v1477_v25 = vsub.f32 %v1408_v5, %v1467_v23 }
 0x7f3   : > { %v1470_v45 = vpop.xlane.xlu1 %1469 }
 0x7f4   : > { %v1481_v28 = vmul.f32 1.442695, %v1477_v25  ;;  %v1478_v46 = vsub.f32 %v1411_v13, %v1470_v45 }
 0x7f5   : > { %v1473_v26 = vpop.xlane.xlu0 %1472 }
 0x7f6   : > { %v1479_v27 = vsub.f32 %v1459_v11, %v1473_v26  ;;  %v1483_v50 = vmul.f32 1.442695, %v1478_v46 }
 0x7f8   : > { %v1485_v29 = vmul.f32 1.442695, %v1479_v27 }
 0x7f9   : > { %v1476_v32 = vpop.xlane.xlu0 %1475 }
 0x7fa   : > { %6527 = vpow2.f32 %v1485_v29  ;;  %v1480_v37 = vsub.f32 %v1462_v17, %v1476_v32 }
 0x7fb   : > { %6529 = vpow2.f32 %v1481_v28 }
 0x7fc   : > { %v1487_v38 = vmul.f32 1.442695, %v1480_v37 }
 0x7fe   : > { %6531 = vpow2.f32 %v1487_v38 }
 0x7ff   : > { %6533 = vpow2.f32 %v1483_v50 }
 0x804   : > { %v6528_v39 = vpop.eup %6527 }
 0x805   : > { %v1495_v40 = vsel %vm978_vm2, %v6528_v39, 0.0  ;;  %v6530_v41 = vpop.eup %6529 }
 0x806   : > { %1496 = vadd.xlane.f32.xlu0 %v1495_v40  ;;  %v1489_v43 = vsel %vm978_vm2, %v6530_v41, 0.0 }
 0x808   : > { %v6532_v42 = vpop.eup %6531 }
 0x809   : > { %v1498_v44 = vsel %vm978_vm2, %v6532_v42, 0.0  ;;  %v6534_v52 = vpop.eup %6533 }
 0x80a   : > { %1490 = vadd.xlane.f32.xlu0 %v1489_v43  ;;  %1499 = vadd.xlane.f32.xlu1 %v1498_v44  ;;  %v1492_v55 = vsel %vm978_vm2, %v6534_v52, 0.0 }
 0x81b   : > { %1558 = vrot.lane.b32.xlu1 %v7358_v8, %s6937_s23 }
 0x81f   : > { %1607 = vrot.lane.b32.xlu1 %v7342_v49, %s6938_s12 }
 0x820   : > { %1511 = vrot.lane.b32.xlu0 %v7360_v9, %s6937_s23 }
 0x824   : > { %1605 = vrot.lane.b32.xlu0 %v7337_v47, %s6938_s12 }
 0x843   : > { %1493 = vadd.xlane.f32.xlu1 %v1492_v55 }
 0x854   : > { %1658 = vrot.lane.b32.xlu1 %v7350_v1, %s6938_s12 }
 0x858   : > { %1656 = vrot.lane.b32.xlu1 %v7348_v61, %s6938_s12 }
 0x893   : > { %v1497_v49 = vpop.xlane.xlu0 %1496 }
 0x894   : > { %6535 = vrcp.f32 %v1497_v49 }
 0x897   : > { %v1491_v56 = vpop.xlane.xlu0 %1490  ;;  %v1500_v57 = vpop.xlane.xlu1 %1499 }
 0x898   : > { %6537 = vrcp.f32 %v1500_v57 }
 0x899   : > { %6539 = vrcp.f32 %v1491_v56 }
 0x89b   : > { %v1512_v47 = vpop.permute.xlu0 %1511  ;;  %v1559_v58 = vpop.permute.xlu1 %1558 }
 0x89c   : > { %5896 = vmatpush3.bf16.msra.mxu1 %v1512_v47  ;;  %5902 = vmatpush3.bf16.msra.mxu0 %v1559_v58 }
 0x89d   : > { %5913 = vmatprep.subr.bf16.mxu0 %v6934_v31  ;;  %5907 = vmatprep.subr.bf16.mxu1 %v6934_v31 }
 0x89e   : > { %v6536_v60 = vpop.eup %6535 }
 0x89f   : > { %v1507_v3 = vmul.f32 %v6536_v60, %v6528_v39  ;;  %v1608_v61 = vpop.permute.xlu1 %1607  ;;  %v1606_v20 = vpop.permute.xlu0 %1605 }
 0x8a0   : > { %v1613_v18 = vsel %vm883_vm1, %v1608_v61, 0 }
 0x8a2   : > { %v6538_v62 = vpop.eup %6537 }
 0x8a3   : > { %v1508_v1 = vmul.f32 %v6538_v62, %v6532_v42  ;;  %v6540_v11 = vpop.eup %6539 }
 0x8a4   : > { %v1505_v14 = vmul.f32 %v6540_v11, %v6530_v41 }
 0x8a5   : > { %v1510_v4 = vpack.c.bf16 %v1508_v1, %v1507_v3 }
 0x8a7   : > { %5904 = vmatmul.mubr.msk.bf16.vlgmr.msra.gmra.mrb[20].mxu0 %vm978_vm2, %v1510_v4 }
 0x8a8   : > { %5915 = vmatprep.mubr.msk.bf16.mxu0 %vm6935_vm0, %v6934_v31 }
 0x8d0   : > { %v1494_v5 = vpop.xlane.xlu1 %1493 }
 0x8d1   : > { %6541 = vrcp.f32 %v1494_v5 }
 0x8d4   : > { %v1659_v6 = vpop.permute.xlu1 %1658 }
 0x8d5   : > { %v1664_v7 = vsel %vm883_vm1, %v1659_v6, 0 }
 0x8d6   : > { %5914 = vmatpush3.bf16.xpose.msra.mxu0 %v1664_v7 }
 0x8d7   : > { %5925 = vmatprep.subr.bf16.mxu0 %v6934_v31 }
 0x8d8   : > { %v1657_v16 = vpop.permute.xlu1 %1656 }
 0x8db   : > { %v6542_v13 = vpop.eup %6541 }
 0x8dc   : > { %v1506_v15 = vmul.f32 %v6542_v13, %v6534_v52 }
 0x8dd   : > { %5916 = vmatmul.mubr.msk.bf16.vlgmr.msra.gmra.mrb[24].mxu0 %vm883_vm1, %v1657_v16 }
 0x8de   : > { %v1509_v17 = vpack.c.bf16 %v1506_v15, %v1505_v14  ;;  %5927 = vmatprep.mubr.msk.bf16.mxu0 %vm6935_vm0, %v6934_v31 }
 0x8e0   : > { %5898 = vmatmul.mubr.msk.bf16.vlgmr.msra.gmra.mrb[32].mxu1 %vm978_vm2, %v1509_v17 }
 0x8e1   : > { %5908 = vmatpush3.bf16.xpose.msra.mxu1 %v1613_v18  ;;  %5909 = vmatprep.mubr.msk.bf16.mxu1 %vm6935_vm0, %v6934_v31 }
 0x8e2   : > { %5919 = vmatprep.subr.bf16.mxu1 %v6934_v31 }
 0x8e8   : > { %5910 = vmatmul.mubr.msk.bf16.vlgmr.msra.gmra.mrb[36].mxu1 %vm883_vm1, %v1606_v20 }
 0x8e9   : > { %5921 = vmatprep.mubr.msk.bf16.mxu1 %vm6935_vm0, %v6934_v31 }
 0x97a   : > { %v7523_v23 = vpop.f32.mrb[20].mxu0 }
 0x97b   : > { %v5905_v25 = vpop.f32.mrb[21].mxu0 }
 0x97c   : > { %v1601_v26 = vpop.f32.mrb[22].mxu0 }
 0x97d   : > { %v6210_v27 = vpack.i.bf16 %v1601_v26, %v7523_v23  ;;  %v5906_v28 = vpop.f32.mrb[23].mxu0 }
 0x9b0   : > { %v1700_v29 = vpop.f32.mrb[24].mxu0 }
 0x9b1   : > { %v5917_v32 = vpop.f32.mrb[25].mxu0  ;;  %v1701_v52 = vadd.f32 %v1700_v29, %v7379_v19 }
 0x9b2   : > { %v1703_v37 = vpop.f32.mrb[26].mxu0 }
 0x9b3   : > { %v1551_v38 = vpop.f32.mrb[32].mxu1  ;;  %v5918_v39 = vpop.f32.mrb[27].mxu0  ;;  %v1704_v47 = vadd.f32 %v1703_v37, %v7383_v22  ;;  %v1713_v58 = vsel %vm978_vm2, %v1701_v52, -inf }
 0x9b4   : > { %v5899_v40 = vpop.f32.mrb[33].mxu1  ;;  %v6288_v39 = vld [vmem:[#allocation8 + $0x8] sm:$0xff]  }
 0x9b5   : > { %v1554_v41 = vpop.f32.mrb[34].mxu1  ;;  %v6289_v40 = vld [vmem:[#allocation8 + $0x10] sm:$0xff]  }
 0x9b6   : > { %v6205_v42 = vpack.i.bf16 %v1554_v41, %v1551_v38  ;;  %v5900_v43 = vpop.f32.mrb[35].mxu1  ;;  %v6287_v38 = vld [vmem:[#allocation8] sm:$0xff]   ;;  %v6290_v41 = vld [vmem:[#allocation8 + $0x18] sm:$0xff]  }
 0x9b7   : > { %v6292_v43 = vld [vmem:[#allocation8 + $0x28] sm:$0xff]  }
 0x9bb   : > { %v1649_v44 = vpop.f32.mrb[36].mxu1 }
 0x9bc   : > { %v1650_v45 = vadd.f32 %v1649_v44, %v7370_v10  ;;  %v5911_v46 = vpop.f32.mrb[37].mxu1  ;;  %v1716_v10 = vsel %vm978_vm2, %v1704_v47, -inf  ;;  %v6293_v44 = vld [vmem:[#allocation8 + $0x30] sm:$0xff]  }
 0x9bd   : > { %v1652_v50 = vpop.f32.mrb[38].mxu1 }
 0x9be   : > { %v1653_v55 = vadd.f32 %v1652_v50, %v7373_v12  ;;  %v5912_v49 = vpop.f32.mrb[39].mxu1  ;;  %v1707_v56 = vsel %vm978_vm2, %v1650_v45, -inf }
 0x9bf   : > { %1708 = vmax.xlane.f32.xlu0 %v1707_v56 }
 0x9c0   : > { %v1710_v57 = vsel %vm978_vm2, %v1653_v55, -inf }
 0x9c1   : > { %1711 = vmax.xlane.f32.xlu1 %v1710_v57 }
 0x9c3   : > { %1714 = vmax.xlane.f32.xlu0 %v1713_v58 }
 0x9c7   : > { %1717 = vmax.xlane.f32.xlu0 %v1716_v10 }
 0xa4c   : > { %v1709_v60 = vpop.xlane.xlu0 %1708 }
 0xa4d   : > { %v1719_v62 = vsub.f32 %v1650_v45, %v1709_v60  ;;  %v6294_v45 = vld [vmem:[#allocation8 + $0x38] sm:$0xff]  }
 0xa4e   : > { %v1712_v19 = vpop.xlane.xlu1 %1711 }
 0xa4f   : > { %v1723_v1 = vmul.f32 1.442695, %v1719_v62  ;;  %v1720_v4 = vsub.f32 %v1653_v55, %v1712_v19 }
 0xa50   : > { %v1715_v3 = vpop.xlane.xlu0 %1714 }
 0xa51   : > { %v1721_v12 = vsub.f32 %v1701_v52, %v1715_v3  ;;  %v1725_v7 = vmul.f32 1.442695, %v1720_v4 }
 0xa53   : > { %v1727_v61 = vmul.f32 1.442695, %v1721_v12 }
 0xa54   : > { %v1718_v5 = vpop.xlane.xlu0 %1717 }
 0xa55   : > { %6543 = vpow2.f32 %v1727_v61  ;;  %v1722_v6 = vsub.f32 %v1704_v47, %v1718_v5 }
 0xa56   : > { %6545 = vpow2.f32 %v1723_v1 }
 0xa57   : > { %v1729_v22 = vmul.f32 1.442695, %v1722_v6 }
 0xa59   : > { %6547 = vpow2.f32 %v1729_v22 }
 0xa5a   : > { %6549 = vpow2.f32 %v1725_v7 }
 0xa5f   : > { %v6544_v11 = vpop.eup %6543 }
 0xa60   : > { %v1737_v13 = vsel %vm978_vm2, %v6544_v11, 0.0  ;;  %v6546_v14 = vpop.eup %6545 }
 0xa61   : > { %1738 = vadd.xlane.f32.xlu0 %v1737_v13  ;;  %v1731_v16 = vsel %vm978_vm2, %v6546_v14, 0.0 }
 0xa63   : > { %v6548_v15 = vpop.eup %6547 }
 0xa64   : > { %v1740_v17 = vsel %vm978_vm2, %v6548_v15, 0.0  ;;  %v6550_v18 = vpop.eup %6549 }
 0xa65   : > { %1732 = vadd.xlane.f32.xlu0 %v1731_v16  ;;  %1741 = vadd.xlane.f32.xlu1 %v1740_v17  ;;  %v1734_v20 = vsel %vm978_vm2, %v6550_v18, 0.0 }
 0xa69   : > { %1735 = vadd.xlane.f32.xlu1 %v1734_v20 }
 0xa7a   : > { %1800 = vrot.lane.b32.xlu1 %v7358_v8, %s6938_s12 }
 0xa7b   : > { %1753 = vrot.lane.b32.xlu0 %v7360_v9, %s6938_s12 }
 0xa7e   : > { %6196 = vrot.lane.b32.xlu1 %v6195_v2, %s6938_s12 }
 0xa7f   : > { %6206 = vrot.lane.b32.xlu0 %v6205_v42, %s6937_s23  ;;  %v6291_v42 = vld [vmem:[#allocation8 + $0x20] sm:$0xff]  }
 0xa82   : > { %6201 = vrot.lane.b32.xlu1 %v6200_v54, %s6938_s12 }
 0xa86   : > { %6211 = vrot.lane.b32.xlu1 %v6210_v27, %s6937_s23 }
 0xaee   : > { %v1739_v23 = vpop.xlane.xlu0 %1738 }
 0xaef   : > { %6551 = vrcp.f32 %v1739_v23 }
 0xaf2   : > { %v1733_v8 = vpop.xlane.xlu0 %1732  ;;  %v1742_v25 = vpop.xlane.xlu1 %1741 }
 0xaf3   : > { %6553 = vrcp.f32 %v1742_v25 }
 0xaf4   : > { %6555 = vrcp.f32 %v1733_v8 }
 0xaf6   : > { %v1754_v9 = vpop.permute.xlu0 %1753  ;;  %v1736_v26 = vpop.xlane.xlu1 %1735 }
 0xaf7   : > { %6557 = vrcp.f32 %v1736_v26  ;;  %5920 = vmatpush3.bf16.msra.mxu1 %v1754_v9 }
 0xaf8   : > { %5931 = vmatprep.subr.bf16.mxu1 %v6287_v38 }
 0xaf9   : > { %v6552_v63 = vpop.eup %6551 }
 0xafa   : > { %v1801_v59 = vpop.permute.xlu1 %1800  ;;  %v1749_v29 = vmul.f32 %v6552_v63, %v6544_v11  ;;  %v6207_v6 = vpop.permute.xlu0 %6206 }
 0xafb   : > { %5926 = vmatpush3.bf16.msra.mxu0 %v1801_v59  ;;  %v6209_v20 = vunpack.i.h.bf16 %v6207_v6  ;;  %v6208_v23 = vunpack.i.l.bf16 %v6207_v6 }
 0xafd   : > { %v6554_v2 = vpop.eup %6553 }
 0xafe   : > { %v6556_v28 = vpop.eup %6555  ;;  %v1750_v51 = vmul.f32 %v6554_v2, %v6548_v15  ;;  %v6197_v60 = vpop.permute.xlu1 %6196 }
 0xaff   : > { %v1747_v27 = vmul.f32 %v6556_v28, %v6546_v14  ;;  %v6199_v1 = vunpack.i.h.bf16 %v6197_v60  ;;  %v6198_v4 = vunpack.i.l.bf16 %v6197_v60  ;;  %v5383_v28 = vld [vmem:[%s8043_s5] ss:$0 sm:$0xff] }
 0xb00   : > { %v1752_v54 = vpack.c.bf16 %v1750_v51, %v1749_v29 }
 0xb01   : > { %v6558_v53 = vpop.eup %6557  ;;  %v1896_v15 = vsel %vm883_vm1, %v7421_v24, %v6199_v1  ;;  %v1895_v16 = vsel %vm883_vm1, %v7419_v21, %v6198_v4 }
 0xb02   : > { %v1748_v32 = vmul.f32 %v6558_v53, %v6550_v18  ;;  %5928 = vmatmul.mubr.msk.bf16.vlgmr.msra.gmra.mrb[28].mxu0 %vm978_vm2, %v1752_v54  ;;  %v6202_v62 = vpop.permute.xlu1 %6201  ;;  %v1900_v59 = vsel %vm1899_vm3, %v1895_v16, %v6208_v23  ;;  %v1901_v24 = vsel %vm1899_vm3, %v1896_v15, %v6209_v20  ;;  %v6309_v15 = vld [vmem:[#allocation10 + $0x44] ss:$16 sps:$4 sm:$0xff]   ;;  %v6312_v16 = vld [vmem:[#allocation10 + $0x4c] ss:$16 sps:$4 sm:$0xff]  }
 0xb03   : > { %2350 = vmatprep.mubr.bf16.mxu0 %v6933_v0  ;;  %v6204_v3 = vunpack.i.h.bf16 %v6202_v62  ;;  %v6203_v12 = vunpack.i.l.bf16 %v6202_v62  ;;  %v6315_v20 = vld [vmem:[#allocation10 + $0x64] ss:$16 sps:$4 sm:$0xff]   ;;  %v6318_v23 = vld [vmem:[#allocation10 + $0x6c] ss:$16 sps:$4 sm:$0xff]  }
 0xb04   : > { %v1751_v37 = vpack.c.bf16 %v1748_v32, %v1747_v27 }
 0xb05   : > { %v1898_v22 = vsel %vm883_vm1, %v7425_v35, %v6204_v3  ;;  %v1897_v11 = vsel %vm883_vm1, %v7423_v30, %v6203_v12 }
 0xb06   : > { %5922 = vmatmul.mubr.msk.bf16.vlgmr.msra.gmra.mrb[40].mxu1 %vm978_vm2, %v1751_v37  ;;  %v6212_v19 = vpop.permute.xlu1 %6211 }
 0xb07   : > { %5932 = vmatpush3.bf16.msra.mxu1 %v6287_v38  ;;  %v6214_v61 = vunpack.i.h.bf16 %v6212_v19  ;;  %v6213_v5 = vunpack.i.l.bf16 %v6212_v19  ;;  %v6655_v38 = vld [vmem:[%s7286_s18] sm:$0xff] }
 0xb08   : > { %5933 = vmatprep.subr.bf16.mxu1 %v6288_v39 }
 0xb09   : > { %v1902_v17 = vsel %vm1899_vm3, %v1897_v11, %v6213_v5  ;;  %v1903_v18 = vsel %vm1899_vm3, %v1898_v22, %v6214_v61 }
 0xb0b   : > { %5934 = vmatpush3.bf16.msra.mxu1 %v6288_v39 }
 0xb0c   : > { %5935 = vmatprep.subr.bf16.mxu1 %v6289_v40 }
 0xb0f   : > { %5936 = vmatpush3.bf16.msra.mxu1 %v6289_v40  ;;  %v6656_v40 = vld [vmem:[%s7286_s18 + $0x8] sm:$0xff] }
 0xb10   : > { %5937 = vmatprep.subr.bf16.mxu1 %v6290_v41 }
 0xb13   : > { %5938 = vmatpush3.bf16.msra.mxu1 %v6290_v41 }
 0xb14   : > { %5939 = vmatprep.subr.bf16.mxu1 %v6291_v42 }
 0xb17   : > { %5940 = vmatpush3.bf16.msra.mxu1 %v6291_v42 }
 0xb18   : > { %5941 = vmatprep.subr.bf16.mxu1 %v6292_v43 }
 0xb1b   : > { %5942 = vmatpush3.bf16.msra.mxu1 %v6292_v43  ;;  %v6657_v43 = vld [vmem:[%s7286_s18 + $0x10] sm:$0xff] }
 0xb1c   : > { %5943 = vmatprep.subr.bf16.mxu1 %v6293_v44 }
 0xb1f   : > { %5944 = vmatpush3.bf16.msra.mxu1 %v6293_v44 }
 0xb20   : > { %5945 = vmatprep.subr.bf16.mxu1 %v6294_v45 }
 0xb23   : > { %5946 = vmatpush3.bf16.msra.mxu1 %v6294_v45  ;;  %v6658_v45 = vld [vmem:[%s7286_s18 + $0x18] sm:$0xff] }
 0xbd5   : > { %v1840_v46 = vpop.f32.mrb[28].mxu0 }
 0xbd6   : > { %v5929_v50 = vpop.f32.mrb[29].mxu0 }
 0xbd7   : > { %v1843_v52 = vpop.f32.mrb[30].mxu0  ;;  %v6295_v50 = vld [vmem:[#allocation10] ss:$16 sps:$4 sm:$0xff]  }
 0xbd8   : > { %v6220_v55 = vpack.i.bf16 %v1843_v52, %v1840_v46  ;;  %v5930_v49 = vpop.f32.mrb[31].mxu0  ;;  %v6297_v52 = vld [vmem:[#allocation10 + $0x4] ss:$16 sps:$4 sm:$0xff]  }
 0xbd9   : > { %v1793_v56 = vpop.f32.mrb[40].mxu1  ;;  %v6300_v49 = vld [vmem:[#allocation10 + $0xc] ss:$16 sps:$4 sm:$0xff]   ;;  %2318 = vmatprep.subr.bf16.mxu0 %v6297_v52 }
 0xbda   : > { %v5923_v57 = vpop.f32.mrb[41].mxu1  ;;  %6221 = vrot.lane.b32.xlu1 %v6220_v55, %s6936_s24  ;;  %v6298_v55 = vld [vmem:[#allocation10 + $0x8] ss:$16 sps:$4 sm:$0xff]   ;;  %2371 = vmatprep.subr.bf16.mxu1 %v6300_v49 }
 0xbdb   : > { %v1796_v47 = vpop.f32.mrb[42].mxu1  ;;  %v6306_v57 = vld [vmem:[#allocation10 + $0x2c] ss:$16 sps:$4 sm:$0xff]   ;;  %2319 = vmatpush1.bf16.msra.mxu0 %v6295_v50 }
 0xbdc   : > { %v6215_v58 = vpack.i.bf16 %v1796_v47, %v1793_v56  ;;  %v5924_v10 = vpop.f32.mrb[43].mxu1  ;;  %v6303_v56 = vld [vmem:[#allocation10 + $0x24] ss:$16 sps:$4 sm:$0xff]   ;;  %v6301_v47 = vld [vmem:[#allocation10 + $0x20] ss:$16 sps:$4 sm:$0xff]  }
 0xbdd   : > { %2320 = vmatprep.subr.bf16.mxu0 %v6303_v56 }
 0xbde   : > { %6216 = vrot.lane.b32.xlu0 %v6215_v58, %s6936_s24  ;;  %v6304_v58 = vld [vmem:[#allocation10 + $0x28] ss:$16 sps:$4 sm:$0xff]  }
 0xbdf   : > { %2321 = vmatpush1.bf16.msra.mxu0 %v6301_v47 }
 0xbe0   : > { %2322 = vmatprep.subr.bf16.mxu0 %v6309_v15  ;;  %v6348_v15 = vld [vmem:[#allocation11 + $0xc8] sm:$0xff]  }
 0xc4c   : > { %v6222_v7 = vpop.permute.xlu1 %6221 }
 0xc4d   : > { %v6224_v13 = vunpack.i.h.bf16 %v6222_v7  ;;  %v6223_v14 = vunpack.i.l.bf16 %v6222_v7 }
 0xc4f   : > { %v1907_v8 = vsel %vm1904_vm4, %v1902_v17, %v6223_v14  ;;  %v1908_v35 = vsel %vm1904_vm4, %v1903_v18, %v6224_v13  ;;  %v6307_v17 = vld [vmem:[#allocation10 + $0x40] ss:$16 sps:$4 sm:$0xff]   ;;  %v6310_v18 = vld [vmem:[#allocation10 + $0x48] ss:$16 sps:$4 sm:$0xff]  }
 0xc50   : > { %v6217_v25 = vpop.permute.xlu0 %6216  ;;  %v1910_v30 = vpack.c.bf16 %v1908_v35, %v1907_v8  ;;  %2323 = vmatpush1.bf16.msra.mxu0 %v6307_v17  ;;  %v6313_v8 = vld [vmem:[#allocation10 + $0x60] ss:$16 sps:$4 sm:$0xff]   ;;  %v6316_v35 = vld [vmem:[#allocation10 + $0x68] ss:$16 sps:$4 sm:$0xff]  }
 0xc51   : > { %v6219_v9 = vunpack.i.h.bf16 %v6217_v25  ;;  %v6218_v26 = vunpack.i.l.bf16 %v6217_v25  ;;  %2324 = vmatprep.subr.bf16.mxu0 %v6315_v20  ;;  %v6321_v25 = vld [vmem:[#allocation10 + $0x84] ss:$16 sps:$4 sm:$0xff]   ;;  %v6350_v20 = vld [vmem:[#allocation11 + $0x88] sm:$0xff]  }
 0xc53   : > { %v1905_v21 = vsel %vm1904_vm4, %v1900_v59, %v6218_v26  ;;  %v1906_v63 = vsel %vm1904_vm4, %v1901_v24, %v6219_v9  ;;  %v6319_v9 = vld [vmem:[#allocation10 + $0x80] ss:$16 sps:$4 sm:$0xff]   ;;  %v6322_v26 = vld [vmem:[#allocation10 + $0x88] ss:$16 sps:$4 sm:$0xff]   ;;  %v6327_v59 = vld [vmem:[#allocation10 + $0xa4] ss:$16 sps:$4 sm:$0xff]  }
 0xc54   : > { %v1909_v2 = vpack.c.bf16 %v1906_v63, %v1905_v21  ;;  %2325 = vmatpush1.bf16.msra.mxu0 %v6313_v8  ;;  %v6330_v24 = vld [vmem:[#allocation10 + $0xac] ss:$16 sps:$4 sm:$0xff]   ;;  %v6325_v21 = vld [vmem:[#allocation10 + $0xa0] ss:$16 sps:$4 sm:$0xff]   ;;  %v6328_v63 = vld [vmem:[#allocation10 + $0xa8] ss:$16 sps:$4 sm:$0xff]  }
 0xc55   : > { %2326 = vmatprep.subr.bf16.mxu0 %v6321_v25  ;;  %v6353_v25 = vld [vmem:[#allocation11 + $0x10] sm:$0xff]  }
 0xc56   : > { %5947 = vmatprep.mubr.bf16.mxu1 %v1909_v2  ;;  %v6333_v2 = vld [vmem:[#allocation10 + $0xc4] ss:$16 sps:$4 sm:$0xff]  }
 0xc57   : > { %5948 = vmatmul.mubr.bf16.vlgmr.msra.gmra.mrb[44].mxu1 %v1910_v30  ;;  %v6324_v30 = vld [vmem:[#allocation10 + $0x8c] ss:$16 sps:$4 sm:$0xff]  }
 0xc58   : > { %2403 = vmatprep.mubr.bf16.mxu1 %v6933_v0  ;;  %2372 = vmatpush1.bf16.msra.mxu1 %v6298_v55 }
 0xc59   : > { %2373 = vmatprep.subr.bf16.mxu1 %v6306_v57  ;;  %2327 = vmatpush1.bf16.msra.mxu0 %v6319_v9  ;;  %v5392_v57 = vld [vmem:[%s8044_s6] ss:$0 sm:$0xff]  ;;  %v6355_v9 = vld [vmem:[#allocation11 + $0x58] sm:$0xff]  }
 0xc5a   : > { %2328 = vmatprep.subr.bf16.mxu0 %v6327_v59  ;;  %v6357_v59 = vld [vmem:[#allocation11 + $0x18] sm:$0xff]  }
 0xc5c   : > { %2374 = vmatpush1.bf16.msra.mxu1 %v6304_v58 }
 0xc5d   : > { %2375 = vmatprep.subr.bf16.mxu1 %v6312_v16  ;;  %2329 = vmatpush1.bf16.msra.mxu0 %v6325_v21  ;;  %v6359_v21 = vld [vmem:[#allocation11 + $0x60] sm:$0xff]  }
 0xc5e   : > { %2330 = vmatprep.subr.bf16.mxu0 %v6333_v2  ;;  %v6361_v2 = vld [vmem:[#allocation11 + $0x20] sm:$0xff]  }
 0xc60   : > { %2376 = vmatpush1.bf16.msra.mxu1 %v6310_v18 }
 0xc61   : > { %2377 = vmatprep.subr.bf16.mxu1 %v6318_v23  ;;  %v6352_v23 = vld [vmem:[#allocation11 + $0xd0] sm:$0xff]  }
 0xc64   : > { %2378 = vmatpush1.bf16.msra.mxu1 %v6316_v35 }
 0xc65   : > { %2379 = vmatprep.subr.bf16.mxu1 %v6324_v30  ;;  %v6354_v30 = vld [vmem:[#allocation11 + $0x90] sm:$0xff]  }
 0xc68   : > { %2380 = vmatpush1.bf16.msra.mxu1 %v6322_v26  ;;  %v6356_v26 = vld [vmem:[#allocation11 + $0xd8] sm:$0xff]  }
 0xc69   : > { %2381 = vmatprep.subr.bf16.mxu1 %v6330_v24  ;;  %v6358_v24 = vld [vmem:[#allocation11 + $0x98] sm:$0xff]  }
 0xc6c   : > { %2382 = vmatpush1.bf16.msra.mxu1 %v6328_v63  ;;  %v6360_v63 = vld [vmem:[#allocation11 + $0xe0] sm:$0xff]  }
 0xd2a   : > { %v5949_v29 = vpop.f32.mrb[44].mxu1 }
 0xd2b   : > { %v2016_v51 = vpop.f32.mrb[45].mxu1  ;;  %v2025_v32 = vadd.f32 %v5949_v29, %v5383_v28  ;;  %v6331_v29 = vld [vmem:[#allocation10 + $0xc0] ss:$16 sps:$4 sm:$0xff]  }
 0xd2c   : > { %v2017_v53 = vadd.f32 %v5383_v28, %v2016_v51  ;;  %v5950_v54 = vpop.f32.mrb[46].mxu1  ;;  %v6334_v51 = vld [vmem:[#allocation10 + $0xc8] ss:$16 sps:$4 sm:$0xff]   ;;  %2331 = vmatpush1.bf16.msra.mxu0 %v6331_v29 }
 0xd2d   : > { %v2019_v27 = vpop.f32.mrb[47].mxu1  ;;  %v2028_v42 = vadd.f32 %v5950_v54, %v5383_v28  ;;  %v2033_v44 = vadd.f32 %v6657_v43, %v2025_v32  ;;  %v6342_v54 = vld [vmem:[#allocation10 + $0xec] ss:$16 sps:$4 sm:$0xff]   ;;  %v6340_v32 = vld [vmem:[#allocation10 + $0xe8] ss:$16 sps:$4 sm:$0xff]  }
 0xd2e   : > { %v2020_v37 = vadd.f32 %v5383_v28, %v2019_v27  ;;  %v2031_v39 = vadd.f32 %v6655_v38, %v2017_v53  ;;  %v6336_v28 = vld [vmem:[#allocation10 + $0xcc] ss:$16 sps:$4 sm:$0xff]   ;;  %v6339_v53 = vld [vmem:[#allocation10 + $0xe4] ss:$16 sps:$4 sm:$0xff]   ;;  %v6337_v27 = vld [vmem:[#allocation10 + $0xe0] ss:$16 sps:$4 sm:$0xff]  }
 0xd2f   : > { %v2034_v46 = vadd.f32 %v6658_v45, %v2028_v42  ;;  %2383 = vmatprep.subr.bf16.mxu1 %v6336_v28  ;;  %2332 = vmatprep.subr.bf16.mxu0 %v6339_v53  ;;  %v6344_v38 = vld [vmem:[#allocation11 + $0xc0] sm:$0xff]   ;;  %v6363_v29 = vld [vmem:[#allocation11 + $0x68] sm:$0xff]  }
 0xd30   : > { %2037 = vadd.xlane.f32.xlu0 %v2031_v39  ;;  %v2032_v41 = vadd.f32 %v6656_v40, %v2020_v37  ;;  %2384 = vmatpush1.bf16.msra.mxu1 %v6334_v51  ;;  %v6343_v37 = vld [vmem:[#allocation11 + $0x40] sm:$0xff]   ;;  %v6364_v51 = vld [vmem:[#allocation11 + $0xe8] sm:$0xff]  }
 0xd31   : > { %2385 = vmatprep.subr.bf16.mxu1 %v6342_v54  ;;  %2333 = vmatpush1.bf16.msra.mxu0 %v6337_v27  ;;  %v6362_v28 = vld [vmem:[#allocation11 + $0xa0] sm:$0xff]   ;;  %v6365_v53 = vld [vmem:[#allocation11 + $0x28] sm:$0xff]   ;;  %v6367_v27 = vld [vmem:[#allocation11 + $0x70] sm:$0xff]  }
 0xd32   : > { %2039 = vadd.xlane.f32.xlu1 %v2032_v41  ;;  %5651 = vmatprep.subr.bf16.mxu0 %v6343_v37  ;;  %v6366_v54 = vld [vmem:[#allocation11 + $0xa8] sm:$0xff]   ;;  %v6369_v37 = vld [vmem:[#allocation11 + $0x30] sm:$0xff]  }
 0xd34   : > { %2041 = vadd.xlane.f32.xlu0 %v2033_v44  ;;  %2386 = vmatpush1.bf16.msra.mxu1 %v6340_v32  ;;  %v6368_v32 = vld [vmem:[#allocation11 + $0xf0] sm:$0xff]  }
 0xd35   : > { %5679 = vmatprep.subr.bf16.mxu1 %v6344_v38  ;;  %v6370_v38 = vld [vmem:[#allocation11 + $0xb0] sm:$0xff]  }
 0xd38   : > { %2043 = vadd.xlane.f32.xlu0 %v2034_v46 }
 0xdbd   : > { %v2038_v10 = vpop.xlane.xlu0 %2037 }
 0xdbe   : > { %v2046_v60 = vmul.f32 0.0078125, %v2038_v10 }
 0xdbf   : > { %v2040_v62 = vpop.xlane.xlu1 %2039 }
 0xdc0   : > { %v7581_v19 = vsub.f32 %v2031_v39, %v2046_v60  ;;  %v2047_v3 = vmul.f32 0.0078125, %v2040_v62 }
 0xdc1   : > { %v2042_v12 = vpop.xlane.xlu0 %2041 }
 0xdc2   : > { %v7583_v1 = vsub.f32 %v2032_v41, %v2047_v3  ;;  %v2048_v4 = vmul.f32 0.0078125, %v2042_v12  ;;  %v2054_v61 = vmul.f32 %v7581_v19, %v7581_v19  ;;  %v5393_v3 = vld [vmem:[%s8045_s7] ss:$0 sm:$0xff] }
 0xdc4   : > { %v7587_v5 = vsub.f32 %v2033_v44, %v2048_v4  ;;  %2058 = vadd.xlane.f32.xlu0 %v2054_v61  ;;  %v2055_v6 = vmul.f32 %v7583_v1, %v7583_v1 }
 0xdc5   : > { %v2044_v7 = vpop.xlane.xlu0 %2043 }
 0xdc6   : > { %v2049_v22 = vmul.f32 0.0078125, %v2044_v7  ;;  %2060 = vadd.xlane.f32.xlu1 %v2055_v6  ;;  %v2056_v11 = vmul.f32 %v7587_v5, %v7587_v5 }
 0xdc8   : > { %v7593_v13 = vsub.f32 %v2034_v46, %v2049_v22  ;;  %2062 = vadd.xlane.f32.xlu0 %v2056_v11  ;;  %v6346_v11 = vld [vmem:[#allocation11 + $0x80] sm:$0xff]  }
 0xdca   : > { %v2057_v14 = vmul.f32 %v7593_v13, %v7593_v13 }
 0xdcc   : > { %2064 = vadd.xlane.f32.xlu1 %v2057_v14  ;;  %v6347_v14 = vld [vmem:[#allocation11 + $0x48] sm:$0xff]  }
 0xe51   : > { %v2059_v39 = vpop.xlane.xlu0 %2058 }
 0xe52   : > { %v2066_v40 = vmul.f32 0.0078125, %v2059_v39  ;;  %v6371_v39 = vld [vmem:[#allocation11 + $0x78] sm:$0xff]  }
 0xe53   : > { %v2061_v41 = vpop.xlane.xlu1 %2060 }
 0xe54   : > { %v2070_v42 = vadd.f32 1e-05, %v2066_v40  ;;  %v2067_v43 = vmul.f32 0.0078125, %v2061_v41  ;;  %v6372_v40 = vld [vmem:[#allocation11 + $0xf8] sm:$0xff]  }
 0xe55   : > { %v2063_v44 = vpop.xlane.xlu0 %2062  ;;  %v6373_v41 = vld [vmem:[#allocation11 + $0x38] sm:$0xff]  }
 0xe56   : > { %6559 = vrsqrt.f32 %v2070_v42  ;;  %v2071_v45 = vadd.f32 1e-05, %v2067_v43  ;;  %v2068_v46 = vmul.f32 0.0078125, %v2063_v44  ;;  %v6374_v42 = vld [vmem:[#allocation11 + $0xb8] sm:$0xff]   ;;  %v2136_v43 = vld [vmem:[%s8098_s4] sm:$0xf] }
 0xe57   : > { %v2152_v44 = vsub.s32 3, %v7324_v33 }
 0xe58   : > { %6561 = vrsqrt.f32 %v2071_v45  ;;  %v2072_v50 = vadd.f32 1e-05, %v2068_v46  ;;  %v2141_v45 = vrot.slane %v2136_v43, %v7327_v34  ;;  %v2149_v46 = vrot.slane %v2136_v43, %v7340_v48 }
 0xe59   : > { %v2065_v52 = vpop.xlane.xlu1 %2064 }
 0xe5a   : > { %6563 = vrsqrt.f32 %v2072_v50  ;;  %v2069_v55 = vmul.f32 0.0078125, %v2065_v52  ;;  %v2145_v50 = vrot.slane %v2136_v43, %v7333_v36  ;;  %v2153_v52 = vrot.slane %v2136_v43, %v2152_v44 }
 0xe5c   : > { %v2073_v49 = vadd.f32 1e-05, %v2069_v55 }
 0xe5e   : > { %6565 = vrsqrt.f32 %v2073_v49 }
 0xe60   : > { %v6560_v56 = vpop.eup %6559 }
 0xe61   : > { %v2078_v47 = vmul.f32 %v6560_v56, %v7581_v19 }
 0xe62   : > { %v6562_v58 = vpop.eup %6561 }
 0xe63   : > { %v2079_v10 = vmul.f32 %v6562_v58, %v7583_v1  ;;  %v2088_v60 = vmul.f32 %v5392_v57, %v2078_v47  ;;  %v6345_v1 = vld [vmem:[#allocation11] sm:$0xff]  }
 0xe64   : > { %v6564_v62 = vpop.eup %6563 }
 0xe65   : > { %v2089_v12 = vmul.f32 %v5392_v57, %v2079_v10  ;;  %v7605_v4 = vadd.f32 %v5393_v3, %v2088_v60  ;;  %v2080_v6 = vmul.f32 %v6564_v62, %v7587_v5  ;;  %v6349_v5 = vld [vmem:[#allocation11 + $0x8] sm:$0xff]  }
 0xe67   : > { %v7607_v61 = vadd.f32 %v5393_v3, %v2089_v12  ;;  %v2090_v16 = vmul.f32 %v5392_v57, %v2080_v6 }
 0xe68   : > { %v6566_v7 = vpop.eup %6565 }
 0xe69   : > { %v2102_v19 = vpack.c.bf16 %v7607_v61, %v7605_v4  ;;  %v2081_v22 = vmul.f32 %v6566_v7, %v7593_v13  ;;  %v6351_v13 = vld [vmem:[#allocation11 + $0x50] sm:$0xff]   ;;  %v7617_v8 = vadd.f32 %v5393_v3, %v2090_v16 }
 0xe6b   : > { %2351 = vmatmul.mubr.bf16.vlgmr.msra.gmra.mrb[32].mxu0 %v2102_v19  ;;  %2404 = vmatmul.mubr.bf16.vlgmr.msra.gmra.mrb[48].mxu1 %v2102_v19  ;;  %v2091_v17 = vmul.f32 %v5392_v57, %v2081_v22 }
 0xe6c   : > { %2360 = vmatprep.mubr.bf16.mxu0 %v6933_v0  ;;  %2413 = vmatprep.mubr.bf16.mxu1 %v6933_v0 }
 0xe6d   : > { %v7615_v18 = vadd.f32 %v5393_v3, %v2091_v17  ;;  %5652 = vmatpush3.bf16.msra.mxu0 %v6345_v1  ;;  %5680 = vmatpush3.bf16.msra.mxu1 %v6346_v11 }
 0xe6e   : > { %5653 = vmatprep.subr.bf16.mxu0 %v6347_v14  ;;  %5681 = vmatprep.subr.bf16.mxu1 %v6348_v15 }
 0xe6f   : > { %v2103_v35 = vpack.c.bf16 %v7615_v18, %v7617_v8 }
 0xe71   : > { %5654 = vmatpush3.bf16.msra.mxu0 %v6349_v5  ;;  %5682 = vmatpush3.bf16.msra.mxu1 %v6350_v20 }
 0xe72   : > { %5655 = vmatprep.subr.bf16.mxu0 %v6351_v13  ;;  %5683 = vmatprep.subr.bf16.mxu1 %v6352_v23 }
 0xe73   : > { %2361 = vmatmul.mubr.bf16.gmra.mrb[36].mxu0 %v2103_v35  ;;  %2414 = vmatmul.mubr.bf16.gmra.mrb[52].mxu1 %v2103_v35 }
 0xe75   : > { %5656 = vmatpush3.bf16.msra.mxu0 %v6353_v25  ;;  %5684 = vmatpush3.bf16.msra.mxu1 %v6354_v30 }
 0xe76   : > { %5657 = vmatprep.subr.bf16.mxu0 %v6355_v9  ;;  %5685 = vmatprep.subr.bf16.mxu1 %v6356_v26 }
 0xe79   : > { %5658 = vmatpush3.bf16.msra.mxu0 %v6357_v59  ;;  %5686 = vmatpush3.bf16.msra.mxu1 %v6358_v24 }
 0xe7a   : > { %5659 = vmatprep.subr.bf16.mxu0 %v6359_v21  ;;  %5687 = vmatprep.subr.bf16.mxu1 %v6360_v63 }
 0xe7d   : > { %5660 = vmatpush3.bf16.msra.mxu0 %v6361_v2  ;;  %5688 = vmatpush3.bf16.msra.mxu1 %v6362_v28 }
 0xe7e   : > { %5661 = vmatprep.subr.bf16.mxu0 %v6363_v29  ;;  %5689 = vmatprep.subr.bf16.mxu1 %v6364_v51 }
 0xe81   : > { %5662 = vmatpush3.bf16.msra.mxu0 %v6365_v53  ;;  %5690 = vmatpush3.bf16.msra.mxu1 %v6366_v54 }
 0xe82   : > { %5663 = vmatprep.subr.bf16.mxu0 %v6367_v27  ;;  %5691 = vmatprep.subr.bf16.mxu1 %v6368_v32 }
 0xe85   : > { %5664 = vmatpush3.bf16.msra.mxu0 %v6369_v37  ;;  %5692 = vmatpush3.bf16.msra.mxu1 %v6370_v38 }
 0xe86   : > { %5665 = vmatprep.subr.bf16.mxu0 %v6371_v39  ;;  %5693 = vmatprep.subr.bf16.mxu1 %v6372_v40 }
 0xe89   : > { %5666 = vmatpush3.bf16.msra.mxu0 %v6373_v41  ;;  %5694 = vmatpush3.bf16.msra.mxu1 %v6374_v42 }
 0xf3e   : > { %v2352_v55 = vpop.f32.mrb[32].mxu0  ;;  %v2405_v49 = vpop.f32.mrb[48].mxu1 }
 0xf3f   : > { %v2353_v56 = vadd.f32 %v2352_v55, %v2141_v45  ;;  %v2406_v57 = vadd.f32 %v2405_v49, %v2149_v46  ;;  %v2354_v47 = vpop.f32.mrb[33].mxu0  ;;  %v2407_v58 = vpop.f32.mrb[49].mxu1 }
 0xf40   : > { %v2355_v10 = vadd.f32 %v2354_v47, %v2145_v50  ;;  %v2408_v60 = vadd.f32 %v2407_v58, %v2153_v52  ;;  %v2356_v62 = vpop.f32.mrb[34].mxu0  ;;  %v2409_v3 = vpop.f32.mrb[50].mxu1 }
 0xf41   : > { %v2357_v12 = vadd.f32 %v2356_v62, %v2141_v45  ;;  %v2410_v6 = vadd.f32 %v2409_v3, %v2149_v46  ;;  %v2358_v7 = vpop.f32.mrb[35].mxu0  ;;  %v2411_v19 = vpop.f32.mrb[51].mxu1  ;;  %v2424_v11 = vmax.f32 %v2353_v56, 0.0  ;;  %v2426_v14 = vmax.f32 %v2406_v57, 0.0 }
 0xf42   : > { %v2359_v22 = vadd.f32 %v2358_v7, %v2145_v50  ;;  %v2412_v1 = vadd.f32 %v2411_v19, %v2153_v52  ;;  %v2425_v17 = vmax.f32 %v2355_v10, 0.0  ;;  %v2427_v5 = vmax.f32 %v2408_v60, 0.0 }
 0xf43   : > { %v2428_v15 = vmax.f32 %v2357_v12, 0.0  ;;  %v2430_v16 = vmax.f32 %v2410_v6, 0.0 }
 0xf44   : > { %v2429_v20 = vmax.f32 %v2359_v22, 0.0  ;;  %v2431_v13 = vmax.f32 %v2412_v1, 0.0 }
 0xf45   : > { %v2440_v23 = vpack.c.bf16 %v2428_v15, %v2424_v11  ;;  %v2442_v35 = vpack.c.bf16 %v2430_v16, %v2426_v14 }
 0xf46   : > { %v2441_v25 = vpack.c.bf16 %v2429_v20, %v2425_v17  ;;  %v2443_v30 = vpack.c.bf16 %v2431_v13, %v2427_v5  ;;  %v2362_v9 = vpop.f32.mrb[36].mxu0  ;;  %v2415_v26 = vpop.f32.mrb[52].mxu1 }
 0xf47   : > { %v2363_v59 = vadd.f32 %v2362_v9, %v2141_v45  ;;  %v2416_v24 = vadd.f32 %v2415_v26, %v2149_v46  ;;  %v2364_v21 = vpop.f32.mrb[37].mxu0  ;;  %v2417_v63 = vpop.f32.mrb[53].mxu1 }
 0xf48   : > { %v2365_v2 = vadd.f32 %v2364_v21, %v2145_v50  ;;  %v2418_v28 = vadd.f32 %v2417_v63, %v2153_v52  ;;  %v2366_v29 = vpop.f32.mrb[38].mxu0  ;;  %v2419_v51 = vpop.f32.mrb[54].mxu1  ;;  %2743 = vmatprep.mubr.bf16.mxu0 %v2441_v25  ;;  %2792 = vmatprep.mubr.bf16.mxu1 %v2443_v30 }
 0xf49   : > { %v2367_v53 = vadd.f32 %v2366_v29, %v2141_v45  ;;  %v2420_v54 = vadd.f32 %v2419_v51, %v2149_v46  ;;  %v2368_v27 = vpop.f32.mrb[39].mxu0  ;;  %v2421_v32 = vpop.f32.mrb[55].mxu1  ;;  %2744 = vmatmul.mubr.bf16.vlgmr.msra.gmra.mrb[40].mxu0 %v2440_v23  ;;  %2793 = vmatmul.mubr.bf16.vlgmr.msra.gmra.mrb[56].mxu1 %v2442_v35  ;;  %v2432_v39 = vmax.f32 %v2363_v59, 0.0  ;;  %v2434_v40 = vmax.f32 %v2416_v24, 0.0 }
 0xf4a   : > { %v2369_v37 = vadd.f32 %v2368_v27, %v2145_v50  ;;  %v2422_v38 = vadd.f32 %v2421_v32, %v2153_v52  ;;  %v2433_v43 = vmax.f32 %v2365_v2, 0.0  ;;  %v2435_v55 = vmax.f32 %v2418_v28, 0.0  ;;  %v5426_v50 = vld [vmem:[%s8099_s20] ss:$0 sm:$0xff]  ;;  %v6377_v27 = vld [vmem:[#allocation7 + $0xc4] ss:$12 sps:$4 sm:$0xff]  }
 0xf4b   : > { %v2436_v41 = vmax.f32 %v2367_v53, 0.0  ;;  %v2438_v42 = vmax.f32 %v2420_v54, 0.0  ;;  %v6375_v54 = vld [vmem:[#allocation7 + $0xc0] ss:$12 sps:$4 sm:$0xff]   ;;  %v6380_v32 = vld [vmem:[#allocation7 + $0xdc] ss:$12 sps:$4 sm:$0xff]   ;;  %3060 = vmatprep.subr.bf16.mxu0 %v6377_v27 }
 0xf4c   : > { %v2437_v49 = vmax.f32 %v2369_v37, 0.0  ;;  %v2439_v56 = vmax.f32 %v2422_v38, 0.0  ;;  %3061 = vmatpush1.bf16.msra.mxu0 %v6375_v54  ;;  %v5460_v27 = vld [vmem:[%s8101_s2] ss:$0 sm:$0xff] }
 0xf4d   : > { %v2444_v57 = vpack.c.bf16 %v2436_v41, %v2432_v39  ;;  %v2446_v47 = vpack.c.bf16 %v2438_v42, %v2434_v40  ;;  %3062 = vmatprep.subr.bf16.mxu0 %v6380_v32 }
 0xf4e   : > { %v2445_v58 = vpack.c.bf16 %v2437_v49, %v2433_v43  ;;  %v2447_v10 = vpack.c.bf16 %v2439_v56, %v2435_v55 }
 0xf50   : > { %2751 = vmatprep.mubr.bf16.mxu0 %v2445_v58  ;;  %2800 = vmatprep.mubr.bf16.mxu1 %v2447_v10 }
 0xf51   : > { %2752 = vmatmul.mubr.bf16.gmra.mrb[44].mxu0 %v2444_v57  ;;  %2801 = vmatmul.mubr.bf16.gmra.mrb[60].mxu1 %v2446_v47 }
 0xf52   : > { %3092 = vmatprep.mubr.bf16.mxu0 %v6933_v0 }
0x101c   : > { %v5667_v45 = vpop.f32.mrb[40].mxu0  ;;  %v5695_v46 = vpop.f32.mrb[56].mxu1 }
0x101d   : > { %v5668_v52 = vpop.f32.mrb[41].mxu0  ;;  %v5696_v60 = vpop.f32.mrb[57].mxu1 }
0x101e   : > { %v5669_v62 = vadd.f32 %v5668_v52, %v5667_v45  ;;  %v5697_v3 = vadd.f32 %v5696_v60, %v5695_v46  ;;  %v5670_v12 = vpop.f32.mrb[42].mxu0  ;;  %v5698_v6 = vpop.f32.mrb[58].mxu1  ;;  %v6383_v45 = vld [vmem:[#allocation7 + $0xf4] ss:$12 sps:$4 sm:$0xff]   ;;  %v6387_v52 = vld [vmem:[#allocation7 + $0x10c] ss:$12 sps:$4 sm:$0xff]  }
0x101f   : > { %v5671_v7 = vpop.f32.mrb[43].mxu0  ;;  %v5699_v19 = vpop.f32.mrb[59].mxu1  ;;  %v6384_v46 = vld [vmem:[#allocation7 + $0xc8] ss:$12 sps:$4 sm:$0xff]   ;;  %v6388_v60 = vld [vmem:[#allocation7 + $0xe0] ss:$12 sps:$4 sm:$0xff]  }
0x1020   : > { %v2746_v22 = vadd.f32 %v5669_v62, %v5426_v50  ;;  %v5672_v1 = vadd.f32 %v5671_v7, %v5670_v12  ;;  %v5700_v11 = vadd.f32 %v5699_v19, %v5698_v6  ;;  %5951 = vmatprep.subr.bf16.mxu1 %v6384_v46  ;;  %v6385_v62 = vld [vmem:[#allocation7 + $0x108] ss:$12 sps:$4 sm:$0xff]   ;;  %v6392_v12 = vld [vmem:[#allocation7 + $0xf8] ss:$12 sps:$4 sm:$0xff]   ;;  %v6389_v6 = vld [vmem:[#allocation7 + $0x120] ss:$12 sps:$4 sm:$0xff]  }
0x1021   : > { %5952 = vmatpush3.bf16.msra.mxu1 %v6384_v46  ;;  %v6395_v7 = vld [vmem:[#allocation7 + $0x13c] ss:$12 sps:$4 sm:$0xff]  }
0x1022   : > { %v2795_v14 = vadd.f32 %v5697_v3, %v2746_v22  ;;  %v2749_v15 = vadd.f32 %v5672_v1, %v5426_v50  ;;  %5953 = vmatprep.subr.bf16.mxu1 %v6388_v60  ;;  %v6391_v3 = vld [vmem:[#allocation7 + $0x124] ss:$12 sps:$4 sm:$0xff]   ;;  %v6399_v1 = vld [vmem:[#allocation7 + $0x154] ss:$12 sps:$4 sm:$0xff]  }
0x1023   : > { %v6396_v19 = vld [vmem:[#allocation7 + $0x110] ss:$12 sps:$4 sm:$0xff]   ;;  %v6393_v22 = vld [vmem:[#allocation7 + $0x138] ss:$12 sps:$4 sm:$0xff]  }
0x1024   : > { %v2798_v16 = vadd.f32 %v5700_v11, %v2749_v15  ;;  %v5673_v17 = vpop.f32.mrb[44].mxu0  ;;  %v5701_v5 = vpop.f32.mrb[60].mxu1  ;;  %v2809_v20 = vadd.f32 %v2795_v14, %v7605_v4  ;;  %v6400_v11 = vld [vmem:[#allocation7 + $0x128] ss:$12 sps:$4 sm:$0xff]   ;;  %v6397_v14 = vld [vmem:[#allocation7 + $0x150] ss:$12 sps:$4 sm:$0xff]  }
0x1025   : > { %v5674_v13 = vpop.f32.mrb[45].mxu0  ;;  %v5702_v23 = vpop.f32.mrb[61].mxu1  ;;  %5954 = vmatpush3.bf16.msra.mxu1 %v6388_v60  ;;  %v6401_v15 = vld [vmem:[#allocation7 + $0x168] ss:$12 sps:$4 sm:$0xff]  }
0x1026   : > { %v5675_v35 = vadd.f32 %v5674_v13, %v5673_v17  ;;  %v5703_v25 = vadd.f32 %v5702_v23, %v5701_v5  ;;  %v5704_v30 = vpop.f32.mrb[62].mxu1  ;;  %2815 = vadd.xlane.f32.xlu0 %v2809_v20  ;;  %v5676_v9 = vpop.f32.mrb[46].mxu0  ;;  %v2810_v26 = vadd.f32 %v2798_v16, %v7607_v61  ;;  %v6378_v61 = vld [vmem:[#allocation7 + $0xd8] ss:$12 sps:$4 sm:$0xff]   ;;  %5955 = vmatprep.subr.bf16.mxu1 %v6392_v12  ;;  %v6404_v17 = vld [vmem:[#allocation7 + $0x140] ss:$12 sps:$4 sm:$0xff]  }
0x1027   : > { %v5677_v59 = vpop.f32.mrb[47].mxu0  ;;  %v5705_v24 = vpop.f32.mrb[63].mxu1  ;;  %3063 = vmatpush1.bf16.msra.mxu0 %v6378_v61  ;;  %v6403_v16 = vld [vmem:[#allocation7 + $0x16c] ss:$12 sps:$4 sm:$0xff]  }
0x1028   : > { %v2754_v21 = vadd.f32 %v5675_v35, %v5426_v50  ;;  %v5678_v63 = vadd.f32 %v5677_v59, %v5676_v9  ;;  %v5706_v2 = vadd.f32 %v5705_v24, %v5704_v30  ;;  %2817 = vadd.xlane.f32.xlu1 %v2810_v26  ;;  %3064 = vmatprep.subr.bf16.mxu0 %v6383_v45  ;;  %v6405_v5 = vld [vmem:[#allocation7 + $0x158] ss:$12 sps:$4 sm:$0xff]  }
0x1029   : > { %5956 = vmatpush3.bf16.msra.mxu1 %v6392_v12 }
0x102a   : > { %v2803_v28 = vadd.f32 %v5703_v25, %v2754_v21  ;;  %v2757_v29 = vadd.f32 %v5678_v63, %v5426_v50  ;;  %v6381_v50 = vld [vmem:[#allocation7 + $0xf0] ss:$12 sps:$4 sm:$0xff]   ;;  %5957 = vmatprep.subr.bf16.mxu1 %v6396_v19 }
0x102b   : > { %3065 = vmatpush1.bf16.msra.mxu0 %v6381_v50 }
0x102c   : > { %v2806_v51 = vadd.f32 %v5706_v2, %v2757_v29  ;;  %v2811_v4 = vadd.f32 %v2803_v28, %v7617_v8  ;;  %3066 = vmatprep.subr.bf16.mxu0 %v6387_v52  ;;  %v5459_v29 = vld [vmem:[%s8100_s0] ss:$0 sm:$0xff] }
0x102d   : > { %5958 = vmatpush3.bf16.msra.mxu1 %v6396_v19 }
0x102e   : > { %2819 = vadd.xlane.f32.xlu0 %v2811_v4  ;;  %v2812_v53 = vadd.f32 %v2806_v51, %v7615_v18  ;;  %5959 = vmatprep.subr.bf16.mxu1 %v6400_v11 }
0x102f   : > { %3067 = vmatpush1.bf16.msra.mxu0 %v6385_v62 }
0x1030   : > { %2821 = vadd.xlane.f32.xlu1 %v2812_v53  ;;  %3068 = vmatprep.subr.bf16.mxu0 %v6391_v3 }
0x1031   : > { %5960 = vmatpush3.bf16.msra.mxu1 %v6400_v11 }
0x1032   : > { %5961 = vmatprep.subr.bf16.mxu1 %v6404_v17 }
0x1033   : > { %3069 = vmatpush1.bf16.msra.mxu0 %v6389_v6 }
0x1034   : > { %3070 = vmatprep.subr.bf16.mxu0 %v6395_v7 }
0x1035   : > { %5962 = vmatpush3.bf16.msra.mxu1 %v6404_v17 }
0x1036   : > { %5963 = vmatprep.subr.bf16.mxu1 %v6405_v5 }
0x1037   : > { %3071 = vmatpush1.bf16.msra.mxu0 %v6393_v22 }
0x1038   : > { %3072 = vmatprep.subr.bf16.mxu0 %v6399_v1 }
0x1039   : > { %5964 = vmatpush3.bf16.msra.mxu1 %v6405_v5 }
0x103b   : > { %3073 = vmatpush1.bf16.msra.mxu0 %v6397_v14 }
0x103c   : > { %3074 = vmatprep.subr.bf16.mxu0 %v6403_v16 }
0x103f   : > { %3075 = vmatpush1.bf16.msra.mxu0 %v6401_v15 }
0x1040   : > { %5971 = vmatprep.subr.bf16.mxu0 %v6934_v31 }
0x10b3   : > { %v2816_v37 = vpop.xlane.xlu0 %2815 }
0x10b4   : > { %v2823_v38 = vmul.f32 0.0078125, %v2816_v37 }
0x10b5   : > { %v2818_v39 = vpop.xlane.xlu1 %2817 }
0x10b6   : > { %v7638_v40 = vsub.f32 %v2809_v20, %v2823_v38  ;;  %v2824_v41 = vmul.f32 0.0078125, %v2818_v39  ;;  %v6406_v20 = vld [vmem:[#allocation7 + $0x170] ss:$12 sps:$4 sm:$0xff]  }
0x10b7   : > { %5965 = vmatprep.subr.bf16.mxu1 %v6406_v20 }
0x10b8   : > { %v7640_v42 = vsub.f32 %v2810_v26, %v2824_v41  ;;  %v2831_v18 = vmul.f32 %v7638_v40, %v7638_v40  ;;  %5966 = vmatpush3.bf16.msra.mxu1 %v6406_v20 }
0x10b9   : > { %5989 = vmatprep.subr.bf16.mxu1 %v6934_v31 }
0x10ba   : > { %2835 = vadd.xlane.f32.xlu0 %v2831_v18  ;;  %v2832_v8 = vmul.f32 %v7640_v42, %v7640_v42 }
0x10bb   : > { %v2820_v43 = vpop.xlane.xlu0 %2819 }
0x10bc   : > { %v2825_v55 = vmul.f32 0.0078125, %v2820_v43  ;;  %2837 = vadd.xlane.f32.xlu1 %v2832_v8 }
0x10bd   : > { %v2822_v49 = vpop.xlane.xlu1 %2821 }
0x10be   : > { %v7646_v56 = vsub.f32 %v2811_v4, %v2825_v55  ;;  %v2826_v57 = vmul.f32 0.0078125, %v2822_v49 }
0x10c0   : > { %v7648_v47 = vsub.f32 %v2812_v53, %v2826_v57  ;;  %v2833_v58 = vmul.f32 %v7646_v56, %v7646_v56 }
0x10c2   : > { %2839 = vadd.xlane.f32.xlu0 %v2833_v58  ;;  %v2834_v10 = vmul.f32 %v7648_v47, %v7648_v47 }
0x10c4   : > { %2841 = vadd.xlane.f32.xlu1 %v2834_v10 }
0x1147   : > { %v2836_v13 = vpop.xlane.xlu0 %2835 }
0x1148   : > { %v2843_v23 = vmul.f32 0.0078125, %v2836_v13 }
0x1149   : > { %v2838_v35 = vpop.xlane.xlu1 %2837 }
0x114a   : > { %v2847_v25 = vadd.f32 1e-05, %v2843_v23  ;;  %v2844_v30 = vmul.f32 0.0078125, %v2838_v35 }
0x114c   : > { %6567 = vrsqrt.f32 %v2847_v25  ;;  %v2848_v9 = vadd.f32 1e-05, %v2844_v30 }
0x114e   : > { %6569 = vrsqrt.f32 %v2848_v9 }
0x114f   : > { %v2840_v26 = vpop.xlane.xlu0 %2839 }
0x1150   : > { %v2845_v59 = vmul.f32 0.0078125, %v2840_v26 }
0x1151   : > { %v2842_v24 = vpop.xlane.xlu1 %2841 }
0x1152   : > { %v2849_v21 = vadd.f32 1e-05, %v2845_v59  ;;  %v2846_v63 = vmul.f32 0.0078125, %v2842_v24 }
0x1154   : > { %6571 = vrsqrt.f32 %v2849_v21  ;;  %v2850_v2 = vadd.f32 1e-05, %v2846_v63 }
0x1156   : > { %v6568_v28 = vpop.eup %6567  ;;  %6573 = vrsqrt.f32 %v2850_v2 }
0x1157   : > { %v2855_v51 = vmul.f32 %v6568_v28, %v7638_v40  ;;  %v7720_v28 = vld [vmem:[%s7294_s9] sm:$0xff] }
0x1158   : > { %v6570_v4 = vpop.eup %6569 }
0x1159   : > { %v2865_v53 = vmul.f32 %v5459_v29, %v2855_v51  ;;  %v2856_v54 = vmul.f32 %v6570_v4, %v7640_v42 }
0x115b   : > { %v2866_v32 = vmul.f32 %v5459_v29, %v2856_v54  ;;  %v7664_v61 = vadd.f32 %v5460_v27, %v2865_v53  ;;  %v7724_v53 = vld [vmem:[%s7294_s9 + $0x8] sm:$0xff] }
0x115d   : > { %v7666_v37 = vadd.f32 %v5460_v27, %v2866_v32 }
0x115e   : > { %v6572_v38 = vpop.eup %6571 }
0x115f   : > { %v2879_v39 = vpack.c.bf16 %v7666_v37, %v7664_v61  ;;  %v2857_v41 = vmul.f32 %v6572_v38, %v7646_v56  ;;  %v5461_v56 = vld [vmem:[%s8041_s3 + $0x3] sm:$0x7] }
0x1160   : > { %v6574_v40 = vpop.eup %6573  ;;  %v2920_v57 = vrot.slane %v5461_v56, %v7327_v34  ;;  %v2924_v58 = vrot.slane %v5461_v56, %v7333_v36  ;;  %v2928_v6 = vrot.slane %v5461_v56, %v7340_v48 }
0x1161   : > { %3093 = vmatmul.mubr.bf16.vlgmr.msra.gmra.mrb[48].mxu0 %v2879_v39  ;;  %5967 = vmatprep.mubr.bf16.mxu1 %v2879_v39  ;;  %v2858_v42 = vmul.f32 %v6574_v40, %v7648_v47  ;;  %v2867_v18 = vmul.f32 %v5459_v29, %v2857_v41  ;;  %v7730_v41 = vld [vmem:[%s7294_s9 + $0x10] sm:$0xff] }
0x1162   : > { %3102 = vmatprep.mubr.bf16.mxu0 %v6933_v0 }
0x1163   : > { %v2868_v8 = vmul.f32 %v5459_v29, %v2858_v42  ;;  %v7673_v43 = vadd.f32 %v5460_v27, %v2867_v18 }
0x1165   : > { %v7675_v55 = vadd.f32 %v5460_v27, %v2868_v8  ;;  %v7734_v8 = vld [vmem:[%s7294_s9 + $0x18] sm:$0xff] }
0x1167   : > { %v2880_v49 = vpack.c.bf16 %v7675_v55, %v7673_v43 }
0x1169   : > { %3103 = vmatmul.mubr.bf16.gmra.mrb[52].mxu0 %v2880_v49  ;;  %5968 = vmatmul.mubr.bf16.vlgmr.msra.gmra.mrb[64].mxu1 %v2880_v49 }
0x116a   : > { %5973 = vmatprep.mubr.msk.bf16.mxu0 %vm6935_vm0, %v6934_v31  ;;  %5991 = vmatprep.mubr.msk.bf16.mxu1 %vm6935_vm0, %v6934_v31 }
0x1234   : > { %v3094_v47 = vpop.f32.mrb[48].mxu0 }
0x1235   : > { %v3096_v10 = vpop.f32.mrb[49].mxu0  ;;  %v3095_v46 = vadd.f32 %v3094_v47, %v2920_v57 }
0x1236   : > { %v3098_v45 = vpop.f32.mrb[50].mxu0  ;;  %v3097_v60 = vadd.f32 %v3096_v10, %v2924_v58 }
0x1237   : > { %v3099_v50 = vadd.f32 %v3098_v45, %v2920_v57  ;;  %v3100_v52 = vpop.f32.mrb[51].mxu0 }
0x1238   : > { %v3101_v62 = vadd.f32 %v3100_v52, %v2924_v58 }
0x1239   : > { %v7688_v3 = vpack.c.bf16 %v3099_v50, %v3095_v46 }
0x123a   : > { %v7690_v12 = vpack.c.bf16 %v3101_v62, %v3097_v60 }
0x123c   : > { %v3104_v7 = vpop.f32.mrb[52].mxu0  ;;  %v5969_v19 = vpop.f32.mrb[64].mxu1  ;;  %v3170_v22 = vsel %vm883_vm1, %v7690_v12, 0 }
0x123d   : > { %v3106_v1 = vpop.f32.mrb[53].mxu0  ;;  %v3147_v11 = vpop.f32.mrb[65].mxu1  ;;  %5972 = vmatpush3.bf16.xpose.msra.mxu0 %v3170_v22  ;;  %v3105_v16 = vadd.f32 %v3104_v7, %v2920_v57  ;;  %v3156_v17 = vadd.f32 %v5969_v19, %v2928_v6 }
0x123e   : > { %v3108_v14 = vpop.f32.mrb[54].mxu0  ;;  %v5970_v15 = vpop.f32.mrb[66].mxu1  ;;  %5977 = vmatprep.subr.bf16.mxu0 %v6934_v31  ;;  %v3107_v35 = vadd.f32 %v3106_v1, %v2924_v58  ;;  %v3148_v25 = vadd.f32 %v3147_v11, %v2928_v6 }
0x123f   : > { %v3109_v5 = vadd.f32 %v3108_v14, %v2920_v57  ;;  %v3159_v20 = vadd.f32 %v5970_v15, %v2928_v6  ;;  %v3110_v13 = vpop.f32.mrb[55].mxu0  ;;  %v3150_v23 = vpop.f32.mrb[67].mxu1 }
0x1240   : > { %v3111_v30 = vadd.f32 %v3110_v13, %v2924_v58  ;;  %v3151_v9 = vadd.f32 %v3150_v23, %v2928_v6 }
0x1241   : > { %v7696_v26 = vpack.c.bf16 %v3109_v5, %v3105_v16  ;;  %v7698_v59 = vpack.c.bf16 %v3159_v20, %v3156_v17 }
0x1242   : > { %v7700_v24 = vpack.c.bf16 %v3111_v30, %v3107_v35  ;;  %v7702_v21 = vpack.c.bf16 %v3151_v9, %v3148_v25 }
0x1243   : > { %5990 = vmatpush3.bf16.msra.mxu1 %v7698_v59 }
0x1244   : > { %5974 = vmatmul.mubr.msk.bf16.vlgmr.msra.gmra.mrb[56].mxu0 %vm883_vm1, %v7688_v3  ;;  %v3217_v63 = vsel %vm883_vm1, %v7700_v24, 0  ;;  %6001 = vmatprep.subr.bf16.mxu1 %v6934_v31 }
0x1245   : > { %5978 = vmatpush3.bf16.xpose.msra.mxu0 %v3217_v63  ;;  %5979 = vmatprep.mubr.msk.bf16.mxu0 %vm6935_vm0, %v6934_v31 }
0x1246   : > { %5983 = vmatprep.subr.bf16.mxu0 %v6934_v31 }
0x124c   : > { %5980 = vmatmul.mubr.msk.bf16.vlgmr.msra.gmra.mrb[60].mxu0 %vm883_vm1, %v7696_v26 }
0x124d   : > { %5984 = vmatpush3.bf16.msra.mxu0 %v7702_v21  ;;  %5985 = vmatprep.mubr.msk.bf16.mxu0 %vm6935_vm0, %v6934_v31 }
0x124e   : > { %5995 = vmatprep.subr.bf16.mxu0 %v6934_v31 }
0x1317   : > { %v3206_v2 = vpop.f32.mrb[56].mxu0 }
0x1318   : > { %v3207_v29 = vadd.f32 %v7720_v28, %v3206_v2  ;;  %v5975_v51 = vpop.f32.mrb[57].mxu0 }
0x1319   : > { %v3209_v4 = vpop.f32.mrb[58].mxu0 }
0x131a   : > { %v3210_v54 = vadd.f32 %v7724_v53, %v3209_v4  ;;  %v5976_v27 = vpop.f32.mrb[59].mxu0  ;;  %v3260_v32 = vsel %vm978_vm2, %v3207_v29, -inf }
0x131b   : > { %3261 = vmax.xlane.f32.xlu0 %v3260_v32 }
0x131c   : > { %v3263_v38 = vsel %vm978_vm2, %v3210_v54, -inf }
0x131d   : > { %3264 = vmax.xlane.f32.xlu1 %v3263_v38 }
0x131f   : > { %v3253_v39 = vpop.f32.mrb[60].mxu0 }
0x1320   : > { %v3254_v40 = vadd.f32 %v7730_v41, %v3253_v39  ;;  %v5981_v42 = vpop.f32.mrb[61].mxu0 }
0x1321   : > { %v3256_v18 = vpop.f32.mrb[62].mxu0 }
0x1322   : > { %v3257_v49 = vadd.f32 %v7734_v8, %v3256_v18  ;;  %v5982_v56 = vpop.f32.mrb[63].mxu0  ;;  %v3266_v57 = vsel %vm978_vm2, %v3254_v40, -inf }
0x1323   : > { %3267 = vmax.xlane.f32.xlu0 %v3266_v57 }
0x1324   : > { %v3269_v47 = vsel %vm978_vm2, %v3257_v49, -inf }
0x1325   : > { %3270 = vmax.xlane.f32.xlu1 %v3269_v47 }
0x13a8   : > { %v3262_v58 = vpop.xlane.xlu0 %3261 }
0x13a9   : > { %v3272_v10 = vsub.f32 %v3207_v29, %v3262_v58 }
0x13aa   : > { %v3265_v45 = vpop.xlane.xlu1 %3264 }
0x13ab   : > { %v3276_v46 = vmul.f32 1.442695, %v3272_v10  ;;  %v3273_v50 = vsub.f32 %v3210_v54, %v3265_v45 }
0x13ad   : > { %6575 = vpow2.f32 %v3276_v46  ;;  %v3278_v52 = vmul.f32 1.442695, %v3273_v50 }
0x13af   : > { %6577 = vpow2.f32 %v3278_v52 }
0x13b0   : > { %v3268_v60 = vpop.xlane.xlu0 %3267 }
0x13b1   : > { %v3274_v62 = vsub.f32 %v3254_v40, %v3268_v60 }
0x13b2   : > { %v3271_v15 = vpop.xlane.xlu1 %3270 }
0x13b3   : > { %v3280_v6 = vmul.f32 1.442695, %v3274_v62  ;;  %v3275_v16 = vsub.f32 %v3257_v49, %v3271_v15 }
0x13b5   : > { %6579 = vpow2.f32 %v3280_v6  ;;  %v3282_v17 = vmul.f32 1.442695, %v3275_v16 }
0x13b7   : > { %v6576_v7 = vpop.eup %6575  ;;  %6581 = vpow2.f32 %v3282_v17 }
0x13b8   : > { %v3284_v19 = vsel %vm978_vm2, %v6576_v7, 0.0 }
0x13b9   : > { %v6578_v22 = vpop.eup %6577  ;;  %3285 = vadd.xlane.f32.xlu0 %v3284_v19 }
0x13ba   : > { %v3287_v1 = vsel %vm978_vm2, %v6578_v22, 0.0 }
0x13bb   : > { %3288 = vadd.xlane.f32.xlu1 %v3287_v1 }
0x13bf   : > { %v6580_v11 = vpop.eup %6579 }
0x13c0   : > { %v3290_v14 = vsel %vm978_vm2, %v6580_v11, 0.0 }
0x13c1   : > { %3291 = vadd.xlane.f32.xlu0 %v3290_v14  ;;  %v6582_v5 = vpop.eup %6581 }
0x13c2   : > { %v3293_v20 = vsel %vm978_vm2, %v6582_v5, 0.0 }
0x13cc   : > { %3453 = vrot.lane.b32.xlu1 %v7700_v24, %s6936_s24 }
0x13d7   : > { %3400 = vrot.lane.b32.xlu0 %v7690_v12, %s6936_s24 }
0x13f0   : > { %3294 = vadd.xlane.f32.xlu1 %v3293_v20 }
0x1401   : > { %3397 = vrot.lane.b32.xlu1 %v7688_v3, %s6936_s24 }
0x1405   : > { %3450 = vrot.lane.b32.xlu1 %v7696_v26, %s6936_s24 }
0x1446   : > { %v3286_v13 = vpop.xlane.xlu0 %3285 }
0x1447   : > { %6583 = vrcp.f32 %v3286_v13 }
0x1448   : > { %v3289_v23 = vpop.xlane.xlu1 %3288 }
0x1449   : > { %6585 = vrcp.f32 %v3289_v23 }
0x144c   : > { %v3454_v4 = vpop.permute.xlu1 %3453 }
0x144d   : > { %v3459_v18 = vsel %vm883_vm1, %v3454_v4, 0 }
0x144e   : > { %v3292_v35 = vpop.xlane.xlu0 %3291 }
0x144f   : > { %6587 = vrcp.f32 %v3292_v35 }
0x1451   : > { %v6584_v25 = vpop.eup %6583 }
0x1452   : > { %v3300_v9 = vmul.f32 %v6584_v25, %v6576_v7  ;;  %v3401_v2 = vpop.permute.xlu0 %3400 }
0x1453   : > { %v6586_v30 = vpop.eup %6585  ;;  %v3406_v51 = vsel %vm883_vm1, %v3401_v2, 0 }
0x1454   : > { %v3301_v63 = vmul.f32 %v6586_v30, %v6578_v22 }
0x1456   : > { %v3304_v29 = vpack.c.bf16 %v3301_v63, %v3300_v9 }
0x1458   : > { %5986 = vmatmul.mubr.msk.bf16.vlgmr.msra.gmra.mrb[64].mxu0 %vm978_vm2, %v3304_v29 }
0x1459   : > { %5996 = vmatpush3.bf16.xpose.msra.mxu0 %v3406_v51  ;;  %5997 = vmatprep.mubr.msk.bf16.mxu0 %vm6935_vm0, %v6934_v31  ;;  %v6588_v32 = vpop.eup %6587 }
0x145a   : > { %6007 = vmatprep.subr.bf16.mxu0 %v6934_v31  ;;  %v3302_v39 = vmul.f32 %v6588_v32, %v6580_v11 }
0x147d   : > { %v3295_v54 = vpop.xlane.xlu1 %3294 }
0x147e   : > { %6589 = vrcp.f32 %v3295_v54 }
0x1481   : > { %v3398_v27 = vpop.permute.xlu1 %3397 }
0x1482   : > { %5998 = vmatmul.mubr.msk.bf16.vlgmr.msra.gmra.mrb[68].mxu0 %vm883_vm1, %v3398_v27 }
0x1483   : > { %6009 = vmatprep.mubr.msk.bf16.mxu0 %vm6935_vm0, %v6934_v31 }
0x1485   : > { %v3451_v49 = vpop.permute.xlu1 %3450 }
0x1488   : > { %v6590_v38 = vpop.eup %6589 }
0x1489   : > { %v3303_v40 = vmul.f32 %v6590_v38, %v6582_v5 }
0x148b   : > { %v3305_v42 = vpack.c.bf16 %v3303_v40, %v3302_v39 }
0x148d   : > { %5992 = vmatmul.mubr.msk.bf16.vlgmr.msra.gmra.mrb[68].mxu1 %vm978_vm2, %v3305_v42 }
0x148e   : > { %6002 = vmatpush3.bf16.xpose.msra.mxu1 %v3459_v18  ;;  %6003 = vmatprep.mubr.msk.bf16.mxu1 %vm6935_vm0, %v6934_v31 }
0x148f   : > { %6013 = vmatprep.subr.bf16.mxu1 %v6934_v31 }
0x1495   : > { %6004 = vmatmul.mubr.msk.bf16.vlgmr.msra.gmra.mrb[72].mxu1 %vm883_vm1, %v3451_v49 }
0x1496   : > { %6015 = vmatprep.mubr.msk.bf16.mxu1 %vm6935_vm0, %v6934_v31 }
0x152b   : > { %v7767_v56 = vpop.f32.mrb[64].mxu0 }
0x152c   : > { %v5987_v57 = vpop.f32.mrb[65].mxu0 }
0x152d   : > { %v7769_v47 = vpop.f32.mrb[66].mxu0 }
0x152e   : > { %v5988_v58 = vpop.f32.mrb[67].mxu0 }
0x1555   : > { %v3442_v10 = vpop.f32.mrb[68].mxu0 }
0x1556   : > { %v3443_v45 = vadd.f32 %v7720_v28, %v3442_v10  ;;  %v5999_v46 = vpop.f32.mrb[69].mxu0 }
0x1557   : > { %v3445_v50 = vpop.f32.mrb[70].mxu0 }
0x1558   : > { %v3446_v52 = vadd.f32 %v7724_v53, %v3445_v50  ;;  %v6000_v60 = vpop.f32.mrb[71].mxu0  ;;  %v3502_v62 = vsel %vm978_vm2, %v3443_v45, -inf }
0x1559   : > { %3503 = vmax.xlane.f32.xlu0 %v3502_v62 }
0x155a   : > { %v3505_v6 = vsel %vm978_vm2, %v3446_v52, -inf }
0x155b   : > { %3506 = vmax.xlane.f32.xlu1 %v3505_v6 }
0x1560   : > { %v7775_v7 = vpop.f32.mrb[68].mxu1 }
0x1561   : > { %v5993_v19 = vpop.f32.mrb[69].mxu1 }
0x1562   : > { %v7777_v22 = vpop.f32.mrb[70].mxu1 }
0x1563   : > { %v5994_v1 = vpop.f32.mrb[71].mxu1 }
0x1568   : > { %v3495_v11 = vpop.f32.mrb[72].mxu1 }
0x1569   : > { %v3496_v14 = vadd.f32 %v7730_v41, %v3495_v11  ;;  %v6005_v15 = vpop.f32.mrb[73].mxu1 }
0x156a   : > { %v3498_v16 = vpop.f32.mrb[74].mxu1 }
0x156b   : > { %v3499_v17 = vadd.f32 %v7734_v8, %v3498_v16  ;;  %v6006_v5 = vpop.f32.mrb[75].mxu1  ;;  %v3508_v20 = vsel %vm978_vm2, %v3496_v14, -inf }
0x156c   : > { %3509 = vmax.xlane.f32.xlu0 %v3508_v20 }
0x156d   : > { %v3511_v13 = vsel %vm978_vm2, %v3499_v17, -inf }
0x1570   : > { %3512 = vmax.xlane.f32.xlu0 %v3511_v13 }
0x15e6   : > { %v3504_v23 = vpop.xlane.xlu0 %3503 }
0x15e7   : > { %v3514_v35 = vsub.f32 %v3443_v45, %v3504_v23 }
0x15e8   : > { %v3507_v25 = vpop.xlane.xlu1 %3506 }
0x15e9   : > { %v3518_v30 = vmul.f32 1.442695, %v3514_v35  ;;  %v3515_v9 = vsub.f32 %v3446_v52, %v3507_v25 }
0x15eb   : > { %6591 = vpow2.f32 %v3518_v30  ;;  %v3520_v63 = vmul.f32 1.442695, %v3515_v9 }
0x15ed   : > { %6593 = vpow2.f32 %v3520_v63 }
0x15f5   : > { %v6592_v2 = vpop.eup %6591 }
0x15f6   : > { %v3526_v29 = vsel %vm978_vm2, %v6592_v2, 0.0 }
0x15f7   : > { %v6594_v51 = vpop.eup %6593  ;;  %3527 = vadd.xlane.f32.xlu0 %v3526_v29 }
0x15f8   : > { %v3529_v4 = vsel %vm978_vm2, %v6594_v51, 0.0 }
0x15f9   : > { %v3510_v54 = vpop.xlane.xlu0 %3509  ;;  %3530 = vadd.xlane.f32.xlu1 %v3529_v4 }
0x15fa   : > { %v3516_v27 = vsub.f32 %v3496_v14, %v3510_v54 }
0x15fc   : > { %v3522_v32 = vmul.f32 1.442695, %v3516_v27 }
0x15fd   : > { %v3513_v40 = vpop.xlane.xlu0 %3512 }
0x15fe   : > { %6595 = vpow2.f32 %v3522_v32  ;;  %v3517_v42 = vsub.f32 %v3499_v17, %v3513_v40 }
0x1600   : > { %v3524_v18 = vmul.f32 1.442695, %v3517_v42 }
0x1602   : > { %6597 = vpow2.f32 %v3524_v18 }
0x1608   : > { %v6596_v38 = vpop.eup %6595 }
0x1609   : > { %v3532_v39 = vsel %vm978_vm2, %v6596_v38, 0.0 }
0x160a   : > { %3533 = vadd.xlane.f32.xlu0 %v3532_v39  ;;  %3597 = vrot.lane.b32.xlu1 %v7698_v59, %s6936_s24 }
0x160c   : > { %v6598_v49 = vpop.eup %6597 }
0x160d   : > { %v3535_v57 = vsel %vm978_vm2, %v6598_v49, 0.0 }
0x160e   : > { %3646 = vrot.lane.b32.xlu1 %v7690_v12, %s6937_s23 }
0x1620   : > { %3549 = vrot.lane.b32.xlu0 %v7702_v21, %s6936_s24 }
0x1624   : > { %3644 = vrot.lane.b32.xlu0 %v7688_v3, %s6937_s23 }
0x1632   : > { %3536 = vadd.xlane.f32.xlu1 %v3535_v57 }
0x1643   : > { %3697 = vrot.lane.b32.xlu1 %v7700_v24, %s6937_s23 }
0x1647   : > { %3695 = vrot.lane.b32.xlu1 %v7696_v26, %s6937_s23 }
0x1684   : > { %v3528_v45 = vpop.xlane.xlu0 %3527 }
0x1686   : > { %v3531_v58 = vpop.xlane.xlu1 %3530 }
0x1687   : > { %6599 = vrcp.f32 %v3531_v58 }
0x1688   : > { %6601 = vrcp.f32 %v3528_v45 }
0x168a   : > { %v3598_v10 = vpop.permute.xlu1 %3597 }
0x168b   : > { %6014 = vmatpush3.bf16.msra.mxu1 %v3598_v10 }
0x168c   : > { %6025 = vmatprep.subr.bf16.mxu1 %v6934_v31 }
0x168e   : > { %v3647_v1 = vpop.permute.xlu1 %3646 }
0x168f   : > { %v3652_v11 = vsel %vm883_vm1, %v3647_v1, 0 }
0x1691   : > { %v6600_v46 = vpop.eup %6599 }
0x1692   : > { %v6602_v52 = vpop.eup %6601  ;;  %v3543_v60 = vmul.f32 %v6600_v46, %v6594_v51 }
0x1693   : > { %v3542_v62 = vmul.f32 %v6602_v52, %v6592_v2 }
0x1695   : > { %v3546_v19 = vpack.c.bf16 %v3543_v60, %v3542_v62 }
0x1697   : > { %v3534_v50 = vpop.xlane.xlu0 %3533 }
0x1698   : > { %6603 = vrcp.f32 %v3534_v50 }
0x169b   : > { %v3550_v6 = vpop.permute.xlu0 %3549 }
0x169c   : > { %6008 = vmatpush3.bf16.msra.mxu0 %v3550_v6 }
0x169d   : > { %6019 = vmatprep.subr.bf16.mxu0 %v6934_v31 }
0x169f   : > { %6010 = vmatmul.mubr.msk.bf16.vlgmr.msra.gmra.mrb[72].mxu0 %vm978_vm2, %v3546_v19  ;;  %v3645_v14 = vpop.permute.xlu0 %3644 }
0x16a0   : > { %6021 = vmatprep.mubr.msk.bf16.mxu0 %vm6935_vm0, %v6934_v31 }
0x16a2   : > { %v6604_v16 = vpop.eup %6603 }
0x16a3   : > { %v3544_v5 = vmul.f32 %v6604_v16, %v6596_v38 }
0x16a5   : > { %6020 = vmatpush3.bf16.xpose.msra.mxu0 %v3652_v11 }
0x16a6   : > { %6031 = vmatprep.subr.bf16.mxu0 %v6934_v31 }
0x16ac   : > { %6022 = vmatmul.mubr.msk.bf16.vlgmr.msra.gmra.mrb[76].mxu0 %vm883_vm1, %v3645_v14 }
0x16ad   : > { %6033 = vmatprep.mubr.msk.bf16.mxu0 %vm6935_vm0, %v6934_v31 }
0x16bf   : > { %v3537_v15 = vpop.xlane.xlu1 %3536 }
0x16c0   : > { %6605 = vrcp.f32 %v3537_v15 }
0x16c3   : > { %v3698_v13 = vpop.permute.xlu1 %3697 }
0x16c4   : > { %v3703_v35 = vsel %vm883_vm1, %v3698_v13, 0 }
0x16c7   : > { %v3696_v25 = vpop.permute.xlu1 %3695 }
0x16ca   : > { %v6606_v17 = vpop.eup %6605 }
0x16cb   : > { %v3545_v20 = vmul.f32 %v6606_v17, %v6598_v49 }
0x16cd   : > { %v3547_v23 = vpack.c.bf16 %v3545_v20, %v3544_v5 }
0x16cf   : > { %6016 = vmatmul.mubr.msk.bf16.vlgmr.msra.gmra.mrb[76].mxu1 %vm978_vm2, %v3547_v23 }
0x16d0   : > { %6026 = vmatpush3.bf16.xpose.msra.mxu1 %v3703_v35  ;;  %6027 = vmatprep.mubr.msk.bf16.mxu1 %vm6935_vm0, %v6934_v31 }
0x16d1   : > { %6037 = vmatprep.subr.bf16.mxu1 %v6934_v31 }
0x16d7   : > { %6028 = vmatmul.mubr.msk.bf16.vlgmr.msra.gmra.mrb[80].mxu1 %vm883_vm1, %v3696_v25 }
0x16d8   : > { %6039 = vmatprep.mubr.msk.bf16.mxu1 %vm6935_vm0, %v6934_v31 }
0x1772   : > { %v7817_v30 = vpop.f32.mrb[72].mxu0 }
0x1773   : > { %v6011_v9 = vpop.f32.mrb[73].mxu0 }
0x1774   : > { %v7819_v63 = vpop.f32.mrb[74].mxu0 }
0x1775   : > { %v6225_v2 = vpack.i.bf16 %v7819_v63, %v7817_v30  ;;  %v6012_v29 = vpop.f32.mrb[75].mxu0 }
0x177f   : > { %v3688_v51 = vpop.f32.mrb[76].mxu0 }
0x1780   : > { %v3689_v4 = vadd.f32 %v7720_v28, %v3688_v51  ;;  %v6023_v54 = vpop.f32.mrb[77].mxu0 }
0x1781   : > { %v3691_v27 = vpop.f32.mrb[78].mxu0 }
0x1782   : > { %v3692_v32 = vadd.f32 %v7724_v53, %v3691_v27  ;;  %v6024_v38 = vpop.f32.mrb[79].mxu0  ;;  %v3746_v39 = vsel %vm978_vm2, %v3689_v4, -inf }
0x1783   : > { %3747 = vmax.xlane.f32.xlu0 %v3746_v39 }
0x1784   : > { %v3749_v40 = vsel %vm978_vm2, %v3692_v32, -inf }
0x1785   : > { %3750 = vmax.xlane.f32.xlu1 %v3749_v40 }
0x17a2   : > { %v7827_v42 = vpop.f32.mrb[76].mxu1 }
0x17a3   : > { %v6017_v18 = vpop.f32.mrb[77].mxu1 }
0x17a4   : > { %v7829_v49 = vpop.f32.mrb[78].mxu1 }
0x17a5   : > { %v6230_v57 = vpack.i.bf16 %v7829_v49, %v7827_v42  ;;  %v6018_v58 = vpop.f32.mrb[79].mxu1 }
0x17aa   : > { %v3739_v10 = vpop.f32.mrb[80].mxu1 }
0x17ab   : > { %v3740_v45 = vadd.f32 %v7730_v41, %v3739_v10  ;;  %v6029_v46 = vpop.f32.mrb[81].mxu1 }
0x17ac   : > { %v3742_v50 = vpop.f32.mrb[82].mxu1 }
0x17ad   : > { %v3743_v52 = vadd.f32 %v7734_v8, %v3742_v50  ;;  %v6030_v60 = vpop.f32.mrb[83].mxu1  ;;  %v3752_v62 = vsel %vm978_vm2, %v3740_v45, -inf }
0x17ae   : > { %3753 = vmax.xlane.f32.xlu0 %v3752_v62 }
0x17af   : > { %v3755_v6 = vsel %vm978_vm2, %v3743_v52, -inf }
0x17b2   : > { %3756 = vmax.xlane.f32.xlu0 %v3755_v6 }
0x1810   : > { %v3748_v19 = vpop.xlane.xlu0 %3747 }
0x1811   : > { %v3758_v1 = vsub.f32 %v3689_v4, %v3748_v19 }
0x1812   : > { %v3751_v11 = vpop.xlane.xlu1 %3750 }
0x1813   : > { %v3762_v14 = vmul.f32 1.442695, %v3758_v1  ;;  %v3759_v15 = vsub.f32 %v3692_v32, %v3751_v11 }
0x1815   : > { %6607 = vpow2.f32 %v3762_v14  ;;  %v3764_v16 = vmul.f32 1.442695, %v3759_v15 }
0x1817   : > { %6609 = vpow2.f32 %v3764_v16 }
0x181f   : > { %v6608_v17 = vpop.eup %6607 }
0x1820   : > { %v3770_v5 = vsel %vm978_vm2, %v6608_v17, 0.0 }
0x1821   : > { %v6610_v20 = vpop.eup %6609  ;;  %3771 = vadd.xlane.f32.xlu0 %v3770_v5 }
0x1822   : > { %v3773_v13 = vsel %vm978_vm2, %v6610_v20, 0.0 }
0x1823   : > { %3774 = vadd.xlane.f32.xlu1 %v3773_v13 }
0x1834   : > { %3839 = vrot.lane.b32.xlu1 %v7698_v59, %s6937_s23 }
0x1838   : > { %3888 = vrot.lane.b32.xlu1 %v7690_v12, %s6938_s12 }
0x183b   : > { %v3754_v23 = vpop.xlane.xlu0 %3753 }
0x183c   : > { %v3760_v35 = vsub.f32 %v3740_v45, %v3754_v23 }
0x183e   : > { %v3766_v25 = vmul.f32 1.442695, %v3760_v35 }
0x183f   : > { %v3757_v9 = vpop.xlane.xlu0 %3756 }
0x1840   : > { %6611 = vpow2.f32 %v3766_v25  ;;  %v3761_v29 = vsub.f32 %v3743_v52, %v3757_v9 }
0x1842   : > { %v3768_v4 = vmul.f32 1.442695, %v3761_v29 }
0x1844   : > { %6613 = vpow2.f32 %v3768_v4 }
0x184a   : > { %v6612_v51 = vpop.eup %6611 }
0x184b   : > { %v3776_v54 = vsel %vm978_vm2, %v6612_v51, 0.0 }
0x184c   : > { %3777 = vadd.xlane.f32.xlu0 %v3776_v54 }
0x184e   : > { %v6614_v27 = vpop.eup %6613 }
0x184f   : > { %v3779_v32 = vsel %vm978_vm2, %v6614_v27, 0.0 }
0x185c   : > { %3780 = vadd.xlane.f32.xlu1 %v3779_v32 }
0x1862   : > { %3792 = vrot.lane.b32.xlu0 %v7702_v21, %s6937_s23 }
0x1866   : > { %3886 = vrot.lane.b32.xlu0 %v7688_v3, %s6938_s12 }
0x186d   : > { %3939 = vrot.lane.b32.xlu1 %v7700_v24, %s6938_s12 }
0x1871   : > { %3937 = vrot.lane.b32.xlu1 %v7696_v26, %s6938_s12 }
0x18ae   : > { %v3772_v39 = vpop.xlane.xlu0 %3771 }
0x18b0   : > { %v3775_v12 = vpop.xlane.xlu1 %3774 }
0x18b1   : > { %6615 = vrcp.f32 %v3775_v12 }
0x18b2   : > { %6617 = vrcp.f32 %v3772_v39 }
0x18b4   : > { %v3840_v38 = vpop.permute.xlu1 %3839 }
0x18b5   : > { %6038 = vmatpush3.bf16.msra.mxu1 %v3840_v38 }
0x18b6   : > { %6049 = vmatprep.subr.bf16.mxu1 %v6934_v31 }
0x18b8   : > { %v3889_v26 = vpop.permute.xlu1 %3888 }
0x18b9   : > { %v3894_v24 = vsel %vm883_vm1, %v3889_v26, 0 }
0x18bb   : > { %v6616_v40 = vpop.eup %6615 }
0x18bc   : > { %v6618_v58 = vpop.eup %6617  ;;  %v3787_v10 = vmul.f32 %v6616_v40, %v6610_v20 }
0x18bd   : > { %v3786_v45 = vmul.f32 %v6618_v58, %v6608_v17 }
0x18bf   : > { %v3790_v46 = vpack.c.bf16 %v3787_v10, %v3786_v45 }
0x18d9   : > { %v3778_v18 = vpop.xlane.xlu0 %3777 }
0x18da   : > { %6619 = vrcp.f32 %v3778_v18 }
0x18dd   : > { %v3793_v3 = vpop.permute.xlu0 %3792 }
0x18de   : > { %6032 = vmatpush3.bf16.msra.mxu0 %v3793_v3 }
0x18df   : > { %6043 = vmatprep.subr.bf16.mxu0 %v6934_v31 }
0x18e1   : > { %6034 = vmatmul.mubr.msk.bf16.vlgmr.msra.gmra.mrb[80].mxu0 %vm978_vm2, %v3790_v46  ;;  %v3887_v52 = vpop.permute.xlu0 %3886 }
0x18e2   : > { %6045 = vmatprep.mubr.msk.bf16.mxu0 %vm6935_vm0, %v6934_v31 }
0x18e4   : > { %v6620_v60 = vpop.eup %6619 }
0x18e5   : > { %v3788_v6 = vmul.f32 %v6620_v60, %v6612_v51 }
0x18e7   : > { %6044 = vmatpush3.bf16.xpose.msra.mxu0 %v3894_v24 }
0x18e8   : > { %6055 = vmatprep.subr.bf16.mxu0 %v6934_v31 }
0x18e9   : > { %v3781_v50 = vpop.xlane.xlu1 %3780 }
0x18ea   : > { %6621 = vrcp.f32 %v3781_v50 }
0x18ed   : > { %v3940_v1 = vpop.permute.xlu1 %3939 }
0x18ee   : > { %6046 = vmatmul.mubr.msk.bf16.vlgmr.msra.gmra.mrb[84].mxu0 %vm883_vm1, %v3887_v52  ;;  %v3945_v14 = vsel %vm883_vm1, %v3940_v1, 0 }
0x18ef   : > { %6057 = vmatprep.mubr.msk.bf16.mxu0 %vm6935_vm0, %v6934_v31 }
0x18f1   : > { %v3938_v15 = vpop.permute.xlu1 %3937 }
0x18f4   : > { %v6622_v62 = vpop.eup %6621 }
0x18f5   : > { %v3789_v19 = vmul.f32 %v6622_v62, %v6614_v27 }
0x18f7   : > { %v3791_v11 = vpack.c.bf16 %v3789_v19, %v3788_v6 }
0x18f9   : > { %6040 = vmatmul.mubr.msk.bf16.vlgmr.msra.gmra.mrb[84].mxu1 %vm978_vm2, %v3791_v11 }
0x18fa   : > { %6050 = vmatpush3.bf16.xpose.msra.mxu1 %v3945_v14  ;;  %6051 = vmatprep.mubr.msk.bf16.mxu1 %vm6935_vm0, %v6934_v31 }
0x18fb   : > { %6061 = vmatprep.subr.bf16.mxu1 %v6934_v31 }
0x1901   : > { %6052 = vmatmul.mubr.msk.bf16.vlgmr.msra.gmra.mrb[88].mxu1 %vm883_vm1, %v3938_v15 }
0x1902   : > { %6063 = vmatprep.mubr.msk.bf16.mxu1 %vm6935_vm0, %v6934_v31 }
0x19b4   : > { %v3832_v16 = vpop.f32.mrb[80].mxu0 }
0x19b5   : > { %v6035_v17 = vpop.f32.mrb[81].mxu0 }
0x19b6   : > { %v3835_v5 = vpop.f32.mrb[82].mxu0 }
0x19b7   : > { %v6235_v20 = vpack.i.bf16 %v3835_v5, %v3832_v16  ;;  %v6036_v13 = vpop.f32.mrb[83].mxu0 }
0x19c1   : > { %v3930_v23 = vpop.f32.mrb[84].mxu0 }
0x19c2   : > { %v3931_v35 = vadd.f32 %v7720_v28, %v3930_v23  ;;  %v6047_v25 = vpop.f32.mrb[85].mxu0 }
0x19c3   : > { %v3933_v9 = vpop.f32.mrb[86].mxu0 }
0x19c4   : > { %v3934_v29 = vadd.f32 %v7724_v53, %v3933_v9  ;;  %v6048_v51 = vpop.f32.mrb[87].mxu0  ;;  %v3988_v4 = vsel %vm978_vm2, %v3931_v35, -inf }
0x19c5   : > { %3989 = vmax.xlane.f32.xlu0 %v3988_v4 }
0x19c6   : > { %v3991_v54 = vsel %vm978_vm2, %v3934_v29, -inf }
0x19c7   : > { %3992 = vmax.xlane.f32.xlu1 %v3991_v54  ;;  %v6407_v54 = vld [vmem:[#allocation8 + $0x40] sm:$0xff]  }
0x19cc   : > { %v3879_v31 = vpop.f32.mrb[84].mxu1 }
0x19cd   : > { %v6041_v27 = vpop.f32.mrb[85].mxu1 }
0x19ce   : > { %v3882_v32 = vpop.f32.mrb[86].mxu1  ;;  %v6409_v27 = vld [vmem:[#allocation8 + $0x50] sm:$0xff]  }
0x19cf   : > { %v6240_v12 = vpack.i.bf16 %v3882_v32, %v3879_v31  ;;  %v6042_v38 = vpop.f32.mrb[87].mxu1  ;;  %v6408_v31 = vld [vmem:[#allocation8 + $0x48] sm:$0xff]   ;;  %v6410_v32 = vld [vmem:[#allocation8 + $0x58] sm:$0xff]  }
0x19d0   : > { %v6412_v38 = vld [vmem:[#allocation8 + $0x68] sm:$0xff]  }
0x19d4   : > { %v3981_v39 = vpop.f32.mrb[88].mxu1 }
0x19d5   : > { %v3982_v40 = vadd.f32 %v7730_v41, %v3981_v39  ;;  %v6053_v28 = vpop.f32.mrb[89].mxu1  ;;  %v6413_v39 = vld [vmem:[#allocation8 + $0x70] sm:$0xff]  }
0x19d6   : > { %v3984_v18 = vpop.f32.mrb[90].mxu1 }
0x19d7   : > { %v3985_v58 = vadd.f32 %v7734_v8, %v3984_v18  ;;  %v6054_v53 = vpop.f32.mrb[91].mxu1  ;;  %v3994_v10 = vsel %vm978_vm2, %v3982_v40, -inf }
0x19d8   : > { %3995 = vmax.xlane.f32.xlu0 %v3994_v10  ;;  %v6414_v10 = vld [vmem:[#allocation8 + $0x78] sm:$0xff]  }
0x19d9   : > { %v3997_v45 = vsel %vm978_vm2, %v3985_v58, -inf }
0x19dc   : > { %3998 = vmax.xlane.f32.xlu0 %v3997_v45 }
0x1a52   : > { %v3990_v3 = vpop.xlane.xlu0 %3989 }
0x1a53   : > { %v4000_v46 = vsub.f32 %v3931_v35, %v3990_v3 }
0x1a54   : > { %v3993_v26 = vpop.xlane.xlu1 %3992 }
0x1a55   : > { %v4004_v24 = vmul.f32 1.442695, %v4000_v46  ;;  %v4001_v50 = vsub.f32 %v3934_v29, %v3993_v26 }
0x1a57   : > { %6623 = vpow2.f32 %v4004_v24  ;;  %v4006_v52 = vmul.f32 1.442695, %v4001_v50 }
0x1a59   : > { %6625 = vpow2.f32 %v4006_v52 }
0x1a61   : > { %v6624_v41 = vpop.eup %6623 }
0x1a62   : > { %v4012_v60 = vsel %vm978_vm2, %v6624_v41, 0.0 }
0x1a63   : > { %v6626_v62 = vpop.eup %6625  ;;  %4013 = vadd.xlane.f32.xlu0 %v4012_v60 }
0x1a64   : > { %v4015_v8 = vsel %vm978_vm2, %v6626_v62, 0.0 }
0x1a65   : > { %v3996_v6 = vpop.xlane.xlu0 %3995  ;;  %4016 = vadd.xlane.f32.xlu1 %v4015_v8 }
0x1a66   : > { %v4002_v19 = vsub.f32 %v3982_v40, %v3996_v6 }
0x1a68   : > { %v4008_v1 = vmul.f32 1.442695, %v4002_v19 }
0x1a69   : > { %v3999_v11 = vpop.xlane.xlu0 %3998 }
0x1a6a   : > { %6627 = vpow2.f32 %v4008_v1  ;;  %v4003_v14 = vsub.f32 %v3985_v58, %v3999_v11 }
0x1a6c   : > { %v4010_v15 = vmul.f32 1.442695, %v4003_v14 }
0x1a6e   : > { %6629 = vpow2.f32 %v4010_v15 }
0x1a74   : > { %v6628_v16 = vpop.eup %6627 }
0x1a75   : > { %v4018_v17 = vsel %vm978_vm2, %v6628_v16, 0.0 }
0x1a76   : > { %4019 = vadd.xlane.f32.xlu0 %v4018_v17 }
0x1a78   : > { %v6630_v5 = vpop.eup %6629 }
0x1a79   : > { %v4021_v13 = vsel %vm978_vm2, %v6630_v5, 0.0 }
0x1a7a   : > { %4022 = vadd.xlane.f32.xlu1 %v4021_v13 }
0x1a8b   : > { %4081 = vrot.lane.b32.xlu1 %v7698_v59, %s6938_s12 }
0x1a8c   : > { %4034 = vrot.lane.b32.xlu0 %v7702_v21, %s6938_s12 }
0x1a8f   : > { %6226 = vrot.lane.b32.xlu1 %v6225_v2, %s6938_s12 }
0x1a90   : > { %6236 = vrot.lane.b32.xlu0 %v6235_v20, %s6937_s23 }
0x1a93   : > { %6231 = vrot.lane.b32.xlu1 %v6230_v57, %s6938_s12  ;;  %s5598_s12 = sshll.u32 %s7038_s17, 9  ;;  %s6939_s17 = smov [#allocation13]  }
0x1a94   : > { %s7992_s25 = scalar_lea.hbm %s8102_s14, %s5598_s12  ;;  %s6839_s13 = sshll.u32 %s6939_s17, 4  ;;  %s6840_s13 = int_to_ptr.vmem [resolvable:$false] %s6839_s13 }
0x1a95   : > { %s6841_s18 = scalar_lea.vmem %s6840_s13, 1024 }
0x1a97   : > { %6241 = vrot.lane.b32.xlu1 %v6240_v12, %s6937_s23  ;;  %v6411_v12 = vld [vmem:[#allocation8 + $0x60] sm:$0xff]   ;;  %s585_s23 = scalar_lea.vmem [#allocation13], %s7282_s26  ;;  %s5172_s26 = scalar_lea.sflag [#allocation4], %s7279_s8 }
0x1a98   : > { %s5186_s21 = sshll.u32 %s585_s23, 4  ;;  %s7994_s21 = int_to_ptr.vmem [resolvable:$true] %s5186_s21 }
0x1a99   : > { %s6835_s22 = scalar_lea.vmem %s7994_s21, 512  ;;  %p6842_p3 = scmp.lt.s32.totalorder %s7994_s21, %s6840_s13 }
0x1a9a   : > { %p6836_p0 = scmp.ne.s32.totalorder %s7994_s21, %s6835_s22  ;;  %p6843_p5 = scmp.lt.s32.totalorder %s6841_s18, %s6835_s22 }
0x1a9c   : > { %p6837_p4 = pnand %p6836_p0, %p7179_p10  ;;  %p6844_p9 = por %p6843_p5, %p6842_p3 }
0x1a9e   : > { %p6838_p6 = pneg %p6837_p4 }
0x1aa0   : > { %p6845_p8 = pnand %p6844_p9, %p6838_p6 }
0x1af0   : > { %v4014_v35 = vpop.xlane.xlu0 %4013 }
0x1af2   : > { %v4017_v23 = vpop.xlane.xlu1 %4016 }
0x1af3   : > { %6631 = vrcp.f32 %v4017_v23 }
0x1af4   : > { %6633 = vrcp.f32 %v4014_v35 }
0x1afd   : > { %v6632_v59 = vpop.eup %6631 }
0x1afe   : > { %v6634_v25 = vpop.eup %6633  ;;  %v4029_v9 = vmul.f32 %v6632_v59, %v6626_v62 }
0x1aff   : > { %v4028_v30 = vmul.f32 %v6634_v25, %v6624_v41 }
0x1b01   : > { %v4032_v20 = vpack.c.bf16 %v4029_v9, %v4028_v30 }
0x1b03   : > { %v4020_v21 = vpop.xlane.xlu0 %4019 }
0x1b04   : > { %6635 = vrcp.f32 %v4020_v21 }
0x1b07   : > { %v4035_v63 = vpop.permute.xlu0 %4034  ;;  %v4023_v2 = vpop.xlane.xlu1 %4022 }
0x1b08   : > { %6637 = vrcp.f32 %v4023_v2  ;;  %6056 = vmatpush3.bf16.msra.mxu0 %v4035_v63 }
0x1b09   : > { %6067 = vmatprep.subr.bf16.mxu0 %v6407_v54 }
0x1b0b   : > { %6058 = vmatmul.mubr.msk.bf16.vlgmr.msra.gmra.mrb[88].mxu0 %vm978_vm2, %v4032_v20  ;;  %v4082_v42 = vpop.permute.xlu1 %4081  ;;  %v6237_v60 = vpop.permute.xlu0 %6236 }
0x1b0c   : > { %6062 = vmatpush3.bf16.msra.mxu1 %v4082_v42  ;;  %6068 = vmatpush3.bf16.msra.mxu0 %v6407_v54  ;;  %v6239_v6 = vunpack.i.h.bf16 %v6237_v60  ;;  %v6238_v19 = vunpack.i.l.bf16 %v6237_v60 }
0x1b0d   : > { %6069 = vmatprep.subr.bf16.mxu0 %v6408_v31 }
0x1b0e   : > { %v6636_v49 = vpop.eup %6635 }
0x1b0f   : > { %v4030_v29 = vmul.f32 %v6636_v49, %v6628_v16  ;;  %v6227_v50 = vpop.permute.xlu1 %6226 }
0x1b10   : > { %6070 = vmatpush3.bf16.msra.mxu0 %v6408_v31  ;;  %v6229_v52 = vunpack.i.h.bf16 %v6227_v50  ;;  %v6228_v41 = vunpack.i.l.bf16 %v6227_v50 }
0x1b11   : > { %6071 = vmatprep.subr.bf16.mxu0 %v6409_v27 }
0x1b12   : > { %v6638_v57 = vpop.eup %6637  ;;  %v4177_v62 = vsel %vm883_vm1, %v7769_v47, %v6229_v52  ;;  %v4176_v8 = vsel %vm883_vm1, %v7767_v56, %v6228_v41 }
0x1b13   : > { %v4031_v51 = vmul.f32 %v6638_v57, %v6630_v5  ;;  %v6232_v11 = vpop.permute.xlu1 %6231  ;;  %v4180_v16 = vsel %vm1899_vm3, %v4176_v8, %v6238_v19  ;;  %v4181_v17 = vsel %vm1899_vm3, %v4177_v62, %v6239_v6 }
0x1b14   : > { %6072 = vmatpush3.bf16.msra.mxu0 %v6409_v27  ;;  %v6234_v35 = vunpack.i.h.bf16 %v6232_v11  ;;  %v6233_v59 = vunpack.i.l.bf16 %v6232_v11 }
0x1b15   : > { %v4033_v4 = vpack.c.bf16 %v4031_v51, %v4030_v29  ;;  %6073 = vmatprep.subr.bf16.mxu0 %v6410_v32 }
0x1b16   : > { %v4179_v9 = vsel %vm883_vm1, %v7777_v22, %v6234_v35  ;;  %v4178_v30 = vsel %vm883_vm1, %v7775_v7, %v6233_v59  ;;  %v5503_v22 = vld [vmem:[%s8043_s5 + $0x1] ss:$0 sm:$0xff]  ;;  %v6436_v35 = vld [vmem:[#allocation10 + $0x168] ss:$16 sps:$4 sm:$0xff]   ;;  %v6441_v59 = vld [vmem:[#allocation10 + $0x184] ss:$16 sps:$4 sm:$0xff]  }
0x1b17   : > { %6064 = vmatmul.mubr.msk.bf16.vlgmr.msra.gmra.mrb[92].mxu1 %vm978_vm2, %v4033_v4  ;;  %v6242_v47 = vpop.permute.xlu1 %6241 }
0x1b18   : > { %4634 = vmatprep.mubr.bf16.mxu1 %v6933_v0  ;;  %6074 = vmatpush3.bf16.msra.mxu0 %v6410_v32  ;;  %v6244_v56 = vunpack.i.h.bf16 %v6242_v47  ;;  %v6243_v21 = vunpack.i.l.bf16 %v6242_v47  ;;  %v6433_v47 = vld [vmem:[#allocation10 + $0x160] ss:$16 sps:$4 sm:$0xff]  }
0x1b19   : > { %6075 = vmatprep.subr.bf16.mxu0 %v6411_v12 }
0x1b1a   : > { %v4182_v20 = vsel %vm1899_vm3, %v4178_v30, %v6243_v21  ;;  %v4183_v42 = vsel %vm1899_vm3, %v4179_v9, %v6244_v56  ;;  %v6444_v56 = vld [vmem:[#allocation10 + $0x18c] ss:$16 sps:$4 sm:$0xff]   ;;  %v6439_v21 = vld [vmem:[#allocation10 + $0x180] ss:$16 sps:$4 sm:$0xff]   ;;  %v6447_v9 = vld [vmem:[#allocation10 + $0x1a4] ss:$16 sps:$4 sm:$0xff]  }
0x1b1b   : > { %v6450_v30 = vld [vmem:[#allocation10 + $0x1ac] ss:$16 sps:$4 sm:$0xff]  }
0x1b1c   : > { %6076 = vmatpush3.bf16.msra.mxu0 %v6411_v12 }
0x1b1d   : > { %6077 = vmatprep.subr.bf16.mxu0 %v6412_v38 }
0x1b20   : > { %6078 = vmatpush3.bf16.msra.mxu0 %v6412_v38 }
0x1b21   : > { %6079 = vmatprep.subr.bf16.mxu0 %v6413_v39 }
0x1b24   : > { %6080 = vmatpush3.bf16.msra.mxu0 %v6413_v39 }
0x1b25   : > { %6081 = vmatprep.subr.bf16.mxu0 %v6414_v10 }
0x1b28   : > { %6082 = vmatpush3.bf16.msra.mxu0 %v6414_v10  ;;  %v6420_v10 = vld [vmem:[#allocation10 + $0x10c] ss:$16 sps:$4 sm:$0xff]  }
0x1b29   : > { %4655 = vmatprep.subr.bf16.mxu0 %v6420_v10 }
0x1bde   : > { %v4074_v40 = vpop.f32.mrb[88].mxu0 }
0x1bdf   : > { %v6059_v28 = vpop.f32.mrb[89].mxu0 }
0x1be0   : > { %v4077_v18 = vpop.f32.mrb[90].mxu0 }
0x1be1   : > { %v6245_v58 = vpack.i.bf16 %v4077_v18, %v4074_v40  ;;  %v6060_v53 = vpop.f32.mrb[91].mxu0  ;;  %v6415_v18 = vld [vmem:[#allocation10 + $0x100] ss:$16 sps:$4 sm:$0xff]  }
0x1be2   : > { %v6418_v53 = vld [vmem:[#allocation10 + $0x108] ss:$16 sps:$4 sm:$0xff]  }
0x1be3   : > { %6246 = vrot.lane.b32.xlu0 %v6245_v58, %s6936_s24  ;;  %v6417_v58 = vld [vmem:[#allocation10 + $0x104] ss:$16 sps:$4 sm:$0xff]  }
0x1be4   : > { %4602 = vmatprep.subr.bf16.mxu1 %v6417_v58 }
0x1be5   : > { %4603 = vmatpush1.bf16.msra.mxu1 %v6415_v18 }
0x1bea   : > { %v4121_v45 = vpop.f32.mrb[92].mxu1 }
0x1beb   : > { %v6065_v3 = vpop.f32.mrb[93].mxu1 }
0x1bec   : > { %v4124_v46 = vpop.f32.mrb[94].mxu1  ;;  %v6426_v3 = vld [vmem:[#allocation10 + $0x12c] ss:$16 sps:$4 sm:$0xff]  }
0x1bed   : > { %v6250_v26 = vpack.i.bf16 %v4124_v46, %v4121_v45  ;;  %v6066_v24 = vpop.f32.mrb[95].mxu1  ;;  %v6423_v45 = vld [vmem:[#allocation10 + $0x124] ss:$16 sps:$4 sm:$0xff]  }
0x1bee   : > { %4604 = vmatprep.subr.bf16.mxu1 %v6423_v45 }
0x1bef   : > { %6251 = vrot.lane.b32.xlu1 %v6250_v26, %s6936_s24 }
0x1c55   : > { %v6247_v1 = vpop.permute.xlu0 %6246 }
0x1c56   : > { %v6249_v14 = vunpack.i.h.bf16 %v6247_v1  ;;  %v6248_v15 = vunpack.i.l.bf16 %v6247_v1 }
0x1c58   : > { %v4184_v5 = vsel %vm1904_vm4, %v4180_v16, %v6248_v15  ;;  %v4185_v13 = vsel %vm1904_vm4, %v4181_v17, %v6249_v14  ;;  %v6429_v15 = vld [vmem:[#allocation10 + $0x144] ss:$16 sps:$4 sm:$0xff]   ;;  %v6432_v16 = vld [vmem:[#allocation10 + $0x14c] ss:$16 sps:$4 sm:$0xff]   ;;  %v6427_v17 = vld [vmem:[#allocation10 + $0x140] ss:$16 sps:$4 sm:$0xff]  }
0x1c59   : > { %v4188_v23 = vpack.c.bf16 %v4185_v13, %v4184_v5  ;;  %v6430_v5 = vld [vmem:[#allocation10 + $0x148] ss:$16 sps:$4 sm:$0xff]   ;;  %v6435_v13 = vld [vmem:[#allocation10 + $0x164] ss:$16 sps:$4 sm:$0xff]  }
0x1c5b   : > { %6083 = vmatprep.mubr.bf16.mxu0 %v4188_v23  ;;  %v6438_v23 = vld [vmem:[#allocation10 + $0x16c] ss:$16 sps:$4 sm:$0xff]  }
0x1c61   : > { %v6252_v25 = vpop.permute.xlu1 %6251 }
0x1c62   : > { %v6254_v63 = vunpack.i.h.bf16 %v6252_v25  ;;  %v6253_v2 = vunpack.i.l.bf16 %v6252_v25  ;;  %v6442_v25 = vld [vmem:[#allocation10 + $0x188] ss:$16 sps:$4 sm:$0xff]  }
0x1c64   : > { %v4186_v49 = vsel %vm1904_vm4, %v4182_v20, %v6253_v2  ;;  %v4187_v57 = vsel %vm1904_vm4, %v4183_v42, %v6254_v63  ;;  %v6445_v63 = vld [vmem:[#allocation10 + $0x1a0] ss:$16 sps:$4 sm:$0xff]   ;;  %v6448_v2 = vld [vmem:[#allocation10 + $0x1a8] ss:$16 sps:$4 sm:$0xff]   ;;  %v6453_v20 = vld [vmem:[#allocation10 + $0x1c4] ss:$16 sps:$4 sm:$0xff]  }
0x1c65   : > { %v4189_v29 = vpack.c.bf16 %v4187_v57, %v4186_v49  ;;  %v6456_v42 = vld [vmem:[#allocation10 + $0x1cc] ss:$16 sps:$4 sm:$0xff]   ;;  %v6451_v49 = vld [vmem:[#allocation10 + $0x1c0] ss:$16 sps:$4 sm:$0xff]   ;;  %v6454_v57 = vld [vmem:[#allocation10 + $0x1c8] ss:$16 sps:$4 sm:$0xff]  }
0x1c67   : > { %6084 = vmatmul.mubr.bf16.vlgmr.msra.gmra.mrb[92].mxu0 %v4189_v29  ;;  %v6459_v29 = vld [vmem:[#allocation10 + $0x1e4] ss:$16 sps:$4 sm:$0xff]  }
0x1c68   : > { %4687 = vmatprep.mubr.bf16.mxu0 %v6933_v0  ;;  %4656 = vmatpush1.bf16.msra.mxu0 %v6418_v53 }
0x1c69   : > { %4657 = vmatprep.subr.bf16.mxu0 %v6426_v3  ;;  %v5514_v3 = vld [vmem:[%s8044_s6 + $0x1] ss:$0 sm:$0xff] }
0x1d3a   : > { %v6085_v51 = vpop.f32.mrb[92].mxu0 }
0x1d3b   : > { %v4297_v7 = vpop.f32.mrb[93].mxu0  ;;  %v4306_v27 = vadd.f32 %v6085_v51, %v5503_v22  ;;  %v6457_v51 = vld [vmem:[#allocation10 + $0x1e0] ss:$16 sps:$4 sm:$0xff]  }
0x1d3c   : > { %v4298_v4 = vadd.f32 %v5503_v22, %v4297_v7  ;;  %v6086_v54 = vpop.f32.mrb[94].mxu0  ;;  %v6460_v7 = vld [vmem:[#allocation10 + $0x1e8] ss:$16 sps:$4 sm:$0xff]  }
0x1d3d   : > { %v4300_v31 = vpop.f32.mrb[95].mxu0  ;;  %v4314_v39 = vadd.f32 %v4306_v27, %v7673_v43  ;;  %v4309_v40 = vadd.f32 %v6086_v54, %v5503_v22  ;;  %v6464_v54 = vld [vmem:[#allocation11 + $0x1c0] sm:$0xff]  }
0x1d3e   : > { %v4312_v32 = vadd.f32 %v4298_v4, %v7664_v61  ;;  %v4301_v12 = vadd.f32 %v5503_v22, %v4300_v31  ;;  %v6421_v61 = vld [vmem:[#allocation10 + $0x120] ss:$16 sps:$4 sm:$0xff]   ;;  %v6462_v22 = vld [vmem:[#allocation10 + $0x1ec] ss:$16 sps:$4 sm:$0xff]  }
0x1d3f   : > { %v4315_v28 = vadd.f32 %v4309_v40, %v7675_v55  ;;  %4605 = vmatpush1.bf16.msra.mxu1 %v6421_v61  ;;  %v6463_v4 = vld [vmem:[#allocation11 + $0x140] sm:$0xff]  }
0x1d40   : > { %v4313_v38 = vadd.f32 %v4301_v12, %v7666_v37  ;;  %4320 = vadd.xlane.f32.xlu0 %v4312_v32  ;;  %v6424_v37 = vld [vmem:[#allocation10 + $0x128] ss:$16 sps:$4 sm:$0xff]   ;;  %4606 = vmatprep.subr.bf16.mxu1 %v6429_v15 }
0x1d41   : > { %4658 = vmatpush1.bf16.msra.mxu0 %v6424_v37  ;;  %v6468_v15 = vld [vmem:[#allocation11 + $0x1c8] sm:$0xff]  }
0x1d42   : > { %4322 = vadd.xlane.f32.xlu1 %v4313_v38  ;;  %4659 = vmatprep.subr.bf16.mxu0 %v6432_v16 }
0x1d43   : > { %4607 = vmatpush1.bf16.msra.mxu1 %v6427_v17 }
0x1d44   : > { %4324 = vadd.xlane.f32.xlu0 %v4314_v39  ;;  %4608 = vmatprep.subr.bf16.mxu1 %v6435_v13  ;;  %v6470_v13 = vld [vmem:[#allocation11 + $0x188] sm:$0xff]  }
0x1d45   : > { %4660 = vmatpush1.bf16.msra.mxu0 %v6430_v5 }
0x1d46   : > { %4661 = vmatprep.subr.bf16.mxu0 %v6438_v23  ;;  %v6472_v23 = vld [vmem:[#allocation11 + $0x1d0] sm:$0xff]  }
0x1d47   : > { %4609 = vmatpush1.bf16.msra.mxu1 %v6433_v47 }
0x1d48   : > { %4326 = vadd.xlane.f32.xlu0 %v4315_v28  ;;  %4610 = vmatprep.subr.bf16.mxu1 %v6441_v59  ;;  %v6473_v59 = vld [vmem:[#allocation11 + $0x110] sm:$0xff]  }
0x1d49   : > { %4662 = vmatpush1.bf16.msra.mxu0 %v6436_v35 }
0x1d4a   : > { %4663 = vmatprep.subr.bf16.mxu0 %v6444_v56  ;;  %v6474_v56 = vld [vmem:[#allocation11 + $0x190] sm:$0xff]  }
0x1d4b   : > { %4611 = vmatpush1.bf16.msra.mxu1 %v6439_v21  ;;  %v6476_v21 = vld [vmem:[#allocation11 + $0x1d8] sm:$0xff]  }
0x1d4c   : > { %4612 = vmatprep.subr.bf16.mxu1 %v6447_v9  ;;  %v6478_v9 = vld [vmem:[#allocation11 + $0x198] sm:$0xff]  }
0x1d4d   : > { %4664 = vmatpush1.bf16.msra.mxu0 %v6442_v25  ;;  %v6477_v25 = vld [vmem:[#allocation11 + $0x118] sm:$0xff]  }
0x1d4e   : > { %4665 = vmatprep.subr.bf16.mxu0 %v6450_v30  ;;  %v6479_v30 = vld [vmem:[#allocation11 + $0x160] sm:$0xff]  }
0x1d4f   : > { %4613 = vmatpush1.bf16.msra.mxu1 %v6445_v63  ;;  %v6480_v63 = vld [vmem:[#allocation11 + $0x1e0] sm:$0xff]  }
0x1d50   : > { %4614 = vmatprep.subr.bf16.mxu1 %v6453_v20  ;;  %v6482_v20 = vld [vmem:[#allocation11 + $0x1a0] sm:$0xff]  }
0x1d51   : > { %4666 = vmatpush1.bf16.msra.mxu0 %v6448_v2  ;;  %v6481_v2 = vld [vmem:[#allocation11 + $0x120] sm:$0xff]  }
0x1d52   : > { %4667 = vmatprep.subr.bf16.mxu0 %v6456_v42  ;;  %v6483_v42 = vld [vmem:[#allocation11 + $0x168] sm:$0xff]  }
0x1d53   : > { %4615 = vmatpush1.bf16.msra.mxu1 %v6451_v49  ;;  %v6484_v49 = vld [vmem:[#allocation11 + $0x1e8] sm:$0xff]  }
0x1d54   : > { %4616 = vmatprep.subr.bf16.mxu1 %v6459_v29  ;;  %v6486_v29 = vld [vmem:[#allocation11 + $0x1a8] sm:$0xff]  }
0x1d55   : > { %4668 = vmatpush1.bf16.msra.mxu0 %v6454_v57  ;;  %v6485_v57 = vld [vmem:[#allocation11 + $0x128] sm:$0xff]  }
0x1d56   : > { %4669 = vmatprep.subr.bf16.mxu0 %v6462_v22  ;;  %v6487_v22 = vld [vmem:[#allocation11 + $0x170] sm:$0xff]  }
0x1d57   : > { %4617 = vmatpush1.bf16.msra.mxu1 %v6457_v51  ;;  %v6488_v51 = vld [vmem:[#allocation11 + $0x1f0] sm:$0xff]  }
0x1d58   : > { %5759 = vmatprep.subr.bf16.mxu1 %v6463_v4  ;;  %v6490_v4 = vld [vmem:[#allocation11 + $0x1b0] sm:$0xff]  }
0x1d59   : > { %4670 = vmatpush1.bf16.msra.mxu0 %v6460_v7  ;;  %v6489_v7 = vld [vmem:[#allocation11 + $0x130] sm:$0xff]  }
0x1d5a   : > { %5787 = vmatprep.subr.bf16.mxu0 %v6464_v54  ;;  %v6491_v54 = vld [vmem:[#allocation11 + $0x178] sm:$0xff]  }
0x1dcd   : > { %v4321_v43 = vpop.xlane.xlu0 %4320 }
0x1dce   : > { %v4328_v46 = vmul.f32 0.0078125, %v4321_v43 }
0x1dcf   : > { %v4323_v55 = vpop.xlane.xlu1 %4322 }
0x1dd0   : > { %v7926_v26 = vsub.f32 %v4312_v32, %v4328_v46  ;;  %v4329_v24 = vmul.f32 0.0078125, %v4323_v55 }
0x1dd1   : > { %v4325_v50 = vpop.xlane.xlu0 %4324 }
0x1dd2   : > { %v7928_v52 = vsub.f32 %v4313_v38, %v4329_v24  ;;  %v4330_v41 = vmul.f32 0.0078125, %v4325_v50  ;;  %v4336_v60 = vmul.f32 %v7926_v26, %v7926_v26  ;;  %v5515_v24 = vld [vmem:[%s8045_s7 + $0x1] ss:$0 sm:$0xff] }
0x1dd4   : > { %v7932_v62 = vsub.f32 %v4314_v39, %v4330_v41  ;;  %4340 = vadd.xlane.f32.xlu0 %v4336_v60  ;;  %v4337_v8 = vmul.f32 %v7928_v52, %v7928_v52 }
0x1dd5   : > { %v4327_v6 = vpop.xlane.xlu0 %4326 }
0x1dd6   : > { %v4331_v19 = vmul.f32 0.0078125, %v4327_v6  ;;  %4342 = vadd.xlane.f32.xlu1 %v4337_v8  ;;  %v4338_v1 = vmul.f32 %v7932_v62, %v7932_v62 }
0x1dd8   : > { %v7938_v11 = vsub.f32 %v4315_v28, %v4331_v19  ;;  %4344 = vadd.xlane.f32.xlu0 %v4338_v1  ;;  %v6466_v1 = vld [vmem:[#allocation11 + $0x180] sm:$0xff]  }
0x1dda   : > { %v4339_v14 = vmul.f32 %v7938_v11, %v7938_v11 }
0x1ddc   : > { %4346 = vadd.xlane.f32.xlu1 %v4339_v14  ;;  %v6467_v14 = vld [vmem:[#allocation11 + $0x148] sm:$0xff]  }
0x1e61   : > { %v4341_v31 = vpop.xlane.xlu0 %4340 }
0x1e62   : > { %v4348_v27 = vmul.f32 0.0078125, %v4341_v31  ;;  %v6492_v31 = vld [vmem:[#allocation11 + $0x1f8] sm:$0xff]  }
0x1e63   : > { %v4343_v32 = vpop.xlane.xlu1 %4342 }
0x1e64   : > { %v4352_v12 = vadd.f32 1e-05, %v4348_v27  ;;  %v4349_v38 = vmul.f32 0.0078125, %v4343_v32  ;;  %v6493_v27 = vld [vmem:[#allocation11 + $0x138] sm:$0xff]  }
0x1e65   : > { %v4345_v39 = vpop.xlane.xlu0 %4344  ;;  %v6494_v32 = vld [vmem:[#allocation11 + $0x1b8] sm:$0xff]  }
0x1e66   : > { %6639 = vrsqrt.f32 %v4352_v12  ;;  %v4353_v40 = vadd.f32 1e-05, %v4349_v38  ;;  %v4350_v28 = vmul.f32 0.0078125, %v4345_v39  ;;  %v5516_v12 = vld [vmem:[%s8098_s4 + $0x4] sm:$0xf] }
0x1e67   : > { %v4425_v38 = vrot.slane %v5516_v12, %v7327_v34  ;;  %v4433_v39 = vrot.slane %v5516_v12, %v7340_v48 }
0x1e68   : > { %6641 = vrsqrt.f32 %v4353_v40  ;;  %v4354_v18 = vadd.f32 1e-05, %v4350_v28  ;;  %v4429_v40 = vrot.slane %v5516_v12, %v7333_v36  ;;  %v4437_v28 = vrot.slane %v5516_v12, %v2152_v44 }
0x1e69   : > { %v4347_v58 = vpop.xlane.xlu1 %4346 }
0x1e6a   : > { %6643 = vrsqrt.f32 %v4354_v18  ;;  %v4351_v53 = vmul.f32 0.0078125, %v4347_v58 }
0x1e6c   : > { %v4355_v10 = vadd.f32 1e-05, %v4351_v53 }
0x1e6e   : > { %6645 = vrsqrt.f32 %v4355_v10 }
0x1e70   : > { %v6640_v45 = vpop.eup %6639 }
0x1e71   : > { %v4360_v61 = vmul.f32 %v6640_v45, %v7926_v26 }
0x1e72   : > { %v6642_v37 = vpop.eup %6641 }
0x1e73   : > { %v4361_v43 = vmul.f32 %v6642_v37, %v7928_v52  ;;  %v4370_v46 = vmul.f32 %v5514_v3, %v4360_v61  ;;  %v6465_v52 = vld [vmem:[#allocation11 + $0x100] sm:$0xff]  }
0x1e74   : > { %v6644_v55 = vpop.eup %6643 }
0x1e75   : > { %v4371_v50 = vmul.f32 %v5514_v3, %v4361_v43  ;;  %v7950_v41 = vadd.f32 %v5515_v24, %v4370_v46  ;;  %v4362_v8 = vmul.f32 %v6644_v55, %v7932_v62  ;;  %v6469_v62 = vld [vmem:[#allocation11 + $0x108] sm:$0xff]  }
0x1e77   : > { %v7952_v60 = vadd.f32 %v5515_v24, %v4371_v50  ;;  %v4372_v16 = vmul.f32 %v5514_v3, %v4362_v8 }
0x1e78   : > { %v6646_v6 = vpop.eup %6645 }
0x1e79   : > { %v4384_v26 = vpack.c.bf16 %v7952_v60, %v7950_v41  ;;  %v4363_v19 = vmul.f32 %v6646_v6, %v7938_v11  ;;  %v6471_v11 = vld [vmem:[#allocation11 + $0x150] sm:$0xff]   ;;  %v7962_v47 = vadd.f32 %v5515_v24, %v4372_v16 }
0x1e7b   : > { %4635 = vmatmul.mubr.bf16.vlgmr.msra.gmra.mrb[96].mxu1 %v4384_v26  ;;  %4688 = vmatmul.mubr.bf16.vlgmr.msra.gmra.mrb[96].mxu0 %v4384_v26  ;;  %v4373_v17 = vmul.f32 %v5514_v3, %v4363_v19 }
0x1e7c   : > { %4644 = vmatprep.mubr.bf16.mxu1 %v6933_v0  ;;  %4697 = vmatprep.mubr.bf16.mxu0 %v6933_v0  ;;  %v6475_v0 = vld [vmem:[#allocation11 + $0x158] sm:$0xff]  }
0x1e7d   : > { %v7960_v5 = vadd.f32 %v5515_v24, %v4373_v17  ;;  %5760 = vmatpush3.bf16.msra.mxu1 %v6465_v52  ;;  %5788 = vmatpush3.bf16.msra.mxu0 %v6466_v1 }
0x1e7e   : > { %5761 = vmatprep.subr.bf16.mxu1 %v6467_v14  ;;  %5789 = vmatprep.subr.bf16.mxu0 %v6468_v15 }
0x1e7f   : > { %v4385_v35 = vpack.c.bf16 %v7960_v5, %v7962_v47 }
0x1e81   : > { %5762 = vmatpush3.bf16.msra.mxu1 %v6469_v62  ;;  %5790 = vmatpush3.bf16.msra.mxu0 %v6470_v13 }
0x1e82   : > { %5763 = vmatprep.subr.bf16.mxu1 %v6471_v11  ;;  %5791 = vmatprep.subr.bf16.mxu0 %v6472_v23 }
0x1e83   : > { %4645 = vmatmul.mubr.bf16.gmra.mrb[100].mxu1 %v4385_v35  ;;  %4698 = vmatmul.mubr.bf16.gmra.mrb[100].mxu0 %v4385_v35 }
0x1e85   : > { %5764 = vmatpush3.bf16.msra.mxu1 %v6473_v59  ;;  %5792 = vmatpush3.bf16.msra.mxu0 %v6474_v56 }
0x1e86   : > { %5765 = vmatprep.subr.bf16.mxu1 %v6475_v0  ;;  %5793 = vmatprep.subr.bf16.mxu0 %v6476_v21 }
0x1e89   : > { %5766 = vmatpush3.bf16.msra.mxu1 %v6477_v25  ;;  %5794 = vmatpush3.bf16.msra.mxu0 %v6478_v9 }
0x1e8a   : > { %5767 = vmatprep.subr.bf16.mxu1 %v6479_v30  ;;  %5795 = vmatprep.subr.bf16.mxu0 %v6480_v63 }
0x1e8d   : > { %5768 = vmatpush3.bf16.msra.mxu1 %v6481_v2  ;;  %5796 = vmatpush3.bf16.msra.mxu0 %v6482_v20 }
0x1e8e   : > { %5769 = vmatprep.subr.bf16.mxu1 %v6483_v42  ;;  %5797 = vmatprep.subr.bf16.mxu0 %v6484_v49 }
0x1e91   : > { %5770 = vmatpush3.bf16.msra.mxu1 %v6485_v57  ;;  %5798 = vmatpush3.bf16.msra.mxu0 %v6486_v29 }
0x1e92   : > { %5771 = vmatprep.subr.bf16.mxu1 %v6487_v22  ;;  %5799 = vmatprep.subr.bf16.mxu0 %v6488_v51 }
0x1e95   : > { %5772 = vmatpush3.bf16.msra.mxu1 %v6489_v7  ;;  %5800 = vmatpush3.bf16.msra.mxu0 %v6490_v4 }
0x1e96   : > { %5773 = vmatprep.subr.bf16.mxu1 %v6491_v54  ;;  %5801 = vmatprep.subr.bf16.mxu0 %v6492_v31 }
0x1e99   : > { %5774 = vmatpush3.bf16.msra.mxu1 %v6493_v27  ;;  %5802 = vmatpush3.bf16.msra.mxu0 %v6494_v32 }
0x1f4e   : > { %v4636_v18 = vpop.f32.mrb[96].mxu1  ;;  %v4689_v58 = vpop.f32.mrb[96].mxu0 }
0x1f4f   : > { %v4637_v53 = vadd.f32 %v4636_v18, %v4425_v38  ;;  %v4690_v10 = vadd.f32 %v4689_v58, %v4433_v39  ;;  %v4638_v45 = vpop.f32.mrb[97].mxu1  ;;  %v4691_v3 = vpop.f32.mrb[97].mxu0 }
0x1f50   : > { %v4639_v61 = vadd.f32 %v4638_v45, %v4429_v40  ;;  %v4692_v37 = vadd.f32 %v4691_v3, %v4437_v28  ;;  %v4640_v43 = vpop.f32.mrb[98].mxu1  ;;  %v4693_v46 = vpop.f32.mrb[98].mxu0 }
0x1f51   : > { %v4641_v55 = vadd.f32 %v4640_v43, %v4425_v38  ;;  %v4694_v24 = vadd.f32 %v4693_v46, %v4433_v39  ;;  %v4642_v34 = vpop.f32.mrb[99].mxu1  ;;  %v4695_v50 = vpop.f32.mrb[99].mxu0  ;;  %v4708_v36 = vmax.f32 %v4637_v53, 0.0  ;;  %v4710_v6 = vmax.f32 %v4690_v10, 0.0 }
0x1f52   : > { %v4643_v48 = vadd.f32 %v4642_v34, %v4429_v40  ;;  %v4696_v8 = vadd.f32 %v4695_v50, %v4437_v28  ;;  %v4709_v26 = vmax.f32 %v4639_v61, 0.0  ;;  %v4711_v19 = vmax.f32 %v4692_v37, 0.0 }
0x1f53   : > { %v4712_v33 = vmax.f32 %v4641_v55, 0.0  ;;  %v4714_v44 = vmax.f32 %v4694_v24, 0.0 }
0x1f54   : > { %v4713_v52 = vmax.f32 %v4643_v48, 0.0  ;;  %v4715_v1 = vmax.f32 %v4696_v8, 0.0 }
0x1f55   : > { %v4724_v14 = vpack.c.bf16 %v4712_v33, %v4708_v36  ;;  %v4726_v15 = vpack.c.bf16 %v4714_v44, %v4710_v6 }
0x1f56   : > { %v4725_v16 = vpack.c.bf16 %v4713_v52, %v4709_v26  ;;  %v4727_v17 = vpack.c.bf16 %v4715_v1, %v4711_v19  ;;  %v4646_v62 = vpop.f32.mrb[100].mxu1  ;;  %v4699_v13 = vpop.f32.mrb[100].mxu0 }
0x1f57   : > { %v4647_v11 = vadd.f32 %v4646_v62, %v4425_v38  ;;  %v4700_v23 = vadd.f32 %v4699_v13, %v4433_v39  ;;  %v4648_v35 = vpop.f32.mrb[101].mxu1  ;;  %v4701_v59 = vpop.f32.mrb[101].mxu0 }
0x1f58   : > { %v4649_v56 = vadd.f32 %v4648_v35, %v4429_v40  ;;  %v4702_v0 = vadd.f32 %v4701_v59, %v4437_v28  ;;  %v4650_v21 = vpop.f32.mrb[102].mxu1  ;;  %v4703_v25 = vpop.f32.mrb[102].mxu0  ;;  %5029 = vmatprep.mubr.bf16.mxu1 %v4725_v16  ;;  %5078 = vmatprep.mubr.bf16.mxu0 %v4727_v17 }
0x1f59   : > { %v4651_v9 = vadd.f32 %v4650_v21, %v4425_v38  ;;  %v4704_v30 = vadd.f32 %v4703_v25, %v4433_v39  ;;  %v4652_v63 = vpop.f32.mrb[103].mxu1  ;;  %v4705_v2 = vpop.f32.mrb[103].mxu0  ;;  %5030 = vmatmul.mubr.bf16.vlgmr.msra.gmra.mrb[104].mxu1 %v4724_v14  ;;  %5079 = vmatmul.mubr.bf16.vlgmr.msra.gmra.mrb[104].mxu0 %v4726_v15  ;;  %v4716_v49 = vmax.f32 %v4647_v11, 0.0  ;;  %v4718_v57 = vmax.f32 %v4700_v23, 0.0 }
0x1f5a   : > { %v4653_v20 = vadd.f32 %v4652_v63, %v4429_v40  ;;  %v4706_v42 = vadd.f32 %v4705_v2, %v4437_v28  ;;  %v4717_v51 = vmax.f32 %v4649_v56, 0.0  ;;  %v4719_v7 = vmax.f32 %v4702_v0, 0.0  ;;  %v5550_v40 = vld [vmem:[%s8099_s20 + $0x1] ss:$0 sm:$0xff] }
0x1f5b   : > { %v4720_v29 = vmax.f32 %v4651_v9, 0.0  ;;  %v4722_v22 = vmax.f32 %v4704_v30, 0.0 }
0x1f5c   : > { %v4721_v4 = vmax.f32 %v4653_v20, 0.0  ;;  %v4723_v54 = vmax.f32 %v4706_v42, 0.0 }
0x1f5d   : > { %v4728_v31 = vpack.c.bf16 %v4720_v29, %v4716_v49  ;;  %v4730_v27 = vpack.c.bf16 %v4722_v22, %v4718_v57 }
0x1f5e   : > { %v4729_v32 = vpack.c.bf16 %v4721_v4, %v4717_v51  ;;  %v4731_v12 = vpack.c.bf16 %v4723_v54, %v4719_v7 }
0x1f60   : > { %5037 = vmatprep.mubr.bf16.mxu1 %v4729_v32  ;;  %5086 = vmatprep.mubr.bf16.mxu0 %v4731_v12 }
0x1f61   : > { %5038 = vmatmul.mubr.bf16.gmra.mrb[108].mxu1 %v4728_v31  ;;  %5087 = vmatmul.mubr.bf16.gmra.mrb[108].mxu0 %v4730_v27 }
0x202c   : > { %v5775_v38 = vpop.f32.mrb[104].mxu1  ;;  %v5803_v39 = vpop.f32.mrb[104].mxu0 }
0x202d   : > { %v5776_v28 = vpop.f32.mrb[105].mxu1  ;;  %v5804_v18 = vpop.f32.mrb[105].mxu0 }
0x202e   : > { %v5777_v58 = vadd.f32 %v5776_v28, %v5775_v38  ;;  %v5805_v53 = vadd.f32 %v5804_v18, %v5803_v39  ;;  %v5778_v10 = vpop.f32.mrb[106].mxu1  ;;  %v5806_v45 = vpop.f32.mrb[106].mxu0 }
0x202f   : > { %v5779_v3 = vpop.f32.mrb[107].mxu1  ;;  %v5807_v61 = vpop.f32.mrb[107].mxu0 }
0x2030   : > { %v5032_v37 = vadd.f32 %v5777_v58, %v5550_v40  ;;  %v5780_v43 = vadd.f32 %v5779_v3, %v5778_v10  ;;  %v5808_v46 = vadd.f32 %v5807_v61, %v5806_v45  ;;  %v5586_v58 = vld [vmem:[%s8101_s2 + $0x1] ss:$0 sm:$0xff] }
0x2032   : > { %v5081_v55 = vadd.f32 %v5805_v53, %v5032_v37  ;;  %v5035_v24 = vadd.f32 %v5780_v43, %v5550_v40 }
0x2034   : > { %v5084_v34 = vadd.f32 %v5808_v46, %v5035_v24  ;;  %v5781_v50 = vpop.f32.mrb[108].mxu1  ;;  %v5809_v48 = vpop.f32.mrb[108].mxu0  ;;  %v5095_v8 = vadd.f32 %v5081_v55, %v7950_v41 }
0x2035   : > { %v5782_v36 = vpop.f32.mrb[109].mxu1  ;;  %v5810_v6 = vpop.f32.mrb[109].mxu0 }
0x2036   : > { %v5783_v33 = vadd.f32 %v5782_v36, %v5781_v50  ;;  %v5811_v44 = vadd.f32 %v5810_v6, %v5809_v48  ;;  %v5812_v26 = vpop.f32.mrb[110].mxu0  ;;  %5103 = vadd.xlane.f32.xlu0 %v5095_v8  ;;  %v5784_v19 = vpop.f32.mrb[110].mxu1  ;;  %v5096_v52 = vadd.f32 %v5084_v34, %v7952_v60 }
0x2037   : > { %v5785_v1 = vpop.f32.mrb[111].mxu1  ;;  %v5813_v14 = vpop.f32.mrb[111].mxu0 }
0x2038   : > { %v5040_v15 = vadd.f32 %v5783_v33, %v5550_v40  ;;  %v5786_v16 = vadd.f32 %v5785_v1, %v5784_v19  ;;  %v5814_v17 = vadd.f32 %v5813_v14, %v5812_v26  ;;  %5105 = vadd.xlane.f32.xlu1 %v5096_v52 }
0x203a   : > { %v5089_v62 = vadd.f32 %v5811_v44, %v5040_v15  ;;  %v5043_v13 = vadd.f32 %v5786_v16, %v5550_v40  ;;  %v5585_v40 = vld [vmem:[%s8100_s0 + $0x1] ss:$0 sm:$0xff] }
0x203c   : > { %v5092_v11 = vadd.f32 %v5814_v17, %v5043_v13  ;;  %v5097_v41 = vadd.f32 %v5089_v62, %v7962_v47 }
0x203e   : > { %5107 = vadd.xlane.f32.xlu0 %v5097_v41  ;;  %v5098_v23 = vadd.f32 %v5092_v11, %v7960_v5 }
0x2040   : > { %5109 = vadd.xlane.f32.xlu1 %v5098_v23 }
0x20c3   : > { %v5104_v35 = vpop.xlane.xlu0 %5103 }
0x20c4   : > { %v5111_v59 = vmul.f32 0.0078125, %v5104_v35 }
0x20c5   : > { %v5106_v56 = vpop.xlane.xlu1 %5105 }
0x20c6   : > { %v5115_v0 = vsub.f32 %v5095_v8, %v5111_v59  ;;  %v5112_v60 = vmul.f32 0.0078125, %v5106_v56 }
0x20c8   : > { %v5116_v21 = vsub.f32 %v5096_v52, %v5112_v60  ;;  %v5119_v25 = vmul.f32 %v5115_v0, %v5115_v0 }
0x20ca   : > { %5123 = vadd.xlane.f32.xlu0 %v5119_v25  ;;  %v5120_v9 = vmul.f32 %v5116_v21, %v5116_v21 }
0x20cb   : > { %v5108_v30 = vpop.xlane.xlu0 %5107 }
0x20cc   : > { %v5113_v63 = vmul.f32 0.0078125, %v5108_v30  ;;  %5125 = vadd.xlane.f32.xlu1 %v5120_v9 }
0x20cd   : > { %v5110_v2 = vpop.xlane.xlu1 %5109 }
0x20ce   : > { %v5117_v20 = vsub.f32 %v5097_v41, %v5113_v63  ;;  %v5114_v42 = vmul.f32 0.0078125, %v5110_v2 }
0x20d0   : > { %v5118_v47 = vsub.f32 %v5098_v23, %v5114_v42  ;;  %v5121_v49 = vmul.f32 %v5117_v20, %v5117_v20 }
0x20d2   : > { %5127 = vadd.xlane.f32.xlu0 %v5121_v49  ;;  %v5122_v5 = vmul.f32 %v5118_v47, %v5118_v47 }
0x20d4   : > { %5129 = vadd.xlane.f32.xlu1 %v5122_v5 }
0x2157   : > { %v5124_v57 = vpop.xlane.xlu0 %5123 }
0x2158   : > { %v5131_v29 = vmul.f32 0.0078125, %v5124_v57 }
0x2159   : > { %v5126_v22 = vpop.xlane.xlu1 %5125 }
0x215a   : > { %v5135_v51 = vadd.f32 1e-05, %v5131_v29  ;;  %v5132_v7 = vmul.f32 0.0078125, %v5126_v22 }
0x215c   : > { %6647 = vrsqrt.f32 %v5135_v51  ;;  %v5136_v4 = vadd.f32 1e-05, %v5132_v7 }
0x215e   : > { %6649 = vrsqrt.f32 %v5136_v4 }
0x215f   : > { %v5128_v54 = vpop.xlane.xlu0 %5127 }
0x2160   : > { %v5133_v31 = vmul.f32 0.0078125, %v5128_v54 }
0x2161   : > { %v5130_v27 = vpop.xlane.xlu1 %5129 }
0x2162   : > { %v5137_v32 = vadd.f32 1e-05, %v5133_v31  ;;  %v5134_v12 = vmul.f32 0.0078125, %v5130_v27 }
0x2164   : > { %6651 = vrsqrt.f32 %v5137_v32  ;;  %v5138_v38 = vadd.f32 1e-05, %v5134_v12 }
0x2166   : > { %v6648_v39 = vpop.eup %6647  ;;  %6653 = vrsqrt.f32 %v5138_v38 }
0x2167   : > { %v5143_v28 = vmul.f32 %v6648_v39, %v5115_v0 }
0x2168   : > { %v6650_v18 = vpop.eup %6649 }
0x2169   : > { %v5153_v53 = vmul.f32 %v5585_v40, %v5143_v28  ;;  %v5144_v10 = vmul.f32 %v6650_v18, %v5116_v21 }
0x216b   : > { %v5163_v45 = vadd.f32 %v5586_v58, %v5153_v53  ;;  %v5154_v3 = vmul.f32 %v5585_v40, %v5144_v10 }
0x216d   : > { %5167 = vst [vmem:[%s585_s23] sm:$0xff] %v5163_v45  ;;  %v5164_v61 = vadd.f32 %v5586_v58, %v5154_v3 }
0x216e   : > { %v6652_v37 = vpop.eup %6651 }
0x216f   : > { %5168 = vst [vmem:[%s585_s23 + $0x8] sm:$0xff] %v5164_v61  ;;  %v5145_v43 = vmul.f32 %v6652_v37, %v5117_v20 }
0x2170   : > { %v6654_v46 = vpop.eup %6653 }
0x2171   : > { %v5155_v55 = vmul.f32 %v5585_v40, %v5145_v43  ;;  %v5146_v24 = vmul.f32 %v6654_v46, %v5118_v47 }
0x2173   : > { %v5165_v34 = vadd.f32 %v5586_v58, %v5155_v55  ;;  %v5156_v50 = vmul.f32 %v5585_v40, %v5146_v24 }
0x2175   : > { %5169 = vst [vmem:[%s585_s23 + $0x10] sm:$0xff] %v5165_v34  ;;  %v5166_v48 = vadd.f32 %v5586_v58, %v5156_v50 }
0x2177   : > { %5170 = vst [vmem:[%s585_s23 + $0x18] sm:$0xff] %v5166_v48 }
0x2178   : > { %6848 = shalt.err (!%p6845_p8)
}
0x2179   : > { %s6849_s9 = scalar_lea.hbm %s7992_s25, 512  ;;  %s6853_s12 = scalar_lea.hbm %s8102_s14, 1024 }
0x217a   : > { %p6850_p11 = scmp.ne.s32.totalorder %s7992_s25, %s6849_s9  ;;  %p6854_p2 = scmp.lt.u32.totalorder %s7992_s25, %s8102_s14 }
0x217b   : > { %p6855_p1 = scmp.lt.u32.totalorder %s6853_s12, %s6849_s9  ;;  %p6857_p0 = scmp.lt.u32.totalorder %s6849_s9, %s7992_s25 }
0x217c   : > { %p6851_p7 = pnand %p6850_p11, %p7179_p10 }
0x217d   : > { %p6856_p13 = por %p6855_p1, %p6854_p2 }
0x217e   : > { %p6852_p12 = pneg %p6851_p7 }
0x217f   : > { %p6858_p4 = por %p6857_p0, %p6856_p13 }
0x2181   : > { %p6859_p6 = pnand %p6858_p4, %p6852_p12 }
0x2183   : > { %6862 = shalt.err (!%p6859_p6)
}
0x2184   : > { %s6940_s22 = smov 128   ;;  %s6941_s17 = smov 8  }
0x2185   : > { %6107 = dma.vmem_to_hbm [thread:$0]  (%p7179_p10), %s7994_s21, 512, %s7992_s25, %s5172_s26, %s6940_s22, %s6940_s22, %s6941_s17  }
0x2186 PF: > { %s8103_s13 = sld [smem:[#allocation20_spill]]  ;;  %s8104_s18 = sld [smem:[#allocation21_spill]] }
0x2187   : > { %p8106_p5 = scmp.ge.s32.totalorder %s6917_s16, 2 }
0x218c   : > { %s5201_s24 = sand.u32 1, %s8103_s13   ;;  %p8105_p3 = scmp.ne.s32.totalorder %s8104_s18, 0 }
0x218d   : > { %s5202_s9 = scalar_lea.sflag [#allocation4], %s5201_s24 }
0x218e   : > { %p6130_p9 = pnand %p8106_p5, %p8105_p3 }
0x2190   : > { %6900 = dma.done.wait (!%p6130_p9), %s5202_s9, 512  }
0x2191   : > { %6902 = vsyncadd (!%p6130_p9), %s5202_s9, 4294966784  ;;  %s8107_s23 = smov %s7169_s29  ;;  %p32_p8 = scmp.ge.s32.totalorder %s7169_s29, 4  }
0x2192   : > { %s8108_s29 = smov %s6909_s30  ;;  %s8109_s30 = smov %s6913_s15 }
0x2193   : > { %s8110_s15 = smov %s7185_s28  ;;  %s8111_s16 = smov %s8107_s23 }
0x2194   :  { %34 = sbr.rel (!%p32_p8) target bundleno = 19 (0x13), region = 162 }
0x219b   :  { %5207 = vsyncpa [#allocation3], 1 }
0x219c   :  { %5209 = vsyncpa [#allocation3 + $0x1], 1 }
0x219d   :  { %5210 = vsyncpa [#allocation6], 1 }
0x219e   :  { %5212 = vsyncpa [#allocation6 + $0x1], 1 }
0x219f   :  { %5213 = vsyncpa [#allocation9], 1 }
0x21a0   :  { %5214 = vsyncpa [#allocation12], 1 }
0x21a1   :  { %5215 = vsyncpa [#allocation4], 1 }
0x21a2   :  { %5217 = vsyncpa [#allocation4 + $0x1], 1 }

</bundles_post_ra>
